<compile_context>
chip_gen: v7x
topology: tpu7x:2x2x1
jax: 0.10.0
libtpu: 0.0.40
codegen_flags: <defaults>
</compile_context>

<pallas_src>
import jax
import jax.numpy as jnp
import numpy as np
from jax.experimental import pallas as pl
from jax.experimental.pallas import tpu as pltpu

# ---- module-consistent small shapes ---------------------------------------
B, C_IN, C, L = 2, 16, 32, 16          # batch, hidden_in, hidden, sequence len
K, STRIDE = 5, 2                       # kernel size (odd -> residual add legal)
PAD = K // 2                           # int(size / 2)
L1 = (L + 2 * PAD - K) // STRIDE + 1   # length after the strided "scale" conv
EPS = 1e-5

M = B * L1                             # rows presented to the MXU (sublanes)
CP = 128                               # channels padded to one full lane tile
CKP = 128                              # C_IN*K (=80) padded to one lane tile
HIGHEST = jax.lax.Precision.HIGHEST


def _bn(y, g, b, relu):
    """Training-mode BatchNorm1d over the (B*L) row axis, one reduction pass.

    var = E[y^2] - mean^2; gamma*rsqrt(var+eps) and the shift are folded so the
    normalization is one fused multiply-add per element.  Zero-padded channels
    stay zero because their gamma/beta are zero.
    """
    inv_n = 1.0 / y.shape[0]
    s = jnp.sum(y, axis=0, keepdims=True)
    ss = jnp.sum(y * y, axis=0, keepdims=True)
    mean = s * inv_n
    var = ss * inv_n - mean * mean
    scale = g * jax.lax.rsqrt(var + EPS)
    shift = b - mean * scale
    out = y * scale + shift
    return jnp.maximum(out, 0.0) if relu else out


def _tap_stack(x2d):
    """(M, CP) -> (M, K*CP): stack the K shifted 'same'-conv taps on lanes.

    Length padding is built by concatenating zero blocks (values stay in
    vregs, no scratch round-trip); each tap slice is a pure sublane shift and
    every concatenated piece is a full 128-lane block (no lane repacking).
    """
    x3 = x2d.reshape(B, L1, CP)
    zpad = jnp.zeros((B, PAD, CP), jnp.float32)
    xp = jnp.concatenate([zpad, x3, zpad], axis=1)             # (B, L1+2*PAD, CP)
    taps = jnp.concatenate([xp[:, k:k + L1, :] for k in range(K)], axis=-1)
    return taps.reshape(M, K * CP)                             # (M, 640)


def convblock_kernel(xcol_ref, w1_ref, w2_ref, w3_ref, prm_ref, out_ref):
    prm = prm_ref[...]                                         # (16, CP) packed params
    b1, g1, be1 = prm[0:1], prm[1:2], prm[2:3]
    b2, g2, be2 = prm[3:4], prm[4:5], prm[5:6]
    b3, g3, be3 = prm[6:7], prm[7:8], prm[8:9]

    # ---- scale branch: strided Conv1d as a single im2col matmul + BN + ReLU ----
    y = jnp.dot(xcol_ref[...], w1_ref[...],
                preferred_element_type=jnp.float32, precision=HIGHEST) + b1
    scaled = _bn(y, g1, be1, relu=True)                        # (M, CP)

    # ---- res conv #1: all K taps fused into one wide contraction, BN + ReLU ----
    y = jnp.dot(_tap_stack(scaled), w2_ref[...],
                preferred_element_type=jnp.float32, precision=HIGHEST) + b2
    r = _bn(y, g2, be2, relu=True)

    # ---- res conv #2: fused taps, BN (no ReLU) ----
    y = jnp.dot(_tap_stack(r), w3_ref[...],
                preferred_element_type=jnp.float32, precision=HIGHEST) + b3
    r = _bn(y, g3, be3, relu=False)

    # ---- residual add + final ReLU; lane-dense (128-wide) unmasked store ----
    out_ref[...] = jnp.maximum(r + scaled, 0.0)


def conv_block(x, params):
    """x: (B, C_IN, L) in PyTorch NCL layout. Returns (B, C, L1) NCL."""
    (w1, b1, g1, be1, w2, b2, g2, be2, w3, b3, g3, be3) = params
    f32 = jnp.float32

    # im2col for the strided conv (plain-JAX glue; negligible at these sizes).
    x_pad = jnp.pad(x, ((0, 0), (0, 0), (PAD, PAD)))
    idx = (jnp.arange(L1) * STRIDE)[:, None] + jnp.arange(K)[None, :]   # (L1, K)
    xcol = x_pad[:, :, idx]                                    # (B, C_IN, L1, K)
    xcol = xcol.transpose(0, 2, 1, 3).reshape(M, C_IN * K)     # row = (b, i), col = ci*K+k
    xcol = jnp.pad(xcol, ((0, 0), (0, CKP - C_IN * K)))        # (M, 128) lane-dense

    # Scale-conv weight as an (im2col-depth, C_out) matrix, zero-padded to 128x128.
    w1_col = w1.reshape(C, C_IN * K).T                         # (C_IN*K, C), row ci*K+k
    w1_p = jnp.zeros((CKP, CP), f32).at[:C_IN * K, :C].set(w1_col)

    # Res-conv weights laid out to match the lane-stacked taps: row k*CP + c_in.
    def res_weight(w):                                         # (C,C,K) -> (K*CP, CP)
        wt = jnp.transpose(w, (2, 1, 0))                       # (K, C_in, C_out)
        return jnp.zeros((K, CP, CP), f32).at[:, :C, :C].set(wt).reshape(K * CP, CP)

    w2_p = res_weight(w2)
    w3_p = res_weight(w3)

    # All per-channel parameters packed into ONE lane-dense (16, 128) array.
    prm = jnp.zeros((16, CP), f32)
    for i, v in enumerate((b1, g1, be1, b2, g2, be2, b3, g3, be3)):
        prm = prm.at[i, :C].set(v)

    vmem = pl.BlockSpec(memory_space=pltpu.MemorySpace.VMEM)   # whole-array blocks
    out2d = pl.pallas_call(
        convblock_kernel,
        out_shape=jax.ShapeDtypeStruct((M, CP), f32),
        in_specs=[vmem, vmem, vmem, vmem, vmem],
        out_specs=vmem,
    )(xcol, w1_p, w2_p, w3_p, prm)

    # Drop the channel padding and go back to NCL.
    return out2d[:, :C].reshape(B, L1, C).transpose(0, 2, 1)


# ----------------------- pure-JAX reference (NCL) ---------------------------
def _conv1d_ref(x, w, b, stride):
    y = jax.lax.conv_general_dilated(
        x, w, (stride,), [(PAD, PAD)],
        dimension_numbers=("NCH", "OIH", "NCH"),
        precision=jax.lax.Precision.HIGHEST)
    return y + b[None, :, None]


def _bn_ref(y, g, be, relu):
    mean = y.mean(axis=(0, 2), keepdims=True)
    var = ((y - mean) ** 2).mean(axis=(0, 2), keepdims=True)
    yn = (y - mean) / jnp.sqrt(var + EPS) * g[None, :, None] + be[None, :, None]
    return jnp.maximum(yn, 0.0) if relu else yn


def ref_forward(x, params):
    (w1, b1, g1, be1, w2, b2, g2, be2, w3, b3, g3, be3) = params
    scaled = _bn_ref(_conv1d_ref(x, w1, b1, STRIDE), g1, be1, True)
    r = _bn_ref(_conv1d_ref(scaled, w2, b2, 1), g2, be2, True)
    r = _bn_ref(_conv1d_ref(r, w3, b3, 1), g3, be3, False)
    return jnp.maximum(r + scaled, 0.0)


if __name__ == "__main__":
    key = jax.random.PRNGKey(0)
    ks = jax.random.split(key, 13)

    x = jax.random.normal(ks[0], (B, C_IN, L), jnp.float32)

    # Deterministic synthetic parameters (PyTorch shapes: Conv1d W=(Cout,Cin,K))
    params = (
        0.1 * jax.random.normal(ks[1], (C, C_IN, K), jnp.float32),   # scale conv W
        0.1 * jax.random.normal(ks[2], (C,), jnp.float32),           # scale conv b
        1.0 + 0.1 * jax.random.normal(ks[3], (C,), jnp.float32),     # BN1 gamma
        0.1 * jax.random.normal(ks[4], (C,), jnp.float32),           # BN1 beta
        0.1 * jax.random.normal(ks[5], (C, C, K), jnp.float32),      # res conv1 W
        0.1 * jax.random.normal(ks[6], (C,), jnp.float32),           # res conv1 b
        1.0 + 0.1 * jax.random.normal(ks[7], (C,), jnp.float32),     # BN2 gamma
        0.1 * jax.random.normal(ks[8], (C,), jnp.float32),           # BN2 beta
        0.1 * jax.random.normal(ks[9], (C, C, K), jnp.float32),      # res conv2 W
        0.1 * jax.random.normal(ks[10], (C,), jnp.float32),          # res conv2 b
        1.0 + 0.1 * jax.random.normal(ks[11], (C,), jnp.float32),    # BN3 gamma
        0.1 * jax.random.normal(ks[12], (C,), jnp.float32),          # BN3 beta
    )

    out = jax.block_until_ready(conv_block(x, params))
    ref = jax.block_until_ready(ref_forward(x, params))

    assert out.shape == (B, C, L1), out.shape
    np.testing.assert_allclose(np.asarray(out), np.asarray(ref),
                               rtol=1e-4, atol=1e-4)
    print("KERNEL_OK")
</pallas_src>

<mosaic_0001>
module attributes {stable_mosaic.version = 11 : i64} {
  func.func @convblock_kernel(%arg0: memref<16x128xf32, #tpu.memory_space<vmem>>, %arg1: memref<128x128xf32, #tpu.memory_space<vmem>>, %arg2: memref<640x128xf32, #tpu.memory_space<vmem>>, %arg3: memref<640x128xf32, #tpu.memory_space<vmem>>, %arg4: memref<16x128xf32, #tpu.memory_space<vmem>>, %arg5: memref<16x128xf32, #tpu.memory_space<vmem>>) attributes {dimension_semantics = [], scalar_prefetch = 0 : i64, scratch_operands = 0 : i64, tpu.core_type = #tpu.core_type<tc>} {
    %c0 = arith.constant 0 : index
    %c0_0 = arith.constant 0 : index
    %0 = vector.load %arg4[%c0, %c0_0] : memref<16x128xf32, #tpu.memory_space<vmem>>, vector<16x128xf32>
    %1 = vector.extract_strided_slice %0 {offsets = [0, 0], sizes = [1, 128], strides = [1, 1]} : vector<16x128xf32> to vector<1x128xf32>
    %2 = vector.extract_strided_slice %0 {offsets = [1, 0], sizes = [1, 128], strides = [1, 1]} : vector<16x128xf32> to vector<1x128xf32>
    %3 = vector.extract_strided_slice %0 {offsets = [2, 0], sizes = [1, 128], strides = [1, 1]} : vector<16x128xf32> to vector<1x128xf32>
    %4 = vector.extract_strided_slice %0 {offsets = [3, 0], sizes = [1, 128], strides = [1, 1]} : vector<16x128xf32> to vector<1x128xf32>
    %5 = vector.extract_strided_slice %0 {offsets = [4, 0], sizes = [1, 128], strides = [1, 1]} : vector<16x128xf32> to vector<1x128xf32>
    %6 = vector.extract_strided_slice %0 {offsets = [5, 0], sizes = [1, 128], strides = [1, 1]} : vector<16x128xf32> to vector<1x128xf32>
    %7 = vector.extract_strided_slice %0 {offsets = [6, 0], sizes = [1, 128], strides = [1, 1]} : vector<16x128xf32> to vector<1x128xf32>
    %8 = vector.extract_strided_slice %0 {offsets = [7, 0], sizes = [1, 128], strides = [1, 1]} : vector<16x128xf32> to vector<1x128xf32>
    %9 = vector.extract_strided_slice %0 {offsets = [8, 0], sizes = [1, 128], strides = [1, 1]} : vector<16x128xf32> to vector<1x128xf32>
    %c0_1 = arith.constant 0 : index
    %c0_2 = arith.constant 0 : index
    %10 = vector.load %arg0[%c0_1, %c0_2] : memref<16x128xf32, #tpu.memory_space<vmem>>, vector<16x128xf32>
    %c0_3 = arith.constant 0 : index
    %c0_4 = arith.constant 0 : index
    %11 = vector.load %arg1[%c0_3, %c0_4] : memref<128x128xf32, #tpu.memory_space<vmem>>, vector<128x128xf32>
    %cst = arith.constant dense<0.000000e+00> : vector<16x128xf32>
    %12 = tpu.matmul %10, %11, %cst {dimension_numbers = #tpu.dot_dimension_numbers<[1], [0], [0], [1], [0, 0, 1, 1], [], []>, precision = #tpu.contract_precision<fp32>} : vector<16x128xf32>, vector<128x128xf32>, vector<16x128xf32> -> vector<16x128xf32>
    %13 = vector.broadcast %1 : vector<1x128xf32> to vector<16x128xf32>
    %14 = arith.addf %12, %13 : vector<16x128xf32>
    %cst_5 = arith.constant dense<0.000000e+00> : vector<128xf32>
    %15 = vector.multi_reduction <add>, %14, %cst_5 [0] : vector<16x128xf32> to vector<128xf32>
    %16 = vector.shape_cast %15 : vector<128xf32> to vector<1x128xf32>
    %17 = arith.mulf %14, %14 : vector<16x128xf32>
    %cst_6 = arith.constant dense<0.000000e+00> : vector<128xf32>
    %18 = vector.multi_reduction <add>, %17, %cst_6 [0] : vector<16x128xf32> to vector<128xf32>
    %19 = vector.shape_cast %18 : vector<128xf32> to vector<1x128xf32>
    %cst_7 = arith.constant 6.250000e-02 : f32
    %20 = vector.broadcast %cst_7 : f32 to vector<1x128xf32>
    %21 = arith.mulf %16, %20 : vector<1x128xf32>
    %cst_8 = arith.constant 6.250000e-02 : f32
    %22 = vector.broadcast %cst_8 : f32 to vector<1x128xf32>
    %23 = arith.mulf %19, %22 : vector<1x128xf32>
    %24 = arith.mulf %21, %21 : vector<1x128xf32>
    %25 = arith.subf %23, %24 : vector<1x128xf32>
    %cst_9 = arith.constant 9.99999974E-6 : f32
    %26 = vector.broadcast %cst_9 : f32 to vector<1x128xf32>
    %27 = arith.addf %25, %26 : vector<1x128xf32>
    %28 = math.rsqrt %27 : vector<1x128xf32>
    %29 = arith.mulf %2, %28 : vector<1x128xf32>
    %30 = arith.mulf %21, %29 : vector<1x128xf32>
    %31 = arith.subf %3, %30 : vector<1x128xf32>
    %32 = vector.broadcast %29 : vector<1x128xf32> to vector<16x128xf32>
    %33 = arith.mulf %14, %32 : vector<16x128xf32>
    %34 = vector.broadcast %31 : vector<1x128xf32> to vector<16x128xf32>
    %35 = arith.addf %33, %34 : vector<16x128xf32>
    %cst_10 = arith.constant 0.000000e+00 : f32
    %36 = vector.broadcast %cst_10 : f32 to vector<16x128xf32>
    %37 = arith.maximumf %35, %36 : vector<16x128xf32>
    %38 = vector.shape_cast %37 : vector<16x128xf32> to vector<2x8x128xf32>
    %cst_11 = arith.constant 0.000000e+00 : f32
    %39 = vector.broadcast %cst_11 : f32 to vector<2x2x128xf32>
    %40 = tpu.concatenate %39, %38, %39 in 1 : vector<2x2x128xf32>, vector<2x8x128xf32>, vector<2x2x128xf32> -> vector<2x12x128xf32>
    %41 = vector.extract_strided_slice %40 {offsets = [0, 0, 0], sizes = [2, 8, 128], strides = [1, 1, 1]} : vector<2x12x128xf32> to vector<2x8x128xf32>
    %42 = vector.extract_strided_slice %40 {offsets = [0, 1, 0], sizes = [2, 8, 128], strides = [1, 1, 1]} : vector<2x12x128xf32> to vector<2x8x128xf32>
    %43 = vector.extract_strided_slice %40 {offsets = [0, 2, 0], sizes = [2, 8, 128], strides = [1, 1, 1]} : vector<2x12x128xf32> to vector<2x8x128xf32>
    %44 = vector.extract_strided_slice %40 {offsets = [0, 3, 0], sizes = [2, 8, 128], strides = [1, 1, 1]} : vector<2x12x128xf32> to vector<2x8x128xf32>
    %45 = vector.extract_strided_slice %40 {offsets = [0, 4, 0], sizes = [2, 8, 128], strides = [1, 1, 1]} : vector<2x12x128xf32> to vector<2x8x128xf32>
    %46 = tpu.concatenate %41, %42, %43, %44, %45 in 2 : vector<2x8x128xf32>, vector<2x8x128xf32>, vector<2x8x128xf32>, vector<2x8x128xf32>, vector<2x8x128xf32> -> vector<2x8x640xf32>
    %47 = vector.shape_cast %46 : vector<2x8x640xf32> to vector<16x640xf32>
    %c0_12 = arith.constant 0 : index
    %c0_13 = arith.constant 0 : index
    %48 = vector.load %arg2[%c0_12, %c0_13] : memref<640x128xf32, #tpu.memory_space<vmem>>, vector<640x128xf32>
    %cst_14 = arith.constant dense<0.000000e+00> : vector<16x128xf32>
    %49 = tpu.matmul %47, %48, %cst_14 {dimension_numbers = #tpu.dot_dimension_numbers<[1], [0], [0], [1], [0, 0, 1, 1], [], []>, precision = #tpu.contract_precision<fp32>} : vector<16x640xf32>, vector<640x128xf32>, vector<16x128xf32> -> vector<16x128xf32>
    %50 = vector.broadcast %4 : vector<1x128xf32> to vector<16x128xf32>
    %51 = arith.addf %49, %50 : vector<16x128xf32>
    %cst_15 = arith.constant dense<0.000000e+00> : vector<128xf32>
    %52 = vector.multi_reduction <add>, %51, %cst_15 [0] : vector<16x128xf32> to vector<128xf32>
    %53 = vector.shape_cast %52 : vector<128xf32> to vector<1x128xf32>
    %54 = arith.mulf %51, %51 : vector<16x128xf32>
    %cst_16 = arith.constant dense<0.000000e+00> : vector<128xf32>
    %55 = vector.multi_reduction <add>, %54, %cst_16 [0] : vector<16x128xf32> to vector<128xf32>
    %56 = vector.shape_cast %55 : vector<128xf32> to vector<1x128xf32>
    %cst_17 = arith.constant 6.250000e-02 : f32
    %57 = vector.broadcast %cst_17 : f32 to vector<1x128xf32>
    %58 = arith.mulf %53, %57 : vector<1x128xf32>
    %cst_18 = arith.constant 6.250000e-02 : f32
    %59 = vector.broadcast %cst_18 : f32 to vector<1x128xf32>
    %60 = arith.mulf %56, %59 : vector<1x128xf32>
    %61 = arith.mulf %58, %58 : vector<1x128xf32>
    %62 = arith.subf %60, %61 : vector<1x128xf32>
    %cst_19 = arith.constant 9.99999974E-6 : f32
    %63 = vector.broadcast %cst_19 : f32 to vector<1x128xf32>
    %64 = arith.addf %62, %63 : vector<1x128xf32>
    %65 = math.rsqrt %64 : vector<1x128xf32>
    %66 = arith.mulf %5, %65 : vector<1x128xf32>
    %67 = arith.mulf %58, %66 : vector<1x128xf32>
    %68 = arith.subf %6, %67 : vector<1x128xf32>
    %69 = vector.broadcast %66 : vector<1x128xf32> to vector<16x128xf32>
    %70 = arith.mulf %51, %69 : vector<16x128xf32>
    %71 = vector.broadcast %68 : vector<1x128xf32> to vector<16x128xf32>
    %72 = arith.addf %70, %71 : vector<16x128xf32>
    %cst_20 = arith.constant 0.000000e+00 : f32
    %73 = vector.broadcast %cst_20 : f32 to vector<16x128xf32>
    %74 = arith.maximumf %72, %73 : vector<16x128xf32>
    %75 = vector.shape_cast %74 : vector<16x128xf32> to vector<2x8x128xf32>
    %cst_21 = arith.constant 0.000000e+00 : f32
    %76 = vector.broadcast %cst_21 : f32 to vector<2x2x128xf32>
    %77 = tpu.concatenate %76, %75, %76 in 1 : vector<2x2x128xf32>, vector<2x8x128xf32>, vector<2x2x128xf32> -> vector<2x12x128xf32>
    %78 = vector.extract_strided_slice %77 {offsets = [0, 0, 0], sizes = [2, 8, 128], strides = [1, 1, 1]} : vector<2x12x128xf32> to vector<2x8x128xf32>
    %79 = vector.extract_strided_slice %77 {offsets = [0, 1, 0], sizes = [2, 8, 128], strides = [1, 1, 1]} : vector<2x12x128xf32> to vector<2x8x128xf32>
    %80 = vector.extract_strided_slice %77 {offsets = [0, 2, 0], sizes = [2, 8, 128], strides = [1, 1, 1]} : vector<2x12x128xf32> to vector<2x8x128xf32>
    %81 = vector.extract_strided_slice %77 {offsets = [0, 3, 0], sizes = [2, 8, 128], strides = [1, 1, 1]} : vector<2x12x128xf32> to vector<2x8x128xf32>
    %82 = vector.extract_strided_slice %77 {offsets = [0, 4, 0], sizes = [2, 8, 128], strides = [1, 1, 1]} : vector<2x12x128xf32> to vector<2x8x128xf32>
    %83 = tpu.concatenate %78, %79, %80, %81, %82 in 2 : vector<2x8x128xf32>, vector<2x8x128xf32>, vector<2x8x128xf32>, vector<2x8x128xf32>, vector<2x8x128xf32> -> vector<2x8x640xf32>
    %84 = vector.shape_cast %83 : vector<2x8x640xf32> to vector<16x640xf32>
    %c0_22 = arith.constant 0 : index
    %c0_23 = arith.constant 0 : index
    %85 = vector.load %arg3[%c0_22, %c0_23] : memref<640x128xf32, #tpu.memory_space<vmem>>, vector<640x128xf32>
    %cst_24 = arith.constant dense<0.000000e+00> : vector<16x128xf32>
    %86 = tpu.matmul %84, %85, %cst_24 {dimension_numbers = #tpu.dot_dimension_numbers<[1], [0], [0], [1], [0, 0, 1, 1], [], []>, precision = #tpu.contract_precision<fp32>} : vector<16x640xf32>, vector<640x128xf32>, vector<16x128xf32> -> vector<16x128xf32>
    %87 = vector.broadcast %7 : vector<1x128xf32> to vector<16x128xf32>
    %88 = arith.addf %86, %87 : vector<16x128xf32>
    %cst_25 = arith.constant dense<0.000000e+00> : vector<128xf32>
    %89 = vector.multi_reduction <add>, %88, %cst_25 [0] : vector<16x128xf32> to vector<128xf32>
    %90 = vector.shape_cast %89 : vector<128xf32> to vector<1x128xf32>
    %91 = arith.mulf %88, %88 : vector<16x128xf32>
    %cst_26 = arith.constant dense<0.000000e+00> : vector<128xf32>
    %92 = vector.multi_reduction <add>, %91, %cst_26 [0] : vector<16x128xf32> to vector<128xf32>
    %93 = vector.shape_cast %92 : vector<128xf32> to vector<1x128xf32>
    %cst_27 = arith.constant 6.250000e-02 : f32
    %94 = vector.broadcast %cst_27 : f32 to vector<1x128xf32>
    %95 = arith.mulf %90, %94 : vector<1x128xf32>
    %cst_28 = arith.constant 6.250000e-02 : f32
    %96 = vector.broadcast %cst_28 : f32 to vector<1x128xf32>
    %97 = arith.mulf %93, %96 : vector<1x128xf32>
    %98 = arith.mulf %95, %95 : vector<1x128xf32>
    %99 = arith.subf %97, %98 : vector<1x128xf32>
    %cst_29 = arith.constant 9.99999974E-6 : f32
    %100 = vector.broadcast %cst_29 : f32 to vector<1x128xf32>
    %101 = arith.addf %99, %100 : vector<1x128xf32>
    %102 = math.rsqrt %101 : vector<1x128xf32>
    %103 = arith.mulf %8, %102 : vector<1x128xf32>
    %104 = arith.mulf %95, %103 : vector<1x128xf32>
    %105 = arith.subf %9, %104 : vector<1x128xf32>
    %106 = vector.broadcast %103 : vector<1x128xf32> to vector<16x128xf32>
    %107 = arith.mulf %88, %106 : vector<16x128xf32>
    %108 = vector.broadcast %105 : vector<1x128xf32> to vector<16x128xf32>
    %109 = arith.addf %107, %108 : vector<16x128xf32>
    %110 = arith.addf %109, %37 : vector<16x128xf32>
    %cst_30 = arith.constant 0.000000e+00 : f32
    %111 = vector.broadcast %cst_30 : f32 to vector<16x128xf32>
    %112 = arith.maximumf %110, %111 : vector<16x128xf32>
    %c0_31 = arith.constant 0 : index
    %c0_32 = arith.constant 0 : index
    %113 = vector.load %arg5[%c0_31, %c0_32] : memref<16x128xf32, #tpu.memory_space<vmem>>, vector<16x128xf32>
    tpu.vector_store %arg5[%c0_31, %c0_32], %112 {strides = array<i32>} : memref<16x128xf32, #tpu.memory_space<vmem>>, vector<16x128xf32>,
    return
  }
}

</mosaic_0001>

<bundles_post_ra>
// kernel: tpu_custom_call.1
= control target key start
LH: loop header
LB: loop body
LE: loop exit
PB: predicated region body
PF: predicated region fallthrough
CT: control target
= control target key end

     0   :  { %10 = vsyncpa [#allocation3], 0  ;;  %s13306_s0 = inlined_call_operand.hbm [shape: f32[16,128], index: 0, kind: input, shape index: {}]   ;;  %s13307_s1 = inlined_call_operand.hbm [shape: f32[128,128], index: 1, kind: input, shape index: {}]   ;;  %s13308_s2 = inlined_call_operand.hbm [shape: f32[640,128], index: 2, kind: input, shape index: {}]   ;;  %s13309_s3 = inlined_call_operand.hbm [shape: f32[640,128], index: 3, kind: input, shape index: {}]   ;;  %s13310_s4 = inlined_call_operand.hbm [shape: f32[16,128], index: 4, kind: input, shape index: {}]   ;;  %s13311_s5 = inlined_call_operand.hbm [shape: f32[16,128], index: 5, kind: output, shape index: {}]  }
   0x1   :  { %11 = vsyncpa [#allocation6], 0 }
   0x2   :  { %12 = vsyncpa [#allocation9], 0 }
   0x3   :  { %13 = vsyncpa [#allocation4], 0  ;;  %s9654_s18 = smov [#allocation5]   ;;  %s9655_s20 = smov [#allocation8]  }
   0x4   :  { %s31_s19 = sshll.u32 %s9654_s18, 4  ;;  %s55_s21 = sshll.u32 %s9655_s20, 4  ;;  %s32_s19 = int_to_ptr.vmem [resolvable:$true] %s31_s19  ;;  %s9692_s21 = int_to_ptr.vmem [resolvable:$true] %s55_s21 }
   0x5   :  { %s9514_s24 = scalar_lea.hbm %s13307_s1, 2048 }
   0x6   :  { %p9515_p0 = scmp.ne.s32.totalorder %s13307_s1, %s9514_s24  ;;  %p9518_p1 = scmp.lt.u32.totalorder %s9514_s24, %s13307_s1 }
   0x8   :  { %p9520_p2 = pnand %p9518_p1, %p9515_p0 }
   0xa   :  { %9523 = shalt.err (!%p9520_p2)
}
   0xb   :  { %s9524_s29 = scalar_lea.vmem %s32_s19, 2048  ;;  %p9529_p4 = scmp.lt.s32.totalorder %s32_s19, %s32_s19 }
   0xc   :  { %p9525_p3 = scmp.ne.s32.totalorder %s32_s19, %s9524_s29  ;;  %p9530_p5 = scmp.lt.s32.totalorder %s9524_s29, %s9524_s29 }
   0xe   :  { %p9531_p6 = por %p9530_p5, %p9529_p4 }
  0x10   :  { %p9532_p7 = pnand %p9531_p6, %p9525_p3 }
  0x12   :  { %9535 = shalt.err (!%p9532_p7)
}
  0x13   :  { %s9656_s30 = smov 128   ;;  %s9657_s6 = smov 8  }
  0x14   :  { %37 = dma.hbm_to_vmem [thread:$0]  %s13307_s1, 2048, %s32_s19, [#allocation6], %s9656_s30, %s9656_s30, %s9657_s6  }
  0x15   :  { %s9536_s11 = scalar_lea.hbm %s13309_s3, 10240 }
  0x16   :  { %p9537_p8 = scmp.ne.s32.totalorder %s13309_s3, %s9536_s11  ;;  %p9540_p9 = scmp.lt.u32.totalorder %s9536_s11, %s13309_s3 }
  0x18   :  { %p9542_p10 = pnand %p9540_p9, %p9537_p8 }
  0x1a   :  { %9545 = shalt.err (!%p9542_p10)
}
  0x1b   :  { %s9546_s16 = scalar_lea.vmem %s9692_s21, 10240  ;;  %p9551_p12 = scmp.lt.s32.totalorder %s9692_s21, %s9692_s21 }
  0x1c   :  { %p9547_p11 = scmp.ne.s32.totalorder %s9692_s21, %s9546_s16  ;;  %p9552_p13 = scmp.lt.s32.totalorder %s9546_s16, %s9546_s16 }
  0x1e   :  { %p9553_p0 = por %p9552_p13, %p9551_p12 }
  0x20   :  { %p9554_p1 = pnand %p9553_p0, %p9547_p11 }
  0x22   :  { %9557 = shalt.err (!%p9554_p1)
}
  0x23   :  { %61 = dma.hbm_to_vmem [thread:$0]  %s13309_s3, 10240, %s9692_s21, [#allocation9], %s9656_s30, %s9656_s30, %s9657_s6  }
  0x24   :  { %s9658_s18 = smov [#allocation2]   ;;  %s9659_s20 = smov [#allocation7]  }
  0x25   :  { %s19_s19 = sshll.u32 %s9658_s18, 4  ;;  %s43_s22 = sshll.u32 %s9659_s20, 4  ;;  %s20_s19 = int_to_ptr.vmem [resolvable:$true] %s19_s19  ;;  %s9729_s22 = int_to_ptr.vmem [resolvable:$true] %s43_s22 }
  0x26   :  { %s9558_s25 = scalar_lea.hbm %s13306_s0, 256 }
  0x27   :  { %p9559_p2 = scmp.ne.s32.totalorder %s13306_s0, %s9558_s25  ;;  %p9562_p3 = scmp.lt.u32.totalorder %s9558_s25, %s13306_s0 }
  0x29   :  { %p9564_p4 = pnand %p9562_p3, %p9559_p2 }
  0x2b   :  { %9567 = shalt.err (!%p9564_p4)
}
  0x2c   :  { %s9568_s3 = scalar_lea.vmem %s20_s19, 256  ;;  %p9573_p6 = scmp.lt.s32.totalorder %s20_s19, %s20_s19 }
  0x2d   :  { %p9569_p5 = scmp.ne.s32.totalorder %s20_s19, %s9568_s3  ;;  %p9574_p7 = scmp.lt.s32.totalorder %s9568_s3, %s9568_s3 }
  0x2f   :  { %p9575_p8 = por %p9574_p7, %p9573_p6 }
  0x31   :  { %p9576_p9 = pnand %p9575_p8, %p9569_p5 }
  0x33   :  { %9579 = shalt.err (!%p9576_p9)
}
  0x34   :  { %25 = dma.hbm_to_vmem [thread:$0]  %s13306_s0, 256, %s20_s19, [#allocation3], %s9656_s30, %s9656_s30, %s9657_s6  }
  0x35   :  { %s9580_s10 = scalar_lea.hbm %s13308_s2, 10240 }
  0x36   :  { %p9581_p10 = scmp.ne.s32.totalorder %s13308_s2, %s9580_s10  ;;  %p9584_p11 = scmp.lt.u32.totalorder %s9580_s10, %s13308_s2 }
  0x38   :  { %p9586_p12 = pnand %p9584_p11, %p9581_p10 }
  0x3a   :  { %9589 = shalt.err (!%p9586_p12)
}
  0x3b   :  { %s9590_s15 = scalar_lea.vmem %s9729_s22, 10240  ;;  %p9595_p0 = scmp.lt.s32.totalorder %s9729_s22, %s9729_s22 }
  0x3c   :  { %p9591_p13 = scmp.ne.s32.totalorder %s9729_s22, %s9590_s15  ;;  %p9596_p1 = scmp.lt.s32.totalorder %s9590_s15, %s9590_s15 }
  0x3e   :  { %p9597_p2 = por %p9596_p1, %p9595_p0 }
  0x40   :  { %p9598_p3 = pnand %p9597_p2, %p9591_p13 }
  0x42   :  { %9601 = shalt.err (!%p9598_p3)
}
  0x43   :  { %49 = dma.hbm_to_vmem [thread:$0]  %s13308_s2, 10240, %s9729_s22, [#allocation6], %s9656_s30, %s9656_s30, %s9657_s6  }
  0x44   :  { %s9660_s1 = smov [#allocation10]   ;;  %s9602_s20 = scalar_lea.hbm %s13310_s4, 256 }
  0x45   :  { %s67_s17 = sshll.u32 %s9660_s1, 4  ;;  %p9603_p4 = scmp.ne.s32.totalorder %s13310_s4, %s9602_s20  ;;  %s68_s17 = int_to_ptr.vmem [resolvable:$true] %s67_s17 }
  0x46   :  { %p9606_p5 = scmp.lt.u32.totalorder %s9602_s20, %s13310_s4 }
  0x48   :  { %p9608_p6 = pnand %p9606_p5, %p9603_p4 }
  0x4a   :  { %9611 = shalt.err (!%p9608_p6)
}
  0x4b   :  { %s9612_s27 = scalar_lea.vmem %s68_s17, 256  ;;  %p9617_p8 = scmp.lt.s32.totalorder %s68_s17, %s68_s17 }
  0x4c   :  { %p9613_p7 = scmp.ne.s32.totalorder %s68_s17, %s9612_s27  ;;  %p9618_p9 = scmp.lt.s32.totalorder %s9612_s27, %s9612_s27 }
  0x4e   :  { %p9619_p10 = por %p9618_p9, %p9617_p8 }
  0x50   :  { %p9620_p11 = pnand %p9619_p10, %p9613_p7 }
  0x52   :  { %9623 = shalt.err (!%p9620_p11)
}
  0x53   :  { %73 = dma.hbm_to_vmem [thread:$0]  %s13310_s4, 256, %s68_s17, [#allocation9], %s9656_s30, %s9656_s30, %s9657_s6  }
  0x54   :  { %9646 = dma.done.wait [#allocation3], 256  }
  0x55   :  { %9647 = vsyncadd [#allocation3], 4294967040 }
  0x56   :  { %9648 = dma.done.wait [#allocation6], 12288  }
  0x57   :  { %9649 = vsyncadd [#allocation6], 4294955008 }
  0x58   :  { %9650 = dma.done.wait [#allocation9], 10496  }
  0x59   :  { %9651 = vsyncadd [#allocation9], 4294956800  ;;  %v93_v0 = vld [vmem:[#allocation5] sm:$0xff]  ;;  %v94_v1 = vld [vmem:[#allocation5 + $0x8] sm:$0xff]  ;;  %vm845_vm0 = vcmask 1041408   ;;  %vm854_vm1 = vcmask 1046528  }
  0x5a   :  { %v95_v2 = vld [vmem:[#allocation5 + $0x10] sm:$0xff]  ;;  %v114_v3 = vand.u32 4294901760, %v93_v0  ;;  %v117_v4 = vand.u32 4294901760, %v94_v1  ;;  %v96_v5 = vld [vmem:[#allocation5 + $0x18] sm:$0xff]  ;;  %v97_v7 = vld [vmem:[#allocation5 + $0x20] sm:$0xff]  ;;  %vm872_vm2 = vcmask 1044480  }
  0x5b   :  { %v120_v6 = vand.u32 4294901760, %v95_v2  ;;  %v98_v8 = vld [vmem:[#allocation5 + $0x28] sm:$0xff]  ;;  %v123_v9 = vand.u32 4294901760, %v96_v5  ;;  %v126_v10 = vand.u32 4294901760, %v97_v7  ;;  %v99_v12 = vld [vmem:[#allocation5 + $0x30] sm:$0xff]  ;;  %v100_v13 = vld [vmem:[#allocation5 + $0x38] sm:$0xff] }
  0x5c   :  { %v129_v11 = vand.u32 4294901760, %v98_v8  ;;  %v9781_v14 = vpack.c.bf16 %v117_v4, %v114_v3  ;;  %v9783_v15 = vsub.f32 %v93_v0, %v114_v3  ;;  %v9785_v16 = vsub.f32 %v94_v1, %v117_v4  ;;  %v101_v25 = vld [vmem:[#allocation5 + $0x40] sm:$0xff]  ;;  %v102_v27 = vld [vmem:[#allocation5 + $0x48] sm:$0xff]  ;;  %v103_v34 = vld [vmem:[#allocation5 + $0x50] sm:$0xff]  ;;  %s9661_s4 = smov [#allocation11]  }
  0x5d   :  { %v9787_v17 = vsub.f32 %v95_v2, %v120_v6  ;;  %v9789_v18 = vpack.c.bf16 %v123_v9, %v120_v6  ;;  %v9791_v19 = vsub.f32 %v96_v5, %v123_v9  ;;  %v9793_v20 = vsub.f32 %v97_v7, %v126_v10  ;;  %v91_v35 = vld [vmem:[#allocation2] sm:$0xff]  ;;  %v104_v36 = vld [vmem:[#allocation5 + $0x58] sm:$0xff]  ;;  %v105_v44 = vld [vmem:[#allocation5 + $0x60] sm:$0xff]  ;;  %s6237_s28 = sshll.u32 %s9661_s4, 4  ;;  %s6238_s28 = int_to_ptr.vmem [resolvable:$true] %s6237_s28 }
  0x5e   :  { %v8181_v21 = vpack.c.bf16 %v9785_v16, %v9783_v15  ;;  %v9797_v22 = vsub.f32 %v98_v8, %v129_v11  ;;  %v132_v23 = vand.u32 4294901760, %v99_v12  ;;  %v135_v24 = vand.u32 4294901760, %v100_v13  ;;  %8118 = vmatprep.subr.bf16.mxu1 %v9781_v14  ;;  %v106_v45 = vld [vmem:[#allocation5 + $0x68] sm:$0xff]  ;;  %v92_v49 = vld [vmem:[#allocation2 + $0x8] sm:$0xff]  ;;  %v107_v55 = vld [vmem:[#allocation5 + $0x70] sm:$0xff]  ;;  %s9624_s29 = scalar_lea.vmem %s6238_s28, 256  ;;  %p9629_p13 = scmp.lt.s32.totalorder %s6238_s28, %s6238_s28 }
  0x5f   :  { %v8185_v26 = vpack.c.bf16 %v9791_v19, %v9787_v17  ;;  %8120 = vmatpush3.bf16.msra.mxu1 %v9781_v14  ;;  %v9803_v28 = vpack.c.bf16 %v129_v11, %v126_v10  ;;  %v138_v29 = vand.u32 4294901760, %v101_v25  ;;  %v141_v33 = vand.u32 4294901760, %v102_v27  ;;  %v108_v56 = vld [vmem:[#allocation5 + $0x78] sm:$0xff]  ;;  %p9625_p12 = scmp.ne.s32.totalorder %s6238_s28, %s9624_s29  ;;  %p9630_p0 = scmp.lt.s32.totalorder %s9624_s29, %s9624_s29 }
  0x60   :  { %8182 = vmatprep.subr.bf16.mxu0 %v8181_v21  ;;  %8122 = vmatprep.subr.bf16.mxu1 %v9789_v18  ;;  %v8189_v30 = vpack.c.bf16 %v9797_v22, %v9793_v20  ;;  %v9808_v31 = vsub.f32 %v99_v12, %v132_v23  ;;  %v9810_v32 = vsub.f32 %v100_v13, %v135_v24  ;;  %v144_v38 = vand.u32 4294901760, %v103_v34 }
  0x61   :  { %8184 = vmatpush3.bf16.msra.mxu0 %v8181_v21  ;;  %v9813_v37 = vpack.c.bf16 %v135_v24, %v132_v23  ;;  %v9816_v39 = vand.u32 4294901760, %v91_v35  ;;  %v9820_v41 = vsub.f32 %v101_v25, %v138_v29  ;;  %v9822_v42 = vsub.f32 %v102_v27, %v141_v33  ;;  %p9631_p1 = por %p9630_p0, %p9629_p13 }
  0x62   :  { %8186 = vmatprep.subr.bf16.mxu0 %v8185_v26  ;;  %v8193_v40 = vpack.c.bf16 %v9810_v32, %v9808_v31  ;;  %v147_v43 = vand.u32 4294901760, %v104_v36  ;;  %v9828_v47 = vpack.c.bf16 %v141_v33, %v138_v29  ;;  %v9831_v48 = vsub.f32 %v103_v34, %v144_v38 }
  0x63   :  { %8124 = vmatpush3.bf16.msra.mxu1 %v9789_v18  ;;  %v9825_v46 = vsub.f32 %v91_v35, %v9816_v39  ;;  %v8197_v51 = vpack.c.bf16 %v9822_v42, %v9820_v41  ;;  %v150_v53 = vand.u32 4294901760, %v105_v44  ;;  %v153_v54 = vand.u32 4294901760, %v106_v45  ;;  %p9632_p2 = pnand %p9631_p1, %p9625_p12 }
  0x64   :  { %8126 = vmatprep.subr.bf16.mxu1 %v9803_v28  ;;  %v9837_v52 = vsub.f32 %v104_v36, %v147_v43  ;;  %v9843_v58 = vpack.c.bf16 %v147_v43, %v144_v38  ;;  %v9845_v59 = vand.u32 4294901760, %v92_v49  ;;  %v217_v60 = vand.u32 4294901760, %v9783_v15 }
  0x65   :  { %8188 = vmatpush3.bf16.msra.mxu0 %v8185_v26  ;;  %7589 = vmatprep.mubr.f32.mxu0 %v9825_v46  ;;  %v196_v50 = vand.u32 4294901760, %v9825_v46  ;;  %v224_v61 = vand.u32 4294901760, %v9785_v16  ;;  %v156_v62 = vand.u32 4294901760, %v107_v55  ;;  %v9852_v1 = vsub.f32 %v105_v44, %v150_v53 }
  0x66   :  { %8190 = vmatprep.subr.bf16.mxu0 %v8189_v30  ;;  %v8201_v0 = vpack.c.bf16 %v9837_v52, %v9831_v48  ;;  %v9854_v2 = vsub.f32 %v106_v45, %v153_v54  ;;  %v159_v3 = vand.u32 4294901760, %v108_v56  ;;  %v231_v4 = vand.u32 4294901760, %v9787_v17 }
  0x67   :  { %8128 = vmatpush3.bf16.msra.mxu1 %v9803_v28  ;;  %v197_v57 = vsub.f32 %v9825_v46, %v196_v50  ;;  %v238_v5 = vand.u32 4294901760, %v9791_v19  ;;  %v9859_v6 = vpack.c.bf16 %v153_v54, %v150_v53  ;;  %v9862_v7 = vsub.f32 %v92_v49, %v9845_v59 }
  0x68   :  { %8130 = vmatprep.subr.bf16.mxu1 %v9813_v37  ;;  %v218_v8 = vsub.f32 %v9783_v15, %v217_v60  ;;  %v225_v9 = vsub.f32 %v9785_v16, %v224_v61  ;;  %v8205_v10 = vpack.c.bf16 %v9854_v2, %v9852_v1  ;;  %v9873_v11 = vsub.f32 %v107_v55, %v156_v62 }
  0x69   :  { %8192 = vmatpush3.bf16.msra.mxu0 %v8189_v30  ;;  %v198_v63 = vand.u32 4294901760, %v197_v57  ;;  %v9875_v12 = vsub.f32 %v108_v56, %v159_v3  ;;  %v206_v13 = vand.u32 4294901760, %v9862_v7  ;;  %v232_v21 = vsub.f32 %v9787_v17, %v231_v4 }
  0x6a   :  { %8194 = vmatprep.subr.bf16.mxu0 %v8193_v40  ;;  %v239_v23 = vsub.f32 %v9791_v19, %v238_v5  ;;  %v245_v24 = vand.u32 4294901760, %v9793_v20  ;;  %v9886_v25 = vpack.c.bf16 %v159_v3, %v156_v62  ;;  %v219_v26 = vand.u32 4294901760, %v218_v8 }
  0x6b   :  { %8132 = vmatpush3.bf16.msra.mxu1 %v9813_v37  ;;  %7519 = vmatprep.mubr.f32.mxu1 %v198_v63  ;;  %v226_v27 = vand.u32 4294901760, %v225_v9  ;;  %v252_v29 = vand.u32 4294901760, %v9797_v22  ;;  %v8209_v30 = vpack.c.bf16 %v9875_v12, %v9873_v11  ;;  %v207_v33 = vsub.f32 %v9862_v7, %v206_v13 }
  0x6c   :  { %8134 = vmatprep.subr.bf16.mxu1 %v9828_v47  ;;  %v233_v34 = vand.u32 4294901760, %v232_v21  ;;  %v240_v35 = vand.u32 4294901760, %v239_v23  ;;  %v246_v36 = vsub.f32 %v9793_v20, %v245_v24  ;;  %v259_v38 = vand.u32 4294901760, %v9808_v31 }
  0x6d   :  { %8196 = vmatpush3.bf16.msra.mxu0 %v8193_v40  ;;  %v8149_v40 = vpack.c.bf16 %v226_v27, %v219_v26  ;;  %v253_v43 = vsub.f32 %v9797_v22, %v252_v29  ;;  %v266_v44 = vand.u32 4294901760, %v9810_v32  ;;  %v208_v45 = vand.u32 4294901760, %v207_v33 }
  0x6e   :  { %8198 = vmatprep.subr.bf16.mxu0 %v8197_v51  ;;  %v8153_v49 = vpack.c.bf16 %v240_v35, %v233_v34  ;;  %v260_v53 = vsub.f32 %v9808_v31, %v259_v38  ;;  %v273_v56 = vand.u32 4294901760, %v9820_v41  ;;  %v280_v57 = vand.u32 4294901760, %v9822_v42 }
  0x6f   :  { %8136 = vmatpush3.bf16.msra.mxu1 %v9828_v47  ;;  %v254_v54 = vand.u32 4294901760, %v253_v43  ;;  %v267_v55 = vsub.f32 %v9810_v32, %v266_v44  ;;  %v287_v63 = vand.u32 4294901760, %v9831_v48  ;;  %v301_v26 = vand.u32 4294901760, %v9852_v1 }
  0x70   :  { %8138 = vmatprep.subr.bf16.mxu1 %v9843_v58  ;;  %v261_v62 = vand.u32 4294901760, %v260_v53  ;;  %v274_v9 = vsub.f32 %v9820_v41, %v273_v56  ;;  %v308_v46 = vand.u32 4294901760, %v9854_v2  ;;  %v315_v43 = vand.u32 4294901760, %v9873_v11  ;;  %v10018_v41 = vld [vmem:[#allocation7] sm:$0xff] }
  0x71   :  { %8200 = vmatpush3.bf16.msra.mxu0 %v8197_v51  ;;  %v247_v51 = vand.u32 4294901760, %v246_v36  ;;  %v268_v8 = vand.u32 4294901760, %v267_v55  ;;  %v288_v21 = vsub.f32 %v9831_v48, %v287_v63  ;;  %v302_v35 = vsub.f32 %v9852_v1, %v301_v26 }
  0x72   :  { %8202 = vmatprep.subr.bf16.mxu0 %v8201_v0  ;;  %v8253_v15 = vpack.c.bf16 %v252_v29, %v245_v24  ;;  %v8257_v16 = vpack.c.bf16 %v266_v44, %v259_v38  ;;  %v8261_v17 = vpack.c.bf16 %v280_v57, %v273_v56  ;;  %v8269_v20 = vpack.c.bf16 %v308_v46, %v301_v26  ;;  %v10064_v38 = vld [vmem:[#allocation7 + $0x198] sm:$0xff]  ;;  %v10067_v56 = vld [vmem:[#allocation7 + $0x10] sm:$0xff] }
  0x73   :  { %8140 = vmatpush3.bf16.msra.mxu1 %v9843_v58  ;;  %v8157_v3 = vpack.c.bf16 %v254_v54, %v247_v51  ;;  %v8161_v27 = vpack.c.bf16 %v268_v8, %v261_v62  ;;  %v303_v51 = vand.u32 4294901760, %v302_v35  ;;  %v316_v54 = vsub.f32 %v9873_v11, %v315_v43 }
  0x74   :  { %8142 = vmatprep.subr.bf16.mxu1 %v9859_v6  ;;  %v8245_v11 = vpack.c.bf16 %v224_v61, %v217_v60  ;;  %v13341_v48 = vand.u32 4294901760, %v10018_v41  ;;  %vm863_vm3 = vcmask 1045504   ;;  %vm881_vm4 = vcmask 1043456  }
  0x75   :  { %8204 = vmatpush3.bf16.msra.mxu0 %v8201_v0  ;;  %v294_v0 = vand.u32 4294901760, %v9837_v52  ;;  %v317_v62 = vand.u32 4294901760, %v316_v54 }
  0x76   :  { %8206 = vmatprep.subr.bf16.mxu0 %v8205_v10 }
  0x77   :  { %8144 = vmatpush3.bf16.msra.mxu1 %v9859_v6  ;;  %v295_v23 = vsub.f32 %v9837_v52, %v294_v0  ;;  %v8265_v19 = vpack.c.bf16 %v294_v0, %v287_v63  ;;  %v13326_v63 = vand.u32 4294901760, %v10064_v38  ;;  %v13325_v0 = vand.u32 4294901760, %v10067_v56 }
  0x78   :  { %8146 = vmatprep.subr.bf16.mxu1 %v9886_v25 }
  0x79   :  { %8208 = vmatpush3.bf16.msra.mxu0 %v8205_v10  ;;  %v281_v10 = vsub.f32 %v9822_v42, %v280_v57  ;;  %v296_v34 = vand.u32 4294901760, %v295_v23  ;;  %v10020_v42 = vld [vmem:[#allocation7 + $0x8] sm:$0xff]  ;;  %v10069_v57 = vld [vmem:[#allocation7 + $0x18] sm:$0xff] }
  0x7a   :  { %8210 = vmatprep.subr.bf16.mxu0 %v8209_v30  ;;  %v13340_v52 = vand.u32 4294901760, %v10020_v42 }
  0x7b   :  { %8148 = vmatpush3.bf16.msra.mxu1 %v9886_v25  ;;  %v282_v33 = vand.u32 4294901760, %v281_v10  ;;  %v10076_v10 = vld [vmem:[#allocation7 + $0x110] sm:$0xff] }
  0x7c   :  { %8150 = vmatprep.subr.bf16.mxu1 %v8149_v40  ;;  %v13323_v26 = vand.u32 4294901760, %v10076_v10 }
  0x7d   :  { %8212 = vmatpush3.bf16.msra.mxu0 %v8209_v30  ;;  %v275_v30 = vand.u32 4294901760, %v274_v9  ;;  %v13324_v9 = vand.u32 4294901760, %v10069_v57 }
  0x7e   :  { %8214 = vmatprep.subr.bf16.mxu0 %v9781_v14  ;;  %7520 = vmatmul.mubr.f32.vlgmr.msra.gmra.mrb[0].mxu1 %v208_v45  ;;  %v322_v45 = vand.u32 4294901760, %v9875_v12 }
  0x7f   :  { %8152 = vmatpush3.bf16.msra.mxu1 %v8149_v40  ;;  %7554 = vmatprep.mubr.f32.mxu1 %v9816_v39  ;;  %v8165_v36 = vpack.c.bf16 %v282_v33, %v275_v30  ;;  %v309_v40 = vsub.f32 %v9854_v2, %v308_v46  ;;  %v10099_v33 = vpack.c.bf16 %v13324_v9, %v13325_v0  ;;  %v10101_v46 = vld [vmem:[#allocation7 + $0xa0] sm:$0xff] }
  0x80   :  { %7590 = vmatmul.mubr.f32.vlgmr.msra.gmra.mrb[0].mxu0 %v9862_v7  ;;  %8154 = vmatprep.subr.bf16.mxu1 %v8153_v49  ;;  %v323_v55 = vsub.f32 %v9875_v12, %v322_v45  ;;  %v8249_v12 = vpack.c.bf16 %v238_v5, %v231_v4  ;;  %v8273_v22 = vpack.c.bf16 %v322_v45, %v315_v43  ;;  %v10051_v7 = vld [vmem:[#allocation7 + $0x98] sm:$0xff]  ;;  %v10116_v43 = vld [vmem:[#allocation7 + $0x1a8] sm:$0xff] }
  0x81   :  { %8216 = vmatpush3.bf16.msra.mxu0 %v9781_v14  ;;  %7624 = vmatprep.mubr.f32.mxu0 %v196_v50  ;;  %v289_v50 = vand.u32 4294901760, %v288_v21  ;;  %v310_v53 = vand.u32 4294901760, %v309_v40  ;;  %v10047_v5 = vpack.c.bf16 %v13340_v52, %v13341_v48  ;;  %v13332_v29 = vand.u32 4294901760, %v10051_v7  ;;  %v10078_v21 = vld [vmem:[#allocation7 + $0x118] sm:$0xff]  ;;  %13973 = vst [vmem:[#allocation22_spill] sm:$0xff] %v10099_v33  ;;  %v10232_v52 = vld [vmem:[#allocation7 + $0x140] sm:$0xff] }
  0x82   :  { %8218 = vmatprep.subr.bf16.mxu0 %v9789_v18  ;;  %v10234_v48 = vld [vmem:[#allocation7 + $0x148] sm:$0xff] }
  0x83   :  { %8156 = vmatpush3.bf16.msra.mxu1 %v8153_v49  ;;  %v8169_v49 = vpack.c.bf16 %v296_v34, %v289_v50  ;;  %v8173_v2 = vpack.c.bf16 %v310_v53, %v303_v51  ;;  %13969 = vst [vmem:[#allocation18_spill] sm:$0xff] %v10047_v5  ;;  %v10103_v50 = vld [vmem:[#allocation7 + $0xa8] sm:$0xff]  ;;  %v10105_v34 = vld [vmem:[#allocation7 + $0x1a0] sm:$0xff]  ;;  %v13316_v53 = vand.u32 4294901760, %v10116_v43 }
  0x84   :  { %8158 = vmatprep.subr.bf16.mxu1 %v8157_v3  ;;  %v13320_v40 = vand.u32 4294901760, %v10103_v50  ;;  %v13317_v45 = vand.u32 4294901760, %v10105_v34  ;;  %v10121_v51 = vld [vmem:[#allocation7 + $0x28] sm:$0xff] }
  0x85   :  { %8220 = vmatpush3.bf16.msra.mxu0 %v9789_v18 }
  0x86   :  { %8222 = vmatprep.subr.bf16.mxu0 %v9803_v28 }
  0x87   :  { %8160 = vmatpush3.bf16.msra.mxu1 %v8157_v3  ;;  %v324_v3 = vand.u32 4294901760, %v323_v55  ;;  %v13314_v55 = vand.u32 4294901760, %v10121_v51 }
  0x88   :  { %8162 = vmatprep.subr.bf16.mxu1 %v8161_v27 }
  0x89   :  { %8224 = vmatpush3.bf16.msra.mxu0 %v9803_v28  ;;  %v8177_v8 = vpack.c.bf16 %v324_v3, %v317_v62  ;;  %v10130_v62 = vld [vmem:[#allocation7 + $0x128] sm:$0xff] }
  0x8a   :  { %8226 = vmatprep.subr.bf16.mxu0 %v9813_v37 }
  0x8b   :  { %8164 = vmatpush3.bf16.msra.mxu1 %v8161_v27  ;;  %v13322_v27 = vand.u32 4294901760, %v10078_v21 }
  0x8c   :  { %8166 = vmatprep.subr.bf16.mxu1 %v8165_v36 }
  0x8d   :  { %8228 = vmatpush3.bf16.msra.mxu0 %v9813_v37  ;;  %v10112_v35 = vpack.c.bf16 %v13322_v27, %v13323_v26 }
  0x8e   :  { %8230 = vmatprep.subr.bf16.mxu0 %v9828_v47 }
  0x8f   :  { %8168 = vmatpush3.bf16.msra.mxu1 %v8165_v36  ;;  %13974 = vst [vmem:[#allocation23_spill] sm:$0xff] %v10112_v35  ;;  %v13321_v36 = vand.u32 4294901760, %v10101_v46 }
  0x90   :  { %8170 = vmatprep.subr.bf16.mxu1 %v8169_v49 }
  0x91   :  { %8232 = vmatpush3.bf16.msra.mxu0 %v9828_v47  ;;  %v10137_v3 = vpack.c.bf16 %v13320_v40, %v13321_v36  ;;  %v10180_v40 = vld [vmem:[#allocation7 + $0x130] sm:$0xff]  ;;  %v10182_v36 = vld [vmem:[#allocation7 + $0x138] sm:$0xff] }
  0x92   :  { %8234 = vmatprep.subr.bf16.mxu0 %v9843_v58  ;;  %v13339_v26 = vand.u32 4294901760, %v10180_v40  ;;  %v13338_v9 = vand.u32 4294901760, %v10182_v36 }
  0x93   :  { %8172 = vmatpush3.bf16.msra.mxu1 %v8169_v49  ;;  %v10119_v49 = vld [vmem:[#allocation7 + $0x20] sm:$0xff]  ;;  %13975 = vst [vmem:[#allocation24_spill] sm:$0xff] %v10137_v3 }
  0x94   :  { %8174 = vmatprep.subr.bf16.mxu1 %v8173_v2  ;;  %v13315_v54 = vand.u32 4294901760, %v10119_v49 }
  0x95   :  { %8236 = vmatpush3.bf16.msra.mxu0 %v9843_v58 }
  0x96   :  { %8238 = vmatprep.subr.bf16.mxu0 %v9859_v6 }
  0x97   :  { %8176 = vmatpush3.bf16.msra.mxu1 %v8173_v2  ;;  %v10128_v2 = vld [vmem:[#allocation7 + $0x120] sm:$0xff] }
  0x98   :  { %8178 = vmatprep.subr.bf16.mxu1 %v8177_v8 }
  0x99   :  { %8240 = vmatpush3.bf16.msra.mxu0 %v9859_v6 }
  0x9a   :  { %8242 = vmatprep.subr.bf16.mxu0 %v9886_v25 }
  0x9b   :  { %8180 = vmatpush3.bf16.msra.mxu1 %v8177_v8  ;;  %v13319_v8 = vand.u32 4294901760, %v10128_v2 }
  0x9d   :  { %8244 = vmatpush3.bf16.msra.mxu0 %v9886_v25 }
  0x9e   :  { %8246 = vmatprep.subr.bf16.mxu0 %v8245_v11  ;;  %7555 = vmatmul.mubr.f32.vlgmr.msra.gmra.mrb[0].mxu1 %v9845_v59 }
  0xa0   :  { %7625 = vmatmul.mubr.f32.vlgmr.msra.gmra.mrb[0].mxu0 %v206_v13  ;;  %v10053_v13 = vld [vmem:[#allocation7 + $0x190] sm:$0xff] }
  0xa1   :  { %8248 = vmatpush3.bf16.msra.mxu0 %v8245_v11  ;;  %7659 = vmatprep.mubr.f32.mxu0 %v9816_v39  ;;  %v13327_v44 = vand.u32 4294901760, %v10053_v13  ;;  %v13318_v11 = vand.u32 4294901760, %v10130_v62 }
  0xa2   :  { %8250 = vmatprep.subr.bf16.mxu0 %v8249_v12 }
  0xa3   :  { %v10093_v30 = vpack.c.bf16 %v13326_v63, %v13327_v44  ;;  %v10205_v44 = vld [vmem:[#allocation7 + $0xc0] sm:$0xff] }
  0xa5   :  { %8252 = vmatpush3.bf16.msra.mxu0 %v8249_v12  ;;  %13972 = vst [vmem:[#allocation21_spill] sm:$0xff] %v10093_v30  ;;  %v10145_v12 = vpack.c.bf16 %v13316_v53, %v13317_v45 }
  0xa6   :  { %8254 = vmatprep.subr.bf16.mxu0 %v8253_v15 }
  0xa7   :  { %13976 = vst [vmem:[#allocation25_spill] sm:$0xff] %v10145_v12 }
  0xa9   :  { %8256 = vmatpush3.bf16.msra.mxu0 %v8253_v15  ;;  %v10151_v15 = vpack.c.bf16 %v13314_v55, %v13315_v54  ;;  %v10170_v55 = vld [vmem:[#allocation7 + $0x30] sm:$0xff]  ;;  %v10172_v54 = vld [vmem:[#allocation7 + $0x38] sm:$0xff] }
  0xaa   :  { %8258 = vmatprep.subr.bf16.mxu0 %v8257_v16 }
  0xab   :  { %13977 = vst [vmem:[#allocation26_spill] sm:$0xff] %v10151_v15 }
  0xad   :  { %8260 = vmatpush3.bf16.msra.mxu0 %v8257_v16  ;;  %v10153_v16 = vld [vmem:[#allocation7 + $0xb0] sm:$0xff] }
  0xae   :  { %8262 = vmatprep.subr.bf16.mxu0 %v8261_v17 }
  0xb1   :  { %8264 = vmatpush3.bf16.msra.mxu0 %v8261_v17  ;;  %v10155_v17 = vld [vmem:[#allocation7 + $0xb8] sm:$0xff] }
  0xb2   :  { %8266 = vmatprep.subr.bf16.mxu0 %v8265_v19 }
  0xb5   :  { %8268 = vmatpush3.bf16.msra.mxu0 %v8265_v19  ;;  %v10157_v19 = vld [vmem:[#allocation7 + $0x1b0] sm:$0xff] }
  0xb6   :  { %8270 = vmatprep.subr.bf16.mxu0 %v8269_v20  ;;  %v13331_v53 = vand.u32 4294901760, %v10157_v19 }
  0xb9   :  { %8272 = vmatpush3.bf16.msra.mxu0 %v8269_v20  ;;  %v10164_v20 = vpack.c.bf16 %v13318_v11, %v13319_v8  ;;  %v13334_v11 = vand.u32 4294901760, %v10170_v55  ;;  %v13333_v8 = vand.u32 4294901760, %v10172_v54 }
  0xba   :  { %8274 = vmatprep.subr.bf16.mxu0 %v8273_v22 }
  0xbb   :  { %13978 = vst [vmem:[#allocation27_spill] sm:$0xff] %v10164_v20  ;;  %v10203_v63 = vpack.c.bf16 %v13333_v8, %v13334_v11  ;;  %v10220_v8 = vld [vmem:[#allocation7 + $0x1c8] sm:$0xff] }
  0xbd   :  { %8276 = vmatpush3.bf16.msra.mxu0 %v8273_v22  ;;  %v13329_v22 = vand.u32 4294901760, %v10153_v16  ;;  %13981 = vst [vmem:[#allocation30_spill] sm:$0xff] %v10203_v63 }
  0xbe   :  { %8278 = vmatprep.subr.bf16.mxu0 %v9781_v14 }
  0xc0   :  { %7660 = vmatmul.mubr.f32.vlgmr.msra.gmra.mrb[0].mxu0 %v9845_v59 }
  0xc1   :  { %8280 = vmatpush3.bf16.msra.mxu0 %v9781_v14  ;;  %7694 = vmatprep.mubr.f32.mxu0 %v9816_v39  ;;  %v10007_v14 = vld [vmem:[#allocation7 + $0x80] sm:$0xff] }
  0xc2   :  { %8282 = vmatprep.subr.bf16.mxu0 %v9789_v18  ;;  %v13343_v31 = vand.u32 4294901760, %v10007_v14 }
  0xc5   :  { %8284 = vmatpush3.bf16.msra.mxu0 %v9789_v18  ;;  %v10009_v18 = vld [vmem:[#allocation7 + $0x88] sm:$0xff] }
  0xc6   :  { %8286 = vmatprep.subr.bf16.mxu0 %v9803_v28  ;;  %v13342_v32 = vand.u32 4294901760, %v10009_v18 }
  0xc8   :  { %v10033_v60 = vpack.c.bf16 %v13342_v32, %v13343_v31  ;;  %v13364_v31 = vand.u32 4294901760, %v10232_v52 }
  0xc9   :  { %8288 = vmatpush3.bf16.msra.mxu0 %v9803_v28  ;;  %v10011_v28 = vld [vmem:[#allocation7 + $0x180] sm:$0xff] }
  0xca   :  { %8290 = vmatprep.subr.bf16.mxu0 %v9813_v37  ;;  %v13313_v39 = vand.u32 4294901760, %v10011_v28  ;;  %13967 = vst [vmem:[#allocation16_spill] sm:$0xff] %v10033_v60  ;;  %8310 = vmatprep.subr.bf16.mxu1 %v10033_v60  ;;  %v13995_v60 = vand.u32 4294901760, %v10020_v42 }
  0xcb   :  { %8312 = vmatpush3.bf16.msra.mxu1 %v10047_v5 }
  0xcd   :  { %8292 = vmatpush3.bf16.msra.mxu0 %v9813_v37  ;;  %v10015_v37 = vld [vmem:[#allocation7 + $0x188] sm:$0xff] }
  0xce   :  { %8294 = vmatprep.subr.bf16.mxu0 %v9828_v47 }
  0xd1   :  { %8296 = vmatpush3.bf16.msra.mxu0 %v9828_v47  ;;  %v13312_v47 = vand.u32 4294901760, %v10015_v37 }
  0xd2   :  { %8298 = vmatprep.subr.bf16.mxu0 %v9843_v58 }
  0xd3   :  { %v10041_v4 = vpack.c.bf16 %v13312_v47, %v13313_v39  ;;  %v13328_v47 = vand.u32 4294901760, %v10155_v17  ;;  %v10168_v39 = vld [vmem:[#allocation7 + $0x1b8] sm:$0xff] }
  0xd4   :  { %v13330_v45 = vand.u32 4294901760, %v10168_v39 }
  0xd5   :  { %8300 = vmatpush3.bf16.msra.mxu0 %v9843_v58  ;;  %v10025_v58 = vld [vmem:[#allocation7 + $0x100] sm:$0xff]  ;;  %13968 = vst [vmem:[#allocation17_spill] sm:$0xff] %v10041_v4  ;;  %v10189_v27 = vpack.c.bf16 %v13328_v47, %v13329_v22  ;;  %v10207_v47 = vld [vmem:[#allocation7 + $0xc8] sm:$0xff] }
  0xd6   :  { %8302 = vmatprep.subr.bf16.mxu0 %v9859_v6  ;;  %v13337_v61 = vand.u32 4294901760, %v10025_v58  ;;  %v10197_v0 = vpack.c.bf16 %v13330_v45, %v13331_v53  ;;  %v10209_v22 = vld [vmem:[#allocation7 + $0x1c0] sm:$0xff]  ;;  %v10216_v45 = vpack.c.bf16 %v13338_v9, %v13339_v26  ;;  %v13353_v53 = vand.u32 4294901760, %v10205_v44 }
  0xd7   :  { %13979 = vst [vmem:[#allocation28_spill] sm:$0xff] %v10189_v27  ;;  %v13354_v11 = vand.u32 4294901760, %v10209_v22  ;;  %v13984_v26 = vand.u32 4294901760, %v10220_v8 }
  0xd8   :  { %13980 = vst [vmem:[#allocation29_spill] sm:$0xff] %v10197_v0  ;;  %13982 = vst [vmem:[#allocation31_spill] sm:$0xff] %v10216_v45 }
  0xd9   :  { %8304 = vmatpush3.bf16.msra.mxu0 %v9859_v6  ;;  %v10049_v6 = vld [vmem:[#allocation7 + $0x90] sm:$0xff]  ;;  %v10249_v9 = vpack.c.bf16 %v13984_v26, %v13354_v11 }
  0xda   :  { %8306 = vmatprep.subr.bf16.mxu0 %v9886_v25 }
  0xdb   :  { %13985 = vst [vmem:[#allocation33_spill] sm:$0xff] %v10249_v9 }
  0xdd   :  { %8308 = vmatpush3.bf16.msra.mxu0 %v9886_v25  ;;  %v13335_v25 = vand.u32 4294901760, %v10049_v6 }
  0xde   :  { %8502 = vmatprep.subr.bf16.mxu0 %v10041_v4  ;;  %v10281_v4 = vld [vmem:[#allocation7 + $0x150] sm:$0xff] }
  0xdf   :  { %v10085_v23 = vpack.c.bf16 %v13332_v29, %v13335_v25  ;;  %v13352_v29 = vand.u32 4294901760, %v10207_v47  ;;  %v10223_v25 = vld [vmem:[#allocation7 + $0x40] sm:$0xff] }
  0xe0   :  { %7695 = vmatmul.mubr.f32.vlgmr.msra.gmra.mrb[0].mxu0 %v9845_v59  ;;  %v10027_v59 = vld [vmem:[#allocation7 + $0x108] sm:$0xff] }
  0xe1   :  { %v13336_v1 = vand.u32 4294901760, %v10027_v59  ;;  %13971 = vst [vmem:[#allocation20_spill] sm:$0xff] %v10085_v23  ;;  %8314 = vmatprep.subr.bf16.mxu1 %v10085_v23  ;;  %v10241_v32 = vpack.c.bf16 %v13352_v29, %v13353_v53  ;;  %v10259_v29 = vld [vmem:[#allocation7 + $0xd8] sm:$0xff]  ;;  %v10261_v53 = vld [vmem:[#allocation7 + $0x1d0] sm:$0xff]  ;;  %v13994_v23 = vand.u32 4294901760, %v10018_v41 }
  0xe2   :  { %8316 = vmatpush3.bf16.msra.mxu1 %v10099_v33 }
  0xe3   :  { %v10060_v24 = vpack.c.bf16 %v13336_v1, %v13337_v61  ;;  %8318 = vmatprep.subr.bf16.mxu1 %v10137_v3  ;;  %v10225_v1 = vld [vmem:[#allocation7 + $0x48] sm:$0xff]  ;;  %13983 = vst [vmem:[#allocation32_spill] sm:$0xff] %v10241_v32  ;;  %v13363_v61 = vand.u32 4294901760, %v10234_v48  ;;  %v10306_v5 = vsub.f32 %v10018_v41, %v13994_v23  ;;  %v14000_v41 = vand.u32 4294901760, %v10049_v6 }
  0xe5   :  { %13970 = vst [vmem:[#allocation19_spill] sm:$0xff] %v10060_v24  ;;  %8504 = vmatpush3.bf16.msra.mxu0 %v10060_v24  ;;  %v10268_v26 = vpack.c.bf16 %v13363_v61, %v13364_v31  ;;  %v1971_v24 = vand.u32 4294901760, %v10261_v53  ;;  %v10283_v61 = vld [vmem:[#allocation7 + $0x158] sm:$0xff]  ;;  %v10327_v23 = vsub.f32 %v10049_v6, %v14000_v41  ;;  %v14007_v41 = vand.u32 4294901760, %v10069_v57 }
  0xe6   :  { %8506 = vmatprep.subr.bf16.mxu0 %v10093_v30  ;;  %8320 = vmatpush3.bf16.msra.mxu1 %v10151_v15  ;;  %v10276_v30 = vld [vmem:[#allocation7 + $0x58] sm:$0xff]  ;;  %v13993_v15 = vand.u32 4294901760, %v10009_v18  ;;  %v1926_v33 = vand.u32 4294901760, %v10283_v61 }
  0xe7   :  { %8322 = vmatprep.subr.bf16.mxu1 %v10189_v27  ;;  %13989 = vst [vmem:[#allocation35_spill] sm:$0xff] %v10268_v26  ;;  %13990 = vst [vmem:[#allocation36_spill] sm:$0xff] %v10276_v30  ;;  %v1008_v27 = vand.u32 4294901760, %v10276_v30  ;;  %v10311_v30 = vsub.f32 %v10020_v42, %v13995_v60  ;;  %v14001_v42 = vand.u32 4294901760, %v10051_v7 }
  0xe8   :  { %v10299_v3 = vsub.f32 %v10009_v18, %v13993_v15  ;;  %v13998_v18 = vand.u32 4294901760, %v10027_v59 }
  0xe9   :  { %8508 = vmatpush3.bf16.msra.mxu0 %v10112_v35  ;;  %v1056_v35 = vand.u32 4294901760, %v10259_v29  ;;  %v10332_v60 = vsub.f32 %v10051_v7, %v14001_v42  ;;  %v10352_v7 = vsub.f32 %v10069_v57, %v14007_v41  ;;  %v14008_v42 = vand.u32 4294901760, %v10076_v10 }
  0xea   :  { %8510 = vmatprep.subr.bf16.mxu0 %v10145_v12  ;;  %8324 = vmatpush3.bf16.msra.mxu1 %v10203_v63  ;;  %v10257_v12 = vld [vmem:[#allocation7 + $0xd0] sm:$0xff]  ;;  %v10321_v15 = vsub.f32 %v10027_v59, %v13998_v18  ;;  %v14004_v59 = vand.u32 4294901760, %v10064_v38  ;;  %v14014_v41 = vand.u32 4294901760, %v10105_v34 }
  0xeb   :  { %8326 = vmatprep.subr.bf16.mxu1 %v10241_v32  ;;  %v1053_v11 = vand.u32 4294901760, %v10257_v12 }
  0xec   :  { %13999 = vst [vmem:[#allocation39_spill] sm:$0xff] %v10321_v15  ;;  %v10342_v18 = vsub.f32 %v10064_v38, %v14004_v59  ;;  %v14012_v59 = vand.u32 4294901760, %v10101_v46 }
  0xed   :  { %8512 = vmatpush3.bf16.msra.mxu0 %v10164_v20  ;;  %v10286_v31 = vpack.c.bf16 %v1056_v35, %v1053_v11 }
  0xee   :  { %8514 = vmatprep.subr.bf16.mxu0 %v10197_v0  ;;  %v13986_v0 = vand.u32 4294901760, %v10223_v25  ;;  %14005 = vst [vmem:[#allocation41_spill] sm:$0xff] %v10342_v18 }
  0xef   :  { %13991 = vst [vmem:[#allocation37_spill] sm:$0xff] %v10286_v31 }
  0xf1   :  { %8516 = vmatpush3.bf16.msra.mxu0 %v10216_v45  ;;  %v13987_v45 = vand.u32 4294901760, %v10225_v1 }
  0xf2   :  { %8518 = vmatprep.subr.bf16.mxu0 %v10249_v9  ;;  %v13992_v9 = vand.u32 4294901760, %v10007_v14 }
  0xf3   :  { %v10255_v20 = vpack.c.bf16 %v13987_v45, %v13986_v0  ;;  %v10272_v0 = vld [vmem:[#allocation7 + $0x1d8] sm:$0xff]  ;;  %v10274_v45 = vld [vmem:[#allocation7 + $0x50] sm:$0xff] }
  0xf4   :  { %v1974_v32 = vand.u32 4294901760, %v10272_v0  ;;  %v1005_v63 = vand.u32 4294901760, %v10274_v45 }
  0xf5   :  { %13988 = vst [vmem:[#allocation34_spill] sm:$0xff] %v10255_v20  ;;  %8328 = vmatpush3.bf16.msra.mxu1 %v10255_v20  ;;  %8520 = vmatpush3.bf16.msra.mxu0 %v10268_v26  ;;  %v10294_v20 = vsub.f32 %v10007_v14, %v13992_v9  ;;  %v1923_v26 = vand.u32 4294901760, %v10281_v4  ;;  %v13996_v14 = vand.u32 4294901760, %v10025_v58 }
  0xf6   :  { %8330 = vmatprep.subr.bf16.mxu1 %v10286_v31  ;;  %v14006_v31 = vand.u32 4294901760, %v10067_v56 }
  0xf7   :  { %v10316_v9 = vsub.f32 %v10025_v58, %v13996_v14  ;;  %v14002_v58 = vand.u32 4294901760, %v10053_v13 }
  0xf8   :  { %v10347_v6 = vsub.f32 %v10067_v56, %v14006_v31  ;;  %v10367_v31 = vsub.f32 %v10101_v46, %v14012_v59  ;;  %v14013_v56 = vand.u32 4294901760, %v10103_v50  ;;  %v14019_v59 = vand.u32 4294901760, %v10121_v51 }
  0xf9   :  { %13997 = vst [vmem:[#allocation38_spill] sm:$0xff] %v10316_v9  ;;  %v10337_v14 = vsub.f32 %v10053_v13, %v14002_v58  ;;  %v10357_v13 = vsub.f32 %v10076_v10, %v14008_v42  ;;  %v14010_v58 = vand.u32 4294901760, %v10078_v21  ;;  %v10377_v10 = vsub.f32 %v10105_v34, %v14014_v41 }
  0xfa   :  { %v10372_v57 = vsub.f32 %v10103_v50, %v14013_v56  ;;  %v14016_v42 = vand.u32 4294901760, %v10116_v43  ;;  %v10392_v50 = vsub.f32 %v10121_v51, %v14019_v59  ;;  %v14020_v56 = vand.u32 4294901760, %v10128_v2 }
  0xfb   :  { %14003 = vst [vmem:[#allocation40_spill] sm:$0xff] %v10337_v14  ;;  %14009 = vst [vmem:[#allocation42_spill] sm:$0xff] %v10357_v13  ;;  %v10362_v38 = vsub.f32 %v10078_v21, %v14010_v58  ;;  %v14018_v58 = vand.u32 4294901760, %v10119_v49  ;;  %v14022_v41 = vand.u32 4294901760, %v10130_v62  ;;  %v14026_v59 = vand.u32 4294901760, %v10157_v19 }
  0xfc   :  { %14015 = vst [vmem:[#allocation44_spill] sm:$0xff] %v10377_v10  ;;  %v10382_v21 = vsub.f32 %v10116_v43, %v14016_v42  ;;  %v10397_v34 = vsub.f32 %v10128_v2, %v14020_v56  ;;  %v14024_v42 = vand.u32 4294901760, %v10153_v16  ;;  %v14028_v56 = vand.u32 4294901760, %v10168_v39 }
  0xfd   :  { %14011 = vst [vmem:[#allocation43_spill] sm:$0xff] %v10362_v38  ;;  %v10387_v46 = vsub.f32 %v10119_v49, %v14018_v58  ;;  %v10402_v43 = vsub.f32 %v10130_v62, %v14022_v41  ;;  %v14025_v58 = vand.u32 4294901760, %v10155_v17  ;;  %v10417_v2 = vsub.f32 %v10157_v19, %v14026_v59 }
  0xfe   :  { %14017 = vst [vmem:[#allocation45_spill] sm:$0xff] %v10382_v21  ;;  %14021 = vst [vmem:[#allocation46_spill] sm:$0xff] %v10397_v34  ;;  %v10407_v49 = vsub.f32 %v10153_v16, %v14024_v42  ;;  %v10422_v62 = vsub.f32 %v10168_v39, %v14028_v56  ;;  %v14030_v41 = vand.u32 4294901760, %v10170_v55  ;;  %v14032_v42 = vand.u32 4294901760, %v10172_v54  ;;  %v905_v21 = vld [vmem:[#allocation7 + $0x78] sm:$0xff] }
  0xff   :  { %14023 = vst [vmem:[#allocation47_spill] sm:$0xff] %v10402_v43  ;;  %v10412_v51 = vsub.f32 %v10155_v17, %v14025_v58  ;;  %14027 = vst [vmem:[#allocation48_spill] sm:$0xff] %v10417_v2  ;;  %v14033_v58 = vand.u32 4294901760, %v10180_v40  ;;  %v14035_v59 = vand.u32 4294901760, %v10182_v36 }
 0x100   :  { %14029 = vst [vmem:[#allocation49_spill] sm:$0xff] %v10422_v62  ;;  %v10427_v16 = vsub.f32 %v10170_v55, %v14030_v41  ;;  %v10432_v17 = vsub.f32 %v10172_v54, %v14032_v42  ;;  %v14037_v55 = vand.u32 4294901760, %v10205_v44  ;;  %v14039_v54 = vand.u32 4294901760, %v10207_v47 }
 0x101   :  { %v10437_v19 = vsub.f32 %v10180_v40, %v14033_v58  ;;  %v10442_v39 = vsub.f32 %v10182_v36, %v14035_v59  ;;  %v14041_v40 = vand.u32 4294901760, %v10209_v22  ;;  %v14043_v36 = vand.u32 4294901760, %v10220_v8 }
 0x102   :  { %14031 = vst [vmem:[#allocation50_spill] sm:$0xff] %v10427_v16  ;;  %v10449_v41 = vsub.f32 %v10205_v44, %v14037_v55  ;;  %v10454_v42 = vsub.f32 %v10207_v47, %v14039_v54  ;;  %v14045_v44 = vand.u32 4294901760, %v10011_v28  ;;  %v14047_v47 = vand.u32 4294901760, %v10223_v25 }
 0x103   :  { %14034 = vst [vmem:[#allocation51_spill] sm:$0xff] %v10437_v19  ;;  %14036 = vst [vmem:[#allocation52_spill] sm:$0xff] %v10442_v39  ;;  %v10459_v58 = vsub.f32 %v10209_v22, %v14041_v40  ;;  %v10464_v59 = vsub.f32 %v10220_v8, %v14043_v36  ;;  %v14049_v22 = vand.u32 4294901760, %v10225_v1  ;;  %v14051_v8 = vand.u32 4294901760, %v10232_v52 }
 0x104   :  { %14038 = vst [vmem:[#allocation53_spill] sm:$0xff] %v10449_v41  ;;  %14040 = vst [vmem:[#allocation54_spill] sm:$0xff] %v10454_v42  ;;  %v10471_v55 = vsub.f32 %v10011_v28, %v14045_v44  ;;  %v10476_v54 = vsub.f32 %v10223_v25, %v14047_v47  ;;  %v14055_v44 = vand.u32 4294901760, %v10234_v48  ;;  %v10499_v47 = vsub.f32 %v10257_v12, %v1053_v11  ;;  %v934_v11 = vld [vmem:[#allocation7 + $0x160] sm:$0xff] }
 0x105   :  { %14042 = vst [vmem:[#allocation55_spill] sm:$0xff] %v10459_v58  ;;  %14044 = vst [vmem:[#allocation56_spill] sm:$0xff] %v10464_v59  ;;  %v10481_v40 = vsub.f32 %v10225_v1, %v14049_v22  ;;  %v10486_v36 = vsub.f32 %v10232_v52, %v14051_v8  ;;  %v918_v59 = vld [vmem:[#allocation7 + $0xe0] sm:$0xff]  ;;  %v14053_v58 = vand.u32 4294901760, %v10015_v37  ;;  %v10502_v1 = vsub.f32 %v10259_v29, %v1056_v35  ;;  %v919_v22 = vld [vmem:[#allocation7 + $0xe8] sm:$0xff] }
 0x106   :  { %14046 = vst [vmem:[#allocation57_spill] sm:$0xff] %v10471_v55  ;;  %14048 = vst [vmem:[#allocation58_spill] sm:$0xff] %v10476_v54  ;;  %v10496_v25 = vsub.f32 %v10234_v48, %v14055_v44  ;;  %v950_v52 = vld [vmem:[#allocation7 + $0x1e0] sm:$0xff]  ;;  %v951_v8 = vld [vmem:[#allocation7 + $0x1e8] sm:$0xff]  ;;  %v10507_v19 = vsub.f32 %v10261_v53, %v1971_v24  ;;  %v10515_v12 = vsub.f32 %v10274_v45, %v1005_v63  ;;  %v1062_v53 = vand.u32 4294901760, %v919_v22 }
 0x107   :  { %14050 = vst [vmem:[#allocation59_spill] sm:$0xff] %v10481_v40  ;;  %14052 = vst [vmem:[#allocation60_spill] sm:$0xff] %v10486_v36  ;;  %v10491_v28 = vsub.f32 %v10015_v37, %v14053_v58  ;;  %v10504_v36 = vpack.c.bf16 %v1974_v32, %v1971_v24  ;;  %v10510_v37 = vsub.f32 %v10272_v0, %v1974_v32  ;;  %v902_v48 = vld [vmem:[#allocation7 + $0x60] sm:$0xff]  ;;  %v903_v44 = vld [vmem:[#allocation7 + $0x68] sm:$0xff]  ;;  %v1059_v24 = vand.u32 4294901760, %v918_v59 }
 0x108   :  { %14056 = vst [vmem:[#allocation62_spill] sm:$0xff] %v10496_v25  ;;  %14057 = vst [vmem:[#allocation63_spill] sm:$0xff] %v10499_v47  ;;  %v10512_v58 = vpack.c.bf16 %v1008_v27, %v1005_v63  ;;  %v14064_v29 = vld [vmem:[#allocation36_spill] sm:$0xff]  ;;  %v10520_v25 = vpack.c.bf16 %v1926_v33, %v1923_v26  ;;  %v10523_v62 = vsub.f32 %v10281_v4, %v1923_v26  ;;  %v1977_v0 = vand.u32 4294901760, %v950_v52  ;;  %v935_v63 = vld [vmem:[#allocation7 + $0x168] sm:$0xff] }
 0x109   :  { %14054 = vst [vmem:[#allocation61_spill] sm:$0xff] %v10491_v28  ;;  %14058 = vst [vmem:[#allocation64_spill] sm:$0xff] %v10502_v1  ;;  %v10518_v35 = vsub.f32 %v14064_v29, %v1008_v27  ;;  %8522 = vmatprep.subr.bf16.mxu0 %v10504_v36  ;;  %v10528_v32 = vsub.f32 %v10283_v61, %v1926_v33  ;;  %v1980_v27 = vand.u32 4294901760, %v951_v8  ;;  %v1011_v45 = vand.u32 4294901760, %v902_v48  ;;  %v921_v4 = vld [vmem:[#allocation7 + $0xf8] sm:$0xff]  ;;  %v952_v33 = vld [vmem:[#allocation7 + $0x1f0] sm:$0xff] }
 0x10a   :  { %14059 = vst [vmem:[#allocation65_spill] sm:$0xff] %v10504_v36  ;;  %14060 = vst [vmem:[#allocation66_spill] sm:$0xff] %v10507_v19  ;;  %8332 = vmatpush3.bf16.msra.mxu1 %v10512_v58  ;;  %8524 = vmatpush3.bf16.msra.mxu0 %v10520_v25  ;;  %v1014_v29 = vand.u32 4294901760, %v903_v44  ;;  %v920_v19 = vld [vmem:[#allocation7 + $0xf0] sm:$0xff]  ;;  %v10531_v26 = vpack.c.bf16 %v1062_v53, %v1059_v24  ;;  %v10533_v36 = vsub.f32 %v918_v59, %v1059_v24 }
 0x10b   :  { %14061 = vst [vmem:[#allocation67_spill] sm:$0xff] %v10510_v37  ;;  %14062 = vst [vmem:[#allocation68_spill] sm:$0xff] %v10512_v58  ;;  %v1929_v37 = vand.u32 4294901760, %v934_v11  ;;  %v10535_v58 = vsub.f32 %v919_v22, %v1062_v53  ;;  %v10537_v61 = vsub.f32 %v950_v52, %v1977_v0  ;;  %v10539_v2 = vpack.c.bf16 %v1980_v27, %v1977_v0 }
 0x10c   :  { %14063 = vst [vmem:[#allocation69_spill] sm:$0xff] %v10515_v12  ;;  %14065 = vst [vmem:[#allocation36_spill] sm:$0xff] %v10518_v35  ;;  %v10543_v43 = vpack.c.bf16 %v1014_v29, %v1011_v45  ;;  %v10545_v34 = vsub.f32 %v902_v48, %v1011_v45  ;;  %8334 = vmatprep.subr.bf16.mxu1 %v10531_v26  ;;  %v10548_v59 = vsub.f32 %v903_v44, %v1014_v29  ;;  %v936_v29 = vld [vmem:[#allocation7 + $0x170] sm:$0xff] }
 0x10d   :  { %14066 = vst [vmem:[#allocation70_spill] sm:$0xff] %v10520_v25  ;;  %14067 = vst [vmem:[#allocation71_spill] sm:$0xff] %v10523_v62  ;;  %v904_v62 = vld [vmem:[#allocation7 + $0x70] sm:$0xff]  ;;  %v10541_v25 = vsub.f32 %v951_v8, %v1980_v27  ;;  %v1932_v22 = vand.u32 4294901760, %v935_v63  ;;  %v10550_v24 = vsub.f32 %v934_v11, %v1929_v37  ;;  %v1065_v52 = vand.u32 4294901760, %v920_v19  ;;  %8526 = vmatprep.subr.bf16.mxu0 %v10539_v2 }
 0x10e   :  { %14068 = vst [vmem:[#allocation72_spill] sm:$0xff] %v10528_v32  ;;  %14069 = vst [vmem:[#allocation73_spill] sm:$0xff] %v10531_v26  ;;  %v953_v32 = vld [vmem:[#allocation7 + $0x1f8] sm:$0xff]  ;;  %8336 = vmatpush3.bf16.msra.mxu1 %v10543_v43  ;;  %v1068_v53 = vand.u32 4294901760, %v921_v4  ;;  %v1983_v8 = vand.u32 4294901760, %v952_v33  ;;  %v1017_v27 = vand.u32 4294901760, %v904_v62 }
 0x10f   :  { %14070 = vst [vmem:[#allocation74_spill] sm:$0xff] %v10533_v36  ;;  %14071 = vst [vmem:[#allocation75_spill] sm:$0xff] %v10535_v58  ;;  %v1986_v0 = vand.u32 4294901760, %v953_v32  ;;  %v10556_v48 = vsub.f32 %v935_v63, %v1932_v22  ;;  %v10558_v45 = vsub.f32 %v920_v19, %v1065_v52  ;;  %v1020_v44 = vand.u32 4294901760, %v905_v21  ;;  %v937_v26 = vld [vmem:[#allocation7 + $0x178] sm:$0xff] }
 0x110   :  { %14072 = vst [vmem:[#allocation76_spill] sm:$0xff] %v10537_v61  ;;  %14073 = vst [vmem:[#allocation77_spill] sm:$0xff] %v10539_v2  ;;  %v10560_v11 = vpack.c.bf16 %v1068_v53, %v1065_v52  ;;  %v10573_v63 = vsub.f32 %v904_v62, %v1017_v27  ;;  %v13424_v52 = vand.u32 4294901760, %v10294_v20  ;;  %v13426_v62 = vand.u32 4294901760, %v10306_v5 }
 0x111   :  { %14074 = vst [vmem:[#allocation78_spill] sm:$0xff] %v10541_v25  ;;  %14075 = vst [vmem:[#allocation79_spill] sm:$0xff] %v10543_v43  ;;  %v10554_v25 = vpack.c.bf16 %v1932_v22, %v1929_v37  ;;  %v10564_v2 = vpack.c.bf16 %v1986_v0, %v1983_v8  ;;  %v10566_v43 = vsub.f32 %v952_v33, %v1983_v8  ;;  %v1938_v22 = vand.u32 4294901760, %v937_v26 }
 0x112   :  { %14076 = vst [vmem:[#allocation80_spill] sm:$0xff] %v10545_v34  ;;  %14077 = vst [vmem:[#allocation81_spill] sm:$0xff] %v10548_v59  ;;  %v10569_v61 = vsub.f32 %v953_v32, %v1986_v0  ;;  %v10571_v37 = vpack.c.bf16 %v1020_v44, %v1017_v27  ;;  %v10575_v19 = vsub.f32 %v905_v21, %v1020_v44  ;;  %8338 = vmatprep.subr.bf16.mxu1 %v10560_v11 }
 0x113   :  { %14078 = vst [vmem:[#allocation82_spill] sm:$0xff] %v10550_v24  ;;  %14079 = vst [vmem:[#allocation83_spill] sm:$0xff] %v10554_v25  ;;  %v10562_v24 = vsub.f32 %v921_v4, %v1068_v53  ;;  %8528 = vmatpush3.bf16.msra.mxu0 %v10554_v25  ;;  %v1935_v4 = vand.u32 4294901760, %v936_v29  ;;  %v13425_v33 = vand.u32 4294901760, %v10299_v3  ;;  %v8565_v32 = vpack.c.bf16 %v10491_v28, %v10471_v55 }
 0x114   :  { %14080 = vst [vmem:[#allocation84_spill] sm:$0xff] %v10556_v48  ;;  %14081 = vst [vmem:[#allocation85_spill] sm:$0xff] %v10558_v45  ;;  %8530 = vmatprep.subr.bf16.mxu0 %v10564_v2  ;;  %8340 = vmatpush3.bf16.msra.mxu1 %v10571_v37  ;;  %v10589_v8 = vsub.f32 %v937_v26, %v1938_v22  ;;  %v1217_v0 = vsub.f32 %v10294_v20, %v13424_v52  ;;  %v13436_v26 = vand.u32 4294901760, %v10327_v23 }
 0x115   :  { %14082 = vst [vmem:[#allocation86_spill] sm:$0xff] %v10560_v11  ;;  %14083 = vst [vmem:[#allocation87_spill] sm:$0xff] %v10562_v24  ;;  %v10585_v53 = vpack.c.bf16 %v1938_v22, %v1935_v4  ;;  %v10587_v21 = vsub.f32 %v936_v29, %v1935_v4  ;;  %v1224_v27 = vsub.f32 %v10299_v3, %v13425_v33  ;;  %v13437_v4 = vand.u32 4294901760, %v10332_v60 }
 0x116   :  { %14084 = vst [vmem:[#allocation88_spill] sm:$0xff] %v10564_v2  ;;  %14085 = vst [vmem:[#allocation89_spill] sm:$0xff] %v10566_v43  ;;  %v1105_v44 = vsub.f32 %v10306_v5, %v13426_v62  ;;  %v13435_v2 = vand.u32 4294901760, %v10311_v30  ;;  %v1218_v29 = vand.u32 4294901760, %v1217_v0  ;;  %v1231_v62 = vsub.f32 %v10327_v23, %v13436_v26 }
 0x117   :  { %14086 = vst [vmem:[#allocation90_spill] sm:$0xff] %v10569_v61  ;;  %14087 = vst [vmem:[#allocation91_spill] sm:$0xff] %v10571_v37  ;;  %8532 = vmatpush3.bf16.msra.mxu0 %v10585_v53  ;;  %v1225_v22 = vand.u32 4294901760, %v1224_v27  ;;  %v13439_v0 = vand.u32 4294901760, %v10347_v6  ;;  %v13440_v25 = vand.u32 4294901760, %v10352_v7  ;;  %v13455_v61 = vand.u32 4294901760, %v10454_v42 }
 0x118   :  { %14088 = vst [vmem:[#allocation92_spill] sm:$0xff] %v10573_v63  ;;  %14089 = vst [vmem:[#allocation93_spill] sm:$0xff] %v10575_v19  ;;  %8566 = vmatprep.subr.bf16.mxu0 %v8565_v32  ;;  %v1106_v52 = vand.u32 4294901760, %v1105_v44  ;;  %v1112_v33 = vsub.f32 %v10311_v30, %v13435_v2  ;;  %v13443_v32 = vand.u32 4294901760, %v10367_v31  ;;  %v1232_v44 = vand.u32 4294901760, %v1231_v62 }
 0x119   :  { %14090 = vst [vmem:[#allocation94_spill] sm:$0xff] %v10585_v53  ;;  %14091 = vst [vmem:[#allocation95_spill] sm:$0xff] %v10587_v21  ;;  %v1238_v53 = vsub.f32 %v10332_v60, %v13437_v4  ;;  %v8341_v37 = vpack.c.bf16 %v1225_v22, %v1218_v29  ;;  %v1119_v2 = vsub.f32 %v10347_v6, %v13439_v0 }
 0x11a   :  { %14092 = vst [vmem:[#allocation96_spill] sm:$0xff] %v10589_v8  ;;  %v1113_v27 = vand.u32 4294901760, %v1112_v33  ;;  %v1126_v26 = vsub.f32 %v10352_v7, %v13440_v25  ;;  %v1245_v29 = vsub.f32 %v10367_v31, %v13443_v32  ;;  %v13441_v33 = vand.u32 4294901760, %v10372_v57 }
 0x11b   :  { %v1239_v11 = vand.u32 4294901760, %v1238_v53  ;;  %8342 = vmatprep.subr.bf16.mxu1 %v8341_v37  ;;  %v1120_v62 = vand.u32 4294901760, %v1119_v2  ;;  %v13442_v8 = vand.u32 4294901760, %v10387_v46  ;;  %v13444_v37 = vand.u32 4294901760, %v10392_v50 }
 0x11c   :  { %v10622_v4 = vpack.c.bf16 %v1113_v27, %v1106_v52  ;;  %v1127_v53 = vand.u32 4294901760, %v1126_v26  ;;  %v1246_v0 = vand.u32 4294901760, %v1245_v29  ;;  %v1252_v25 = vsub.f32 %v10372_v57, %v13441_v33 }
 0x11d   :  { %v10628_v22 = vpack.c.bf16 %v1239_v11, %v1232_v44  ;;  %v1133_v27 = vsub.f32 %v10387_v46, %v13442_v8  ;;  %v13448_v11 = vand.u32 4294901760, %v10407_v49  ;;  %v13451_v2 = vand.u32 4294901760, %v10412_v51 }
 0x11e   :  { %v10635_v52 = vpack.c.bf16 %v1127_v53, %v1120_v62  ;;  %v1253_v26 = vand.u32 4294901760, %v1252_v25  ;;  %v1140_v44 = vsub.f32 %v10392_v50, %v13444_v37  ;;  %v13456_v29 = vand.u32 4294901760, %v10427_v16 }
 0x11f   :  { %v1134_v33 = vand.u32 4294901760, %v1133_v27  ;;  %v1259_v62 = vsub.f32 %v10407_v49, %v13448_v11  ;;  %v1266_v53 = vsub.f32 %v10412_v51, %v13451_v2  ;;  %v13453_v8 = vand.u32 4294901760, %v10432_v17 }
 0x120   :  { %v10653_v32 = vpack.c.bf16 %v1253_v26, %v1246_v0  ;;  %v1141_v25 = vand.u32 4294901760, %v1140_v44  ;;  %v1147_v37 = vsub.f32 %v10427_v16, %v13456_v29  ;;  %v13454_v11 = vand.u32 4294901760, %v10449_v41 }
 0x121   :  { %v1260_v21 = vand.u32 4294901760, %v1259_v62  ;;  %v1267_v28 = vand.u32 4294901760, %v1266_v53  ;;  %v1154_v27 = vsub.f32 %v10432_v17, %v13453_v8  ;;  %v13457_v62 = vand.u32 4294901760, %v10476_v54 }
 0x122   :  { %v10662_v55 = vpack.c.bf16 %v1141_v25, %v1134_v33  ;;  %v1148_v2 = vand.u32 4294901760, %v1147_v37  ;;  %v1273_v44 = vsub.f32 %v10449_v41, %v13454_v11  ;;  %v1280_v53 = vsub.f32 %v10454_v42, %v13455_v61 }
 0x123   :  { %v10665_v0 = vpack.c.bf16 %v1267_v28, %v1260_v21  ;;  %v1155_v26 = vand.u32 4294901760, %v1154_v27  ;;  %v13460_v8 = vand.u32 4294901760, %v10481_v40  ;;  %v13461_v33 = vand.u32 4294901760, %v10499_v47 }
 0x124   :  { %v1274_v25 = vand.u32 4294901760, %v1273_v44  ;;  %v1161_v28 = vsub.f32 %v10476_v54, %v13457_v62  ;;  %v13462_v21 = vand.u32 4294901760, %v10502_v1  ;;  %v1281_v27 = vand.u32 4294901760, %v1280_v53 }
 0x125   :  { %v10676_v37 = vpack.c.bf16 %v1155_v26, %v1148_v2  ;;  %v1168_v11 = vsub.f32 %v10481_v40, %v13460_v8  ;;  %v1287_v61 = vsub.f32 %v10499_v47, %v13461_v33  ;;  %v13464_v26 = vand.u32 4294901760, %v10515_v12 }
 0x126   :  { %v1162_v29 = vand.u32 4294901760, %v1161_v28  ;;  %v1294_v2 = vsub.f32 %v10502_v1, %v13462_v21  ;;  %v13463_v44 = vand.u32 4294901760, %v10518_v35  ;;  %v10693_v62 = vpack.c.bf16 %v1281_v27, %v1274_v25 }
 0x127   :  { %14093 = vst [vmem:[#allocation97_spill] sm:$0xff] %v10676_v37  ;;  %v1169_v53 = vand.u32 4294901760, %v1168_v11  ;;  %v1288_v43 = vand.u32 4294901760, %v1287_v61  ;;  %v1175_v8 = vsub.f32 %v10515_v12, %v13464_v26  ;;  %v13465_v33 = vand.u32 4294901760, %v10533_v36 }
 0x128   :  { %v1295_v48 = vand.u32 4294901760, %v1294_v2  ;;  %v1182_v28 = vsub.f32 %v10518_v35, %v13463_v44  ;;  %v13466_v37 = vand.u32 4294901760, %v10535_v58  ;;  %v13467_v25 = vand.u32 4294901760, %v10545_v34 }
 0x129   :  { %v10702_v21 = vpack.c.bf16 %v1169_v53, %v1162_v29  ;;  %v1176_v61 = vand.u32 4294901760, %v1175_v8  ;;  %v1301_v2 = vsub.f32 %v10533_v36, %v13465_v33  ;;  %v13468_v53 = vand.u32 4294901760, %v10548_v59 }
 0x12a   :  { %v10706_v27 = vpack.c.bf16 %v1295_v48, %v1288_v43  ;;  %v1183_v11 = vand.u32 4294901760, %v1182_v28  ;;  %v1308_v44 = vsub.f32 %v10535_v58, %v13466_v37  ;;  %v1189_v29 = vsub.f32 %v10545_v34, %v13467_v25 }
 0x12b   :  { %14094 = vst [vmem:[#allocation98_spill] sm:$0xff] %v10702_v21  ;;  %v1302_v43 = vand.u32 4294901760, %v1301_v2  ;;  %v13469_v48 = vand.u32 4294901760, %v10558_v45  ;;  %v13470_v8 = vand.u32 4294901760, %v10562_v24  ;;  %v1196_v33 = vsub.f32 %v10548_v59, %v13468_v53 }
 0x12c   :  { %14095 = vst [vmem:[#allocation99_spill] sm:$0xff] %v10706_v27  ;;  %v10718_v26 = vpack.c.bf16 %v1183_v11, %v1176_v61  ;;  %v1309_v28 = vand.u32 4294901760, %v1308_v44  ;;  %v1190_v27 = vand.u32 4294901760, %v1189_v29  ;;  %v13471_v11 = vand.u32 4294901760, %v10573_v63 }
 0x12d   :  { %v1315_v37 = vsub.f32 %v10558_v45, %v13469_v48  ;;  %v1322_v61 = vsub.f32 %v10562_v24, %v13470_v8  ;;  %v13472_v2 = vand.u32 4294901760, %v10575_v19  ;;  %v1197_v44 = vand.u32 4294901760, %v1196_v33 }
 0x12e   :  { %14096 = vst [vmem:[#allocation100_spill] sm:$0xff] %v10718_v26  ;;  %v10733_v25 = vpack.c.bf16 %v1309_v28, %v1302_v43  ;;  %v1203_v48 = vsub.f32 %v10573_v63, %v13471_v11  ;;  %v109_v29 = vlaneseq }
 0x12f   :  { %v1316_v26 = vand.u32 4294901760, %v1315_v37  ;;  %v1323_v53 = vand.u32 4294901760, %v1322_v61  ;;  %v1210_v8 = vsub.f32 %v10575_v19, %v13472_v2  ;;  %v10743_v21 = vpack.c.bf16 %v1197_v44, %v1190_v27  ;;  %v89_v44 = vld [vmem:[#allocation10] sm:$0xff] }
 0x130   :  { %14097 = vst [vmem:[#allocation101_spill] sm:$0xff] %v10733_v25  ;;  %v1204_v33 = vand.u32 4294901760, %v1203_v48  ;;  %v10759_v2 = vshrl.u32 %v109_v29, 7 }
 0x131   :  { %v10747_v28 = vpack.c.bf16 %v1323_v53, %v1316_v26  ;;  %v1211_v25 = vand.u32 4294901760, %v1210_v8 }
 0x132   :  { %14098 = vst [vmem:[#allocation102_spill] sm:$0xff] %v10759_v2  ;;  %v13473_v8 = vsub.s32 0, %v10759_v2  ;;  %v827_v63 = vsub.s32 1, %v10759_v2 }
 0x133   :  { %v10751_v61 = vpack.c.bf16 %v1211_v25, %v1204_v33 }
 0x134   :  { %v112_v26 = vrot.slane %v89_v44, %v13473_v8 }
 0x171   :  { %v10444_v56 = vpop.f32.mrb[0].mxu1 }
 0x172   :  { %v10466_v39 = vpop.f32.mrb[1].mxu1  ;;  %v9461_v48 = vadd.f32 %v10444_v56, %v112_v26 }
 0x173   :  { %v9463_v33 = vadd.f32 %v10466_v39, %v112_v26 }
 0x1b3   :  { %v7696_v11 = vpop.f32.mrb[0].mxu0 }
 0x1b4   :  { %v9462_v37 = vadd.f32 %v9461_v48, %v7696_v11  ;;  %v787_v43 = vpop.f32.mrb[1].mxu0 }
 0x1b5   :  { %v9464_v8 = vadd.f32 %v9463_v33, %v787_v43 }
 0x1b6   :  { %v805_v12 = vmul.f32 %v9462_v37, %v9462_v37 }
 0x1b7   :  { %v797_v35 = vadd.f32 %v9464_v8, %v9462_v37  ;;  %v804_v53 = vmul.f32 %v9464_v8, %v9464_v8 }
 0x1b9   :  { %v798_v36 = vrot.slane %v797_v35, 4  ;;  %v806_v58 = vadd.f32 %v805_v12, %v804_v53 }
 0x1bb   :  { %v799_v25 = vadd.f32 %v798_v36, %v797_v35  ;;  %v807_v34 = vrot.slane %v806_v58, 4 }
 0x1bd   :  { %v800_v56 = vrot.slane %v799_v25, 2  ;;  %v808_v59 = vadd.f32 %v807_v34, %v806_v58 }
 0x1bf   :  { %v801_v47 = vadd.f32 %v800_v56, %v799_v25  ;;  %v809_v27 = vrot.slane %v808_v59, 2 }
 0x1c1   :  { %v802_v45 = vrot.slane %v801_v47, 1  ;;  %v810_v39 = vadd.f32 %v809_v27, %v808_v59  ;;  %v833_v59 = vsub.s32 2, %v10759_v2 }
 0x1c3   :  { %v803_v26 = vadd.f32 %v802_v45, %v801_v47  ;;  %v811_v24 = vrot.slane %v810_v39, 1 }
 0x1c5   :  { %v812_v1 = vadd.f32 %v811_v24, %v810_v39  ;;  %v813_v29 = vmul.f32 0.0625, %v803_v26 }
 0x1c7   :  { %v814_v11 = vmul.f32 0.0625, %v812_v1  ;;  %v815_v48 = vmul.f32 %v813_v29, %v813_v29 }
 0x1c9   :  { %v816_v43 = vsub.f32 %v814_v11, %v815_v48 }
 0x1cb   :  { %v817_v33 = vadd.f32 1e-05, %v816_v43 }
 0x1cd   :  { %9505 = vrsqrt.f32 %v817_v33 }
 0x1d7   :  { %v9506_v12 = vpop.eup %9505 }
 0x1d8   :  { %v819_v36 = vmul.f32 %v9506_v12, %v89_v44 }
 0x1da   :  { %v820_v35 = vmul.f32 %v819_v36, %v813_v29  ;;  %v828_v53 = vrot.slane %v819_v36, %v827_v63 }
 0x1dc   :  { %v822_v34 = vrot.slane %v820_v35, 7  ;;  %v829_v58 = vmul.f32 %v9464_v8, %v828_v53  ;;  %v830_v25 = vmul.f32 %v9462_v37, %v828_v53 }
 0x1de   :  { %v824_v47 = vsub.f32 %v89_v44, %v822_v34 }
 0x1e0   :  { %v834_v45 = vrot.slane %v824_v47, %v833_v59 }
 0x1e2   :  { %v10788_v24 = vadd.f32 %v834_v45, %v829_v58  ;;  %v10790_v1 = vadd.f32 %v834_v45, %v830_v25 }
 0x1e4   :  { %14099 = vst [vmem:[#allocation103_spill] sm:$0xff] %v10788_v24  ;;  %14100 = vst [vmem:[#allocation104_spill] sm:$0xff] %v10790_v1  ;;  %v13497_v27 = vmax.f32 %v10788_v24, 0.0  ;;  %v13496_v56 = vmax.f32 %v10790_v1, 0.0 }
 0x1e6   :  { %v841_v29 = vrot.slane %v13497_v27, 6  ;;  %v842_v63 = vrot.slane %v13496_v56, 6 }
 0x1e8   :  { %v10801_v44 = vsel %vm845_vm0, 0.0, %v841_v29  ;;  %v10804_v8 = vsel %vm845_vm0, 0.0, %v842_v63  ;;  %v10807_v39 = vsel %vm845_vm0, %v841_v29, 0.0  ;;  %v10810_v26 = vsel %vm845_vm0, %v842_v63, 0.0 }
 0x1e9   :  { %v865_v11 = vrot.slane %v10807_v39, 2  ;;  %v855_v43 = vrot.slane %v10801_v44, 1  ;;  %v856_v33 = vrot.slane %v10807_v39, 1  ;;  %v873_v12 = vrot.slane %v10801_v44, 3 }
 0x1ea   :  { %v874_v36 = vrot.slane %v10807_v39, 3  ;;  %v10819_v35 = vand.u32 4294901760, %v10801_v44  ;;  %v864_v53 = vrot.slane %v10801_v44, 2  ;;  %v858_v58 = vrot.slane %v10804_v8, 1 }
 0x1eb   :  { %v857_v34 = vsel %vm854_vm1, %v855_v43, %v856_v33  ;;  %v859_v25 = vrot.slane %v10810_v26, 1  ;;  %v876_v59 = vrot.slane %v10804_v8, 3  ;;  %v877_v33 = vrot.slane %v10810_v26, 3 }
 0x1ec   :  { %14101 = vst [vmem:[#allocation105_spill] sm:$0xff] %v10819_v35  ;;  %v10826_v47 = vand.u32 4294901760, %v857_v34  ;;  %v875_v45 = vsel %vm872_vm2, %v873_v12, %v874_v36  ;;  %v10831_v29 = vsub.f32 %v10801_v44, %v10819_v35  ;;  %v866_v63 = vsel %vm863_vm3, %v864_v53, %v865_v11 }
 0x1ed   :  { %v10834_v56 = vand.u32 4294901760, %v875_v45  ;;  %v10836_v27 = vand.u32 4294901760, %v866_v63  ;;  %v860_v43 = vsel %vm854_vm1, %v858_v58, %v859_v25  ;;  %v10847_v37 = vand.u32 4294901760, %v10804_v8 }
 0x1ee   :  { %14102 = vst [vmem:[#allocation106_spill] sm:$0xff] %v10826_v47  ;;  %14103 = vst [vmem:[#allocation107_spill] sm:$0xff] %v10831_v29  ;;  %v10841_v48 = vsub.f32 %v857_v34, %v10826_v47  ;;  %v13504_v12 = vand.u32 4294901760, %v10831_v29  ;;  %v10844_v36 = vand.u32 4294901760, %v860_v43  ;;  %v878_v58 = vsel %vm872_vm2, %v876_v59, %v877_v33 }
 0x1ef   :  { %14104 = vst [vmem:[#allocation108_spill] sm:$0xff] %v10834_v56  ;;  %14105 = vst [vmem:[#allocation109_spill] sm:$0xff] %v10836_v27  ;;  %v10850_v11 = vsub.f32 %v875_v45, %v10834_v56  ;;  %v10853_v53 = vsub.f32 %v866_v63, %v10836_v27  ;;  %v867_v25 = vrot.slane %v10804_v8, 2  ;;  %v10864_v2 = vand.u32 4294901760, %v878_v58 }
 0x1f0   :  { %14106 = vst [vmem:[#allocation110_spill] sm:$0xff] %v10844_v36  ;;  %14107 = vst [vmem:[#allocation111_spill] sm:$0xff] %v10847_v37  ;;  %v13517_v34 = vand.u32 4294901760, %v10841_v48  ;;  %v1079_v1 = vsub.f32 %v10831_v29, %v13504_v12  ;;  %v10862_v24 = vsub.f32 %v860_v43, %v10844_v36  ;;  %v10870_v59 = vsub.f32 %v10804_v8, %v10847_v37 }
 0x1f1   :  { %14108 = vst [vmem:[#allocation112_spill] sm:$0xff] %v10850_v11  ;;  %14109 = vst [vmem:[#allocation113_spill] sm:$0xff] %v10853_v53  ;;  %v13522_v45 = vand.u32 4294901760, %v10850_v11  ;;  %v868_v33 = vrot.slane %v10810_v26, 2  ;;  %v10878_v29 = vsub.f32 %v878_v58, %v10864_v2  ;;  %v14114_v19 = vand.u32 4294901760, %v10853_v53 }
 0x1f2   :  { %14110 = vst [vmem:[#allocation114_spill] sm:$0xff] %v10862_v24  ;;  %14111 = vst [vmem:[#allocation115_spill] sm:$0xff] %v10864_v2  ;;  %v1073_v27 = vsub.f32 %v10841_v48, %v13517_v34  ;;  %v1080_v12 = vand.u32 4294901760, %v1079_v1  ;;  %v13526_v43 = vand.u32 4294901760, %v10862_v24  ;;  %v13523_v40 = vand.u32 4294901760, %v10870_v59 }
 0x1f3   :  { %14112 = vst [vmem:[#allocation116_spill] sm:$0xff] %v10870_v59  ;;  %14113 = vst [vmem:[#allocation117_spill] sm:$0xff] %v10878_v29  ;;  %v1991_v63 = vsub.f32 %v10850_v11, %v13522_v45  ;;  %v1997_v54 = vsub.f32 %v10853_v53, %v14114_v19  ;;  %v869_v41 = vsel %vm863_vm3, %v867_v25, %v868_v33  ;;  %v13524_v58 = vand.u32 4294901760, %v10878_v29 }
 0x1f4   :  { %v1074_v42 = vand.u32 4294901760, %v1073_v27  ;;  %v1088_v1 = vsub.f32 %v10862_v24, %v13526_v43  ;;  %v10892_v34 = vand.u32 4294901760, %v869_v41  ;;  %v1094_v45 = vsub.f32 %v10870_v59, %v13523_v40 }
 0x1f5   :  { %v1992_v2 = vand.u32 4294901760, %v1991_v63  ;;  %v1998_v16 = vand.u32 4294901760, %v1997_v54  ;;  %v882_v19 = vrot.slane %v10801_v44, 4  ;;  %v2006_v27 = vsub.f32 %v10878_v29, %v13524_v58 }
 0x1f6   :  { %14115 = vst [vmem:[#allocation118_spill] sm:$0xff] %v10892_v34  ;;  %1075 = vmatprep.mubr.f32.mxu1 %v1074_v42  ;;  %v10902_v25 = vsub.f32 %v869_v41, %v10892_v34  ;;  %v883_v33 = vrot.slane %v10807_v39, 4  ;;  %v1089_v63 = vand.u32 4294901760, %v1088_v1  ;;  %v8569_v54 = vpack.c.bf16 %v10342_v18, %v10337_v14 }
 0x1f7   :  { %1993 = vmatprep.mubr.f32.mxu0 %v1992_v2  ;;  %1081 = vmatmul.mubr.f32.vlgmr.msra.gmra.mrb[2].mxu1 %v1080_v12  ;;  %v885_v40 = vrot.slane %v10804_v8, 4  ;;  %v2007_v42 = vand.u32 4294901760, %v2006_v27  ;;  %v14118_v41 = vpack.c.bf16 %v10321_v15, %v10316_v9  ;;  %v1095_v2 = vand.u32 4294901760, %v1094_v45  ;;  %v14121_v12 = vld [vmem:[#allocation45_spill] sm:$0xff] }
 0x1f8   :  { %14116 = vst [vmem:[#allocation119_spill] sm:$0xff] %v10902_v25  ;;  %8344 = vmatpush3.bf16.msra.mxu1 %v10622_v4  ;;  %1999 = vmatmul.mubr.f32.vlgmr.msra.gmra.mrb[2].mxu0 %v1998_v16  ;;  %v13525_v44 = vand.u32 4294901760, %v10902_v25  ;;  %v10911_v58 = vsel %vm881_vm4, %v882_v19, %v883_v33  ;;  %v8571_v39 = vpack.c.bf16 %v10362_v38, %v10357_v13  ;;  %v14119_v8 = vrot.slane %v10810_v26, 4  ;;  %v14123_v26 = vld [vmem:[#allocation47_spill] sm:$0xff]  ;;  %v14124_v19 = vld [vmem:[#allocation48_spill] sm:$0xff]  ;;  %v14125_v27 = vld [vmem:[#allocation49_spill] sm:$0xff] }
 0x1f9   :  { %14117 = vst [vmem:[#allocation120_spill] sm:$0xff] %v10911_v58  ;;  %8568 = vmatpush3.bf16.msra.mxu0 %v14118_v41  ;;  %1090 = vmatprep.mubr.f32.mxu1 %v1089_v63  ;;  %v8573_v1 = vpack.c.bf16 %v14121_v12, %v10377_v10  ;;  %v8577_v33 = vpack.c.bf16 %v14125_v27, %v14124_v19  ;;  %v14127_v63 = vld [vmem:[#allocation52_spill] sm:$0xff]  ;;  %v14148_v58 = vld [vmem:[#allocation61_spill] sm:$0xff] }
 0x1fa   :  { %v10921_v4 = vsel %vm881_vm4, %v885_v40, %v14119_v8  ;;  %2008 = vmatprep.mubr.f32.mxu0 %v2007_v42  ;;  %8346 = vmatprep.subr.bf16.mxu1 %v10628_v22  ;;  %v2012_v16 = vsub.f32 %v10902_v25, %v13525_v44  ;;  %v14122_v40 = vld [vmem:[#allocation46_spill] sm:$0xff]  ;;  %v14129_v42 = vld [vmem:[#allocation56_spill] sm:$0xff] }
 0x1fb   :  { %14120 = vst [vmem:[#allocation121_spill] sm:$0xff] %v10921_v4  ;;  %8570 = vmatprep.subr.bf16.mxu0 %v8569_v54  ;;  %1096 = vmatmul.mubr.f32.gmra.mrb[4].mxu1 %v1095_v2  ;;  %v8575_v22 = vpack.c.bf16 %v14123_v26, %v14122_v40  ;;  %v14130_v2 = vld [vmem:[#allocation97_spill] sm:$0xff]  ;;  %v14132_v8 = vld [vmem:[#allocation62_spill] sm:$0xff]  ;;  %v14138_v44 = vld [vmem:[#allocation72_spill] sm:$0xff] }
 0x1fc   :  { %8348 = vmatpush3.bf16.msra.mxu1 %v10635_v52  ;;  %v2013_v45 = vand.u32 4294901760, %v2012_v16  ;;  %1326 = vmatprep.mubr.f32.mxu1 %v10826_v47  ;;  %v14126_v52 = vld [vmem:[#allocation51_spill] sm:$0xff]  ;;  %v14142_v47 = vld [vmem:[#allocation101_spill] sm:$0xff]  ;;  %v14144_v4 = vld [vmem:[#allocation84_spill] sm:$0xff] }
 0x1fd   :  { %8572 = vmatpush3.bf16.msra.mxu0 %v8571_v39  ;;  %8350 = vmatprep.subr.bf16.mxu1 %v10653_v32  ;;  %v8579_v54 = vpack.c.bf16 %v14127_v63, %v14126_v52  ;;  %v14128_v32 = vld [vmem:[#allocation55_spill] sm:$0xff]  ;;  %v14131_v39 = vld [vmem:[#allocation60_spill] sm:$0xff] }
 0x1fe   :  { %2014 = vmatmul.mubr.f32.gmra.mrb[4].mxu0 %v2013_v45  ;;  %8574 = vmatprep.subr.bf16.mxu0 %v8573_v1  ;;  %v8581_v41 = vpack.c.bf16 %v14129_v42, %v14128_v32  ;;  %v8583_v16 = vpack.c.bf16 %v14132_v8, %v14131_v39  ;;  %v14134_v1 = vld [vmem:[#allocation67_spill] sm:$0xff] }
 0x1ff   :  { %2388 = vmatprep.mubr.f32.mxu0 %v10850_v11 }
 0x200   :  { %8352 = vmatpush3.bf16.msra.mxu1 %v10662_v55  ;;  %v14133_v55 = vld [vmem:[#allocation66_spill] sm:$0xff] }
 0x201   :  { %8576 = vmatpush3.bf16.msra.mxu0 %v8575_v22  ;;  %8354 = vmatprep.subr.bf16.mxu1 %v10665_v0  ;;  %v8585_v45 = vpack.c.bf16 %v14134_v1, %v14133_v55  ;;  %v14135_v0 = vld [vmem:[#allocation98_spill] sm:$0xff]  ;;  %v14136_v22 = vld [vmem:[#allocation99_spill] sm:$0xff] }
 0x202   :  { %8578 = vmatprep.subr.bf16.mxu0 %v8577_v33  ;;  %v14137_v33 = vld [vmem:[#allocation71_spill] sm:$0xff] }
 0x203   :  { %v8587_v43 = vpack.c.bf16 %v14138_v44, %v14137_v33  ;;  %v13538_v44 = vand.u32 4294901760, %v14148_v58 }
 0x204   :  { %8356 = vmatpush3.bf16.msra.mxu1 %v14130_v2  ;;  %v14139_v2 = vld [vmem:[#allocation76_spill] sm:$0xff] }
 0x205   :  { %8580 = vmatpush3.bf16.msra.mxu0 %v8579_v54  ;;  %8358 = vmatprep.subr.bf16.mxu1 %v10693_v62  ;;  %v14140_v54 = vld [vmem:[#allocation78_spill] sm:$0xff]  ;;  %v14141_v62 = vld [vmem:[#allocation100_spill] sm:$0xff] }
 0x206   :  { %8582 = vmatprep.subr.bf16.mxu0 %v8581_v41  ;;  %v8589_v11 = vpack.c.bf16 %v14140_v54, %v14139_v2  ;;  %v14143_v41 = vld [vmem:[#allocation82_spill] sm:$0xff] }
 0x207   :  { %v8591_v34 = vpack.c.bf16 %v14144_v4, %v14143_v41 }
 0x208   :  { %8360 = vmatpush3.bf16.msra.mxu1 %v14135_v0  ;;  %v14145_v0 = vld [vmem:[#allocation89_spill] sm:$0xff] }
 0x209   :  { %8584 = vmatpush3.bf16.msra.mxu0 %v8583_v16  ;;  %8362 = vmatprep.subr.bf16.mxu1 %v14136_v22  ;;  %v14146_v16 = vld [vmem:[#allocation90_spill] sm:$0xff]  ;;  %v14147_v22 = vld [vmem:[#allocation57_spill] sm:$0xff] }
 0x20a   :  { %8586 = vmatprep.subr.bf16.mxu0 %v8585_v45  ;;  %v8593_v59 = vpack.c.bf16 %v14146_v16, %v14145_v0  ;;  %v13547_v24 = vand.u32 4294901760, %v14147_v22  ;;  %v14149_v45 = vld [vmem:[#allocation95_spill] sm:$0xff]  ;;  %v13539_v16 = vand.u32 4294901760, %v10321_v15  ;;  %v13541_v0 = vand.u32 4294901760, %v10337_v14  ;;  %v14205_v15 = vld [vmem:[#allocation18_spill] sm:$0xff] }
 0x20b   :  { %v11162_v14 = vld [vmem:[#allocation7 + $0x238] sm:$0xff] }
 0x20c   :  { %8364 = vmatpush3.bf16.msra.mxu1 %v14141_v62  ;;  %v2832_v22 = vand.u32 4294901760, %v11162_v14 }
 0x20d   :  { %8588 = vmatpush3.bf16.msra.mxu0 %v8587_v43  ;;  %8366 = vmatprep.subr.bf16.mxu1 %v14142_v47  ;;  %v14150_v43 = vld [vmem:[#allocation96_spill] sm:$0xff]  ;;  %v8629_v47 = vpack.c.bf16 %v13538_v44, %v13547_v24  ;;  %v13543_v44 = vand.u32 4294901760, %v10362_v38  ;;  %v13556_v24 = vand.u32 4294901760, %v14129_v42  ;;  %v14168_v42 = vld [vmem:[#allocation58_spill] sm:$0xff] }
 0x20e   :  { %8590 = vmatprep.subr.bf16.mxu0 %v8589_v11  ;;  %v8595_v62 = vpack.c.bf16 %v14150_v43, %v14149_v45  ;;  %v13542_v11 = vand.u32 4294901760, %v10316_v9  ;;  %v11140_v38 = vld [vmem:[#allocation7 + $0x220] sm:$0xff] }
 0x210   :  { %8368 = vmatpush3.bf16.msra.mxu1 %v10743_v21  ;;  %v13540_v21 = vand.u32 4294901760, %v10342_v18  ;;  %v11160_v18 = vld [vmem:[#allocation7 + $0x230] sm:$0xff] }
 0x211   :  { %8592 = vmatpush3.bf16.msra.mxu0 %v8591_v34  ;;  %8370 = vmatprep.subr.bf16.mxu1 %v10747_v28  ;;  %v14151_v28 = vpack.c.bf16 %v10299_v3, %v10294_v20  ;;  %v8631_v34 = vpack.c.bf16 %v13539_v16, %v13542_v11  ;;  %v14153_v16 = vpack.c.bf16 %v10332_v60, %v10327_v23  ;;  %v13548_v11 = vand.u32 4294901760, %v14123_v26 }
 0x212   :  { %8594 = vmatprep.subr.bf16.mxu0 %v8593_v59  ;;  %v13546_v59 = vand.u32 4294901760, %v10357_v13  ;;  %v14204_v13 = vld [vmem:[#allocation114_spill] sm:$0xff]  ;;  %v2829_v58 = vand.u32 4294901760, %v11160_v18 }
 0x214   :  { %8372 = vmatpush3.bf16.msra.mxu1 %v10751_v61  ;;  %v8633_v61 = vpack.c.bf16 %v13540_v21, %v13541_v0  ;;  %v8635_v21 = vpack.c.bf16 %v13543_v44, %v13546_v59  ;;  %v13551_v0 = vand.u32 4294901760, %v14122_v40  ;;  %v14154_v44 = vpack.c.bf16 %v10352_v7, %v10347_v6 }
 0x215   :  { %8596 = vmatpush3.bf16.msra.mxu0 %v8595_v62  ;;  %8374 = vmatprep.subr.bf16.mxu1 %v14151_v28  ;;  %v13545_v62 = vand.u32 4294901760, %v10377_v10  ;;  %v14152_v28 = vpack.c.bf16 %v10311_v30, %v10306_v5  ;;  %v13553_v59 = vand.u32 4294901760, %v14127_v63  ;;  %v14191_v63 = vld [vmem:[#allocation87_spill] sm:$0xff] }
 0x216   :  { %8630 = vmatprep.subr.bf16.mxu0 %v8629_v47  ;;  %v13544_v47 = vand.u32 4294901760, %v14121_v12  ;;  %v14197_v12 = vld [vmem:[#allocation93_spill] sm:$0xff] }
 0x217   :  { %1328 = vmatmul.mubr.f32.vlgmr.msra.gmra.mrb[6].mxu1 %v10819_v35 }
 0x218   :  { %2391 = vmatmul.mubr.f32.vlgmr.msra.gmra.mrb[6].mxu0 %v10853_v53  ;;  %1333 = vmatprep.mubr.f32.mxu1 %v10844_v36  ;;  %v14166_v53 = vand.u32 4294901760, %v14134_v1  ;;  %v11121_v1 = vld [vmem:[#allocation7 + $0x210] sm:$0xff] }
 0x219   :  { %8376 = vmatpush3.bf16.msra.mxu1 %v14152_v28  ;;  %2397 = vmatprep.mubr.f32.mxu0 %v10878_v29  ;;  %v13550_v28 = vand.u32 4294901760, %v14124_v19  ;;  %v13601_v26 = vand.u32 4294901760, %v11121_v1 }
 0x21a   :  { %8632 = vmatpush3.bf16.msra.mxu0 %v8631_v34  ;;  %8378 = vmatprep.subr.bf16.mxu1 %v14153_v16  ;;  %v8637_v34 = vpack.c.bf16 %v13544_v47, %v13545_v62  ;;  %v13549_v16 = vand.u32 4294901760, %v14125_v27  ;;  %v8639_v47 = vpack.c.bf16 %v13548_v11, %v13551_v0  ;;  %v13554_v62 = vand.u32 4294901760, %v14126_v52 }
 0x21b   :  { %1335 = vmatmul.mubr.f32.gmra.mrb[8].mxu1 %v10847_v37  ;;  %8634 = vmatprep.subr.bf16.mxu0 %v8633_v61  ;;  %v14155_v61 = vpack.c.bf16 %v10372_v57, %v10367_v31  ;;  %v14157_v11 = vpack.c.bf16 %v10412_v51, %v10407_v49  ;;  %v14165_v0 = vand.u32 4294901760, %v14133_v55  ;;  %v11181_v37 = vld [vmem:[#allocation7 + $0x240] sm:$0xff] }
 0x21c   :  { %2400 = vmatmul.mubr.f32.gmra.mrb[8].mxu0 %v10902_v25  ;;  %1470 = vmatprep.mubr.f32.mxu1 %v10841_v48 }
 0x21d   :  { %8380 = vmatpush3.bf16.msra.mxu1 %v14154_v44  ;;  %2685 = vmatprep.mubr.f32.mxu0 %v10834_v56  ;;  %v8641_v44 = vpack.c.bf16 %v13549_v16, %v13550_v28  ;;  %v13563_v28 = vand.u32 4294901760, %v14132_v8  ;;  %v13573_v56 = vand.u32 4294901760, %v14140_v54  ;;  %v14175_v8 = vld [vmem:[#allocation90_spill] sm:$0xff] }
 0x21e   :  { %8636 = vmatpush3.bf16.msra.mxu0 %v8635_v21  ;;  %8382 = vmatprep.subr.bf16.mxu1 %v14155_v61  ;;  %v13557_v21 = vand.u32 4294901760, %v14128_v32  ;;  %v14156_v61 = vpack.c.bf16 %v10392_v50, %v10387_v46  ;;  %v14186_v27 = vand.u32 4294901760, %v14175_v8  ;;  %v14192_v8 = vld [vmem:[#allocation85_spill] sm:$0xff] }
 0x21f   :  { %8638 = vmatprep.subr.bf16.mxu0 %v8637_v34  ;;  %v8643_v34 = vpack.c.bf16 %v13553_v59, %v13554_v62  ;;  %v14160_v59 = vld [vmem:[#allocation54_spill] sm:$0xff]  ;;  %v14161_v62 = vld [vmem:[#allocation53_spill] sm:$0xff] }
 0x220   :  { %v14162_v16 = vpack.c.bf16 %v14160_v59, %v14161_v62 }
 0x221   :  { %8384 = vmatpush3.bf16.msra.mxu1 %v14156_v61  ;;  %v8645_v61 = vpack.c.bf16 %v13556_v24, %v13557_v21  ;;  %v14164_v21 = vld [vmem:[#allocation72_spill] sm:$0xff] }
 0x222   :  { %8640 = vmatpush3.bf16.msra.mxu0 %v8639_v47  ;;  %8386 = vmatprep.subr.bf16.mxu1 %v14157_v11  ;;  %v14158_v11 = vld [vmem:[#allocation50_spill] sm:$0xff]  ;;  %v13570_v47 = vand.u32 4294901760, %v14164_v21  ;;  %v14176_v21 = vld [vmem:[#allocation120_spill] sm:$0xff] }
 0x223   :  { %8642 = vmatprep.subr.bf16.mxu0 %v8641_v44  ;;  %v14159_v25 = vpack.c.bf16 %v10432_v17, %v14158_v11  ;;  %v14163_v44 = vand.u32 4294901760, %v14131_v39 }
 0x225   :  { %8388 = vmatpush3.bf16.msra.mxu1 %v14159_v25  ;;  %v8647_v29 = vpack.c.bf16 %v13563_v28, %v14163_v44  ;;  %v8649_v25 = vpack.c.bf16 %v14166_v53, %v14165_v0  ;;  %v14170_v44 = vld [vmem:[#allocation64_spill] sm:$0xff]  ;;  %v14171_v28 = vld [vmem:[#allocation63_spill] sm:$0xff]  ;;  %v14178_v53 = vld [vmem:[#allocation69_spill] sm:$0xff] }
 0x226   :  { %8644 = vmatpush3.bf16.msra.mxu0 %v8643_v34  ;;  %8390 = vmatprep.subr.bf16.mxu1 %v14162_v16  ;;  %v13574_v34 = vand.u32 4294901760, %v14139_v2  ;;  %v14167_v16 = vld [vmem:[#allocation59_spill] sm:$0xff]  ;;  %v14172_v24 = vpack.c.bf16 %v14170_v44, %v14171_v28  ;;  %v14181_v2 = vld [vmem:[#allocation74_spill] sm:$0xff] }
 0x227   :  { %8646 = vmatprep.subr.bf16.mxu0 %v8645_v61  ;;  %v14169_v39 = vpack.c.bf16 %v14167_v16, %v14168_v42  ;;  %v14173_v61 = vand.u32 4294901760, %v14137_v33  ;;  %v11091_v33 = vld [vmem:[#allocation7 + $0x208] sm:$0xff] }
 0x228   :  { %v2814_v19 = vand.u32 4294901760, %v11091_v33 }
 0x229   :  { %8392 = vmatpush3.bf16.msra.mxu1 %v14169_v39  ;;  %v8651_v55 = vpack.c.bf16 %v13570_v47, %v14173_v61  ;;  %v8653_v39 = vpack.c.bf16 %v13573_v56, %v13574_v34  ;;  %v11094_v61 = vand.u32 4294901760, %v14176_v21  ;;  %v14177_v47 = vld [vmem:[#allocation36_spill] sm:$0xff]  ;;  %v14183_v56 = vand.u32 4294901760, %v14143_v41 }
 0x22a   :  { %8648 = vmatpush3.bf16.msra.mxu0 %v8647_v29  ;;  %8394 = vmatprep.subr.bf16.mxu1 %v14172_v24  ;;  %v14174_v29 = vld [vmem:[#allocation89_spill] sm:$0xff]  ;;  %v11089_v24 = vld [vmem:[#allocation7 + $0x200] sm:$0xff]  ;;  %v14179_v0 = vpack.c.bf16 %v14177_v47, %v14178_v53  ;;  %v14184_v34 = vand.u32 4294901760, %v14144_v4 }
 0x22b   :  { %8650 = vmatprep.subr.bf16.mxu0 %v8649_v25  ;;  %v14180_v25 = vld [vmem:[#allocation75_spill] sm:$0xff]  ;;  %v14185_v52 = vand.u32 4294901760, %v14174_v29  ;;  %v14188_v4 = vld [vmem:[#allocation81_spill] sm:$0xff]  ;;  %v14195_v29 = vand.u32 4294901760, %v14150_v43  ;;  %v14200_v43 = vld [vmem:[#allocation16_spill] sm:$0xff] }
 0x22c   :  { %v14182_v54 = vpack.c.bf16 %v14180_v25, %v14181_v2  ;;  %v8655_v32 = vpack.c.bf16 %v14184_v34, %v14183_v56  ;;  %v14189_v56 = vld [vmem:[#allocation80_spill] sm:$0xff] }
 0x22d   :  { %8396 = vmatpush3.bf16.msra.mxu1 %v14179_v0  ;;  %v8657_v0 = vpack.c.bf16 %v14186_v27, %v14185_v52  ;;  %v14190_v34 = vpack.c.bf16 %v14188_v4, %v14189_v56  ;;  %v14193_v27 = vpack.c.bf16 %v14191_v63, %v14192_v8  ;;  %v14194_v52 = vand.u32 4294901760, %v14149_v45  ;;  %v14203_v45 = vld [vmem:[#allocation109_spill] sm:$0xff] }
 0x22e   :  { %8652 = vmatpush3.bf16.msra.mxu0 %v8651_v55  ;;  %8398 = vmatprep.subr.bf16.mxu1 %v14182_v54  ;;  %v2811_v55 = vand.u32 4294901760, %v11089_v24  ;;  %v11116_v54 = vsub.f32 %v14176_v21, %v11094_v61 }
 0x22f   :  { %8654 = vmatprep.subr.bf16.mxu0 %v8653_v39  ;;  %v11123_v39 = vld [vmem:[#allocation7 + $0x218] sm:$0xff]  ;;  %v8659_v41 = vpack.c.bf16 %v14195_v29, %v14194_v52  ;;  %v13611_v52 = vand.u32 4294901760, %v11140_v38 }
 0x230   :  { %14187 = vst [vmem:[#allocation97_spill] sm:$0xff] %v11116_v54  ;;  %v11132_v21 = vpack.c.bf16 %v2814_v19, %v2811_v55  ;;  %v13602_v40 = vand.u32 4294901760, %v11116_v54  ;;  %v14201_v29 = vld [vmem:[#allocation107_spill] sm:$0xff] }
 0x231   :  { %8400 = vmatpush3.bf16.msra.mxu1 %v14190_v34  ;;  %v13600_v34 = vand.u32 4294901760, %v11123_v39 }
 0x232   :  { %8656 = vmatpush3.bf16.msra.mxu0 %v8655_v32  ;;  %8402 = vmatprep.subr.bf16.mxu1 %v14193_v27  ;;  %14196 = vst [vmem:[#allocation98_spill] sm:$0xff] %v11132_v21  ;;  %v14198_v32 = vld [vmem:[#allocation92_spill] sm:$0xff]  ;;  %v11142_v27 = vld [vmem:[#allocation7 + $0x228] sm:$0xff] }
 0x233   :  { %8658 = vmatprep.subr.bf16.mxu0 %v8657_v0  ;;  %v14199_v10 = vpack.c.bf16 %v14197_v12, %v14198_v32  ;;  %v11151_v0 = vpack.c.bf16 %v13600_v34, %v13601_v26  ;;  %v14206_v34 = vld [vmem:[#allocation115_spill] sm:$0xff]  ;;  %v14207_v26 = vld [vmem:[#allocation20_spill] sm:$0xff] }
 0x235   :  { %8404 = vmatpush3.bf16.msra.mxu1 %v14199_v10  ;;  %14202 = vst [vmem:[#allocation99_spill] sm:$0xff] %v11151_v0  ;;  %v2894_v10 = vsub.f32 %v11116_v54, %v13602_v40  ;;  %v14208_v40 = vld [vmem:[#allocation116_spill] sm:$0xff]  ;;  %v11195_v54 = vld [vmem:[#allocation7 + $0x258] sm:$0xff] }
 0x236   :  { %8660 = vmatpush3.bf16.msra.mxu0 %v8659_v41  ;;  %8406 = vmatprep.subr.bf16.mxu1 %v14200_v43  ;;  %v14222_v35 = vand.u32 4294901760, %v11195_v54  ;;  %v14228_v43 = vand.u32 4294901760, %v11123_v39 }
 0x237   :  { %8694 = vmatprep.subr.bf16.mxu0 %v11132_v21  ;;  %v2895_v41 = vand.u32 4294901760, %v2894_v10  ;;  %v14213_v10 = vld [vmem:[#allocation22_spill] sm:$0xff] }
 0x238   :  { %1473 = vmatmul.mubr.f32.vlgmr.msra.gmra.mrb[10].mxu1 %v14201_v29  ;;  %v11248_v12 = vsub.f32 %v11123_v39, %v14228_v43 }
 0x239   :  { %2687 = vmatmul.mubr.f32.vlgmr.msra.gmra.mrb[10].mxu0 %v14203_v45  ;;  %1479 = vmatprep.mubr.f32.mxu1 %v14204_v13  ;;  %v14209_v45 = vand.u32 4294901760, %v11142_v27 }
 0x23a   :  { %8408 = vmatpush3.bf16.msra.mxu1 %v14205_v15  ;;  %2692 = vmatprep.mubr.f32.mxu0 %v14206_v34  ;;  %v14211_v34 = vld [vmem:[#allocation118_spill] sm:$0xff]  ;;  %14229 = vst [vmem:[#allocation58_spill] sm:$0xff] %v11248_v12 }
 0x23b   :  { %8696 = vmatpush3.bf16.msra.mxu0 %v11132_v21  ;;  %8410 = vmatprep.subr.bf16.mxu1 %v14207_v26  ;;  %v11174_v9 = vpack.c.bf16 %v14209_v45, %v13611_v52  ;;  %v14212_v21 = vand.u32 4294901760, %v10841_v48  ;;  %v11183_v26 = vld [vmem:[#allocation7 + $0x248] sm:$0xff]  ;;  %v14214_v45 = vld [vmem:[#allocation24_spill] sm:$0xff]  ;;  %v11189_v52 = vpack.c.bf16 %v2832_v22, %v2829_v58  ;;  %v14216_v15 = vld [vmem:[#allocation26_spill] sm:$0xff] }
 0x23c   :  { %1482 = vmatmul.mubr.f32.gmra.mrb[12].mxu1 %v14208_v40  ;;  %8698 = vmatprep.subr.bf16.mxu0 %v11151_v0  ;;  %v13620_v48 = vand.u32 4294901760, %v11183_v26 }
 0x23d   :  { %14210 = vst [vmem:[#allocation100_spill] sm:$0xff] %v11174_v9  ;;  %2694 = vmatmul.mubr.f32.gmra.mrb[12].mxu0 %v14211_v34  ;;  %1586 = vmatprep.mubr.f32.mxu1 %v14212_v21  ;;  %14215 = vst [vmem:[#allocation101_spill] sm:$0xff] %v11189_v52  ;;  %v13621_v34 = vand.u32 4294901760, %v11181_v37  ;;  %v11193_v21 = vld [vmem:[#allocation7 + $0x250] sm:$0xff] }
 0x23e   :  { %8412 = vmatpush3.bf16.msra.mxu1 %v14213_v10  ;;  %7729 = vmatprep.mubr.f32.mxu0 %v2895_v41  ;;  %v14217_v41 = vld [vmem:[#allocation28_spill] sm:$0xff]  ;;  %v14221_v36 = vand.u32 4294901760, %v11193_v21 }
 0x23f   :  { %8700 = vmatpush3.bf16.msra.mxu0 %v11151_v0  ;;  %8414 = vmatprep.subr.bf16.mxu1 %v14214_v45  ;;  %v11201_v0 = vsub.f32 %v11089_v24, %v2811_v55  ;;  %v11208_v45 = vpack.c.bf16 %v13620_v48, %v13621_v34  ;;  %v14219_v24 = vld [vmem:[#allocation30_spill] sm:$0xff]  ;;  %v14220_v55 = vld [vmem:[#allocation32_spill] sm:$0xff]  ;;  %v14226_v34 = vand.u32 4294901760, %v11121_v1 }
 0x240   :  { %8702 = vmatprep.subr.bf16.mxu0 %v11174_v9 }
 0x241   :  { %14218 = vst [vmem:[#allocation50_spill] sm:$0xff] %v11208_v45  ;;  %v11243_v10 = vsub.f32 %v11121_v1, %v14226_v34  ;;  %v14235_v8 = vand.u32 4294901760, %v11201_v0  ;;  %v14239_v34 = vand.u32 4294901760, %v11142_v27 }
 0x242   :  { %8416 = vmatpush3.bf16.msra.mxu1 %v14216_v15  ;;  %v11212_v15 = vld [vmem:[#allocation7 + $0x260] sm:$0xff] }
 0x243   :  { %8704 = vmatpush3.bf16.msra.mxu0 %v11174_v9  ;;  %8418 = vmatprep.subr.bf16.mxu1 %v14217_v41  ;;  %v11214_v9 = vld [vmem:[#allocation7 + $0x268] sm:$0xff]  ;;  %v11217_v41 = vsub.f32 %v11091_v33, %v2814_v19  ;;  %v11230_v19 = vpack.c.bf16 %v14222_v35, %v14221_v36  ;;  %v11232_v33 = vld [vmem:[#allocation7 + $0x270] sm:$0xff]  ;;  %14227 = vst [vmem:[#allocation59_spill] sm:$0xff] %v11243_v10  ;;  %v14232_v32 = vand.u32 4294901760, %v11212_v15 }
 0x244   :  { %8706 = vmatprep.subr.bf16.mxu0 %v11189_v52  ;;  %v14230_v35 = vld [vmem:[#allocation34_spill] sm:$0xff]  ;;  %v14231_v36 = vld [vmem:[#allocation37_spill] sm:$0xff]  ;;  %v14233_v48 = vand.u32 4294901760, %v11214_v9  ;;  %v2915_v43 = vsub.f32 %v11201_v0, %v14235_v8  ;;  %v11280_v1 = vsub.f32 %v11142_v27, %v14239_v34 }
 0x245   :  { %14223 = vst [vmem:[#allocation54_spill] sm:$0xff] %v11230_v19 }
 0x246   :  { %8420 = vmatpush3.bf16.msra.mxu1 %v14219_v24  ;;  %v11234_v24 = vld [vmem:[#allocation7 + $0x278] sm:$0xff]  ;;  %v11257_v63 = vpack.c.bf16 %v14233_v48, %v14232_v32  ;;  %v14238_v32 = vand.u32 4294901760, %v11140_v38  ;;  %v2916_v8 = vand.u32 4294901760, %v2915_v43 }
 0x247   :  { %8708 = vmatpush3.bf16.msra.mxu0 %v11189_v52  ;;  %8422 = vmatprep.subr.bf16.mxu1 %v14220_v55  ;;  %v14224_v52 = vld [vmem:[#allocation121_spill] sm:$0xff]  ;;  %v14243_v27 = vand.u32 4294901760, %v11234_v24 }
 0x248   :  { %8710 = vmatprep.subr.bf16.mxu0 %v11208_v45  ;;  %v11237_v55 = vand.u32 4294901760, %v14224_v52  ;;  %14234 = vst [vmem:[#allocation64_spill] sm:$0xff] %v11257_v63  ;;  %v11275_v48 = vsub.f32 %v11140_v38, %v14238_v32  ;;  %v14241_v38 = vld [vmem:[#allocation73_spill] sm:$0xff]  ;;  %v14242_v32 = vand.u32 4294901760, %v11232_v33 }
 0x24a   :  { %14225 = vst [vmem:[#allocation53_spill] sm:$0xff] %v11237_v55  ;;  %8424 = vmatpush3.bf16.msra.mxu1 %v14230_v35  ;;  %v11267_v39 = vsub.f32 %v14224_v52, %v11237_v55  ;;  %v14240_v52 = vld [vmem:[#allocation68_spill] sm:$0xff]  ;;  %v11286_v55 = vsub.f32 %v11160_v18, %v2829_v58  ;;  %v11297_v34 = vpack.c.bf16 %v14243_v27, %v14242_v32  ;;  %v14247_v32 = vld [vmem:[#allocation79_spill] sm:$0xff]  ;;  %v14250_v58 = vand.u32 4294901760, %v10299_v3 }
 0x24b   :  { %8712 = vmatpush3.bf16.msra.mxu0 %v11208_v45  ;;  %8426 = vmatprep.subr.bf16.mxu1 %v14231_v36  ;;  %v14237_v45 = vand.u32 4294901760, %v11217_v41  ;;  %v14254_v3 = vand.u32 4294901760, %v11275_v48 }
 0x24c   :  { %8714 = vmatprep.subr.bf16.mxu0 %v11230_v19  ;;  %14236 = vst [vmem:[#allocation63_spill] sm:$0xff] %v11267_v39  ;;  %14244 = vst [vmem:[#allocation120_spill] sm:$0xff] %v11297_v34  ;;  %v14253_v27 = vand.u32 4294901760, %v11267_v39 }
 0x24d   :  { %v2922_v36 = vsub.f32 %v11217_v41, %v14237_v45  ;;  %v11289_v45 = vsub.f32 %v11162_v14, %v2832_v22  ;;  %v14245_v22 = vand.u32 4294901760, %v11243_v10  ;;  %v14249_v14 = vand.u32 4294901760, %v10294_v20 }
 0x24e   :  { %8428 = vmatpush3.bf16.msra.mxu1 %v14240_v52 }
 0x24f   :  { %8716 = vmatpush3.bf16.msra.mxu0 %v11230_v19  ;;  %8430 = vmatprep.subr.bf16.mxu1 %v14241_v38  ;;  %v2923_v18 = vand.u32 4294901760, %v2922_v36  ;;  %v2929_v19 = vsub.f32 %v11243_v10, %v14245_v22  ;;  %v14246_v38 = vand.u32 4294901760, %v11248_v12  ;;  %v14248_v36 = vld [vmem:[#allocation86_spill] sm:$0xff]  ;;  %v8437_v35 = vpack.c.bf16 %v14250_v58, %v14249_v14 }
 0x250   :  { %8718 = vmatprep.subr.bf16.mxu0 %v11257_v63  ;;  %v14251_v22 = vand.u32 4294901760, %v11181_v37  ;;  %v2943_v58 = vsub.f32 %v11275_v48, %v14254_v3  ;;  %v14255_v14 = vand.u32 4294901760, %v11280_v1 }
 0x251   :  { %v2936_v52 = vsub.f32 %v11248_v12, %v14246_v38  ;;  %v14252_v38 = vand.u32 4294901760, %v11183_v26  ;;  %v8725_v20 = vpack.c.bf16 %v2923_v18, %v2916_v8  ;;  %v14260_v18 = vand.u32 4294901760, %v11289_v45 }
 0x252   :  { %8432 = vmatpush3.bf16.msra.mxu1 %v14247_v32  ;;  %v11321_v10 = vsub.f32 %v11181_v37, %v14251_v22  ;;  %v2950_v37 = vsub.f32 %v11280_v1, %v14255_v14  ;;  %v2930_v22 = vand.u32 4294901760, %v2929_v19  ;;  %v14256_v32 = vld [vmem:[#allocation91_spill] sm:$0xff]  ;;  %v14262_v14 = vand.u32 4294901760, %v11195_v54 }
 0x253   :  { %8720 = vmatpush3.bf16.msra.mxu0 %v11257_v63  ;;  %8434 = vmatprep.subr.bf16.mxu1 %v14248_v36  ;;  %v11326_v43 = vsub.f32 %v11183_v26, %v14252_v38  ;;  %v2904_v63 = vsub.f32 %v11267_v39, %v14253_v27  ;;  %v2937_v36 = vand.u32 4294901760, %v2936_v52  ;;  %v14257_v26 = vand.u32 4294901760, %v10306_v5 }
 0x254   :  { %8722 = vmatprep.subr.bf16.mxu0 %v11297_v34  ;;  %v14258_v38 = vand.u32 4294901760, %v10311_v30  ;;  %v14259_v27 = vand.u32 4294901760, %v11286_v55  ;;  %v2964_v3 = vsub.f32 %v11289_v45, %v14260_v18  ;;  %v14261_v5 = vand.u32 4294901760, %v11193_v21 }
 0x255   :  { %v2944_v19 = vand.u32 4294901760, %v2943_v58  ;;  %v14265_v52 = vand.u32 4294901760, %v14201_v29  ;;  %v8729_v39 = vpack.c.bf16 %v2937_v36, %v2930_v22  ;;  %v14271_v29 = vand.u32 4294901760, %v11321_v10 }
 0x256   :  { %8436 = vmatpush3.bf16.msra.mxu1 %v14256_v32  ;;  %v8439_v12 = vpack.c.bf16 %v14258_v38, %v14257_v26  ;;  %v2957_v8 = vsub.f32 %v11286_v55, %v14259_v27  ;;  %v11355_v30 = vsub.f32 %v11193_v21, %v14261_v5  ;;  %v11360_v26 = vsub.f32 %v11195_v54, %v14262_v14 }
 0x257   :  { %8724 = vmatpush3.bf16.msra.mxu0 %v11297_v34  ;;  %8438 = vmatprep.subr.bf16.mxu1 %v8437_v35  ;;  %v2905_v38 = vand.u32 4294901760, %v2904_v63  ;;  %v14263_v27 = vand.u32 4294901760, %v10327_v23  ;;  %v14264_v35 = vand.u32 4294901760, %v10332_v60  ;;  %v2951_v34 = vand.u32 4294901760, %v2950_v37 }
 0x258   :  { %8726 = vmatprep.subr.bf16.mxu0 %v8725_v20  ;;  %v14266_v21 = vand.u32 4294901760, %v14204_v13  ;;  %v14267_v54 = vand.u32 4294901760, %v10347_v6  ;;  %v14268_v63 = vand.u32 4294901760, %v10352_v7  ;;  %v14269_v23 = vand.u32 4294901760, %v10367_v31 }
 0x259   :  { %v8441_v18 = vpack.c.bf16 %v14264_v35, %v14263_v27  ;;  %1590 = vmatmul.mubr.f32.vlgmr.msra.gmra.mrb[14].mxu1 %v14265_v52  ;;  %v14270_v60 = vand.u32 4294901760, %v10372_v57  ;;  %v2958_v58 = vand.u32 4294901760, %v2957_v8  ;;  %v2965_v37 = vand.u32 4294901760, %v2964_v3  ;;  %v14276_v52 = vld [vmem:[#allocation106_spill] sm:$0xff] }
 0x25a   :  { %7730 = vmatmul.mubr.f32.vlgmr.msra.gmra.mrb[14].mxu0 %v2905_v38  ;;  %1597 = vmatprep.mubr.f32.mxu1 %v14266_v21  ;;  %v8443_v5 = vpack.c.bf16 %v14268_v63, %v14267_v54  ;;  %v2971_v36 = vsub.f32 %v11321_v10, %v14271_v29  ;;  %v14272_v13 = vand.u32 4294901760, %v11326_v43  ;;  %v2984_v7 = vand.u32 4294901760, %v11355_v30 }
 0x25b   :  { %v8445_v14 = vpack.c.bf16 %v14270_v60, %v14269_v23  ;;  %8440 = vmatpush3.bf16.msra.mxu1 %v8439_v12  ;;  %8728 = vmatpush3.bf16.msra.mxu0 %v8725_v20  ;;  %v2991_v22 = vand.u32 4294901760, %v11360_v26  ;;  %v8733_v31 = vpack.c.bf16 %v2951_v34, %v2944_v19  ;;  %v14273_v57 = vand.u32 4294901760, %v11212_v15 }
 0x25c   :  { %v2978_v6 = vsub.f32 %v11326_v43, %v14272_v13  ;;  %7764 = vmatprep.mubr.f32.mxu0 %v11094_v61  ;;  %8442 = vmatprep.subr.bf16.mxu1 %v8441_v18  ;;  %v14274_v20 = vand.u32 4294901760, %v11214_v9  ;;  %v14275_v3 = vand.u32 4294901760, %v14208_v40  ;;  %v14277_v38 = vand.u32 4294901760, %v10387_v46 }
 0x25d   :  { %v11390_v12 = vsub.f32 %v11212_v15, %v14273_v57  ;;  %8730 = vmatprep.subr.bf16.mxu0 %v8729_v39  ;;  %v14278_v34 = vand.u32 4294901760, %v10392_v50  ;;  %v14279_v27 = vand.u32 4294901760, %v10407_v49  ;;  %v14280_v15 = vand.u32 4294901760, %v10412_v51 }
 0x25e   :  { %v11395_v8 = vsub.f32 %v11214_v9, %v14274_v20  ;;  %1601 = vmatmul.mubr.f32.gmra.mrb[16].mxu1 %v14275_v3  ;;  %v8737_v18 = vpack.c.bf16 %v2965_v37, %v2958_v58  ;;  %v2972_v9 = vand.u32 4294901760, %v2971_v36  ;;  %v2979_v21 = vand.u32 4294901760, %v2978_v6 }
 0x25f   :  { %1767 = vmatprep.mubr.f32.mxu1 %v14276_v52  ;;  %v8447_v19 = vpack.c.bf16 %v14278_v34, %v14277_v38  ;;  %v8449_v35 = vpack.c.bf16 %v14280_v15, %v14279_v27  ;;  %8444 = vmatpush3.bf16.msra.mxu1 %v8443_v5  ;;  %v2985_v40 = vsub.f32 %v11355_v30, %v2984_v7  ;;  %v2998_v50 = vand.u32 4294901760, %v11390_v12 }
 0x260   :  { %8732 = vmatpush3.bf16.msra.mxu0 %v8729_v39  ;;  %v2992_v46 = vsub.f32 %v11360_v26, %v2991_v22  ;;  %8446 = vmatprep.subr.bf16.mxu1 %v8445_v14  ;;  %v3005_v49 = vand.u32 4294901760, %v11395_v8  ;;  %v14281_v51 = vand.u32 4294901760, %v11232_v33  ;;  %v14282_v54 = vand.u32 4294901760, %v11234_v24 }
 0x261   :  { %8734 = vmatprep.subr.bf16.mxu0 %v8733_v31  ;;  %v14283_v5 = vand.u32 4294901760, %v14158_v11  ;;  %v14284_v23 = vand.u32 4294901760, %v10432_v17  ;;  %v14285_v14 = vand.u32 4294901760, %v14161_v62  ;;  %v14286_v58 = vand.u32 4294901760, %v14160_v59 }
 0x262   :  { %v11419_v39 = vsub.f32 %v11232_v33, %v14281_v51  ;;  %v11424_v63 = vsub.f32 %v11234_v24, %v14282_v54  ;;  %v8741_v29 = vpack.c.bf16 %v2979_v21, %v2972_v9  ;;  %v2986_v33 = vand.u32 4294901760, %v2985_v40  ;;  %v14299_v54 = vld [vmem:[#allocation87_spill] sm:$0xff] }
 0x263   :  { %v8451_v60 = vpack.c.bf16 %v14284_v23, %v14283_v5  ;;  %8448 = vmatpush3.bf16.msra.mxu1 %v8447_v19  ;;  %v8453_v37 = vpack.c.bf16 %v14286_v58, %v14285_v14  ;;  %v2993_v36 = vand.u32 4294901760, %v2992_v46  ;;  %v2999_v24 = vsub.f32 %v11390_v12, %v2998_v50  ;;  %v14303_v14 = vld [vmem:[#allocation93_spill] sm:$0xff] }
 0x264   :  { %8736 = vmatpush3.bf16.msra.mxu0 %v8733_v31  ;;  %8450 = vmatprep.subr.bf16.mxu1 %v8449_v35  ;;  %v3006_v17 = vsub.f32 %v11395_v8, %v3005_v49  ;;  %v3012_v11 = vand.u32 4294901760, %v11419_v39  ;;  %v3019_v62 = vand.u32 4294901760, %v11424_v63  ;;  %v14287_v59 = vand.u32 4294901760, %v14168_v42 }
 0x265   :  { %8738 = vmatprep.subr.bf16.mxu0 %v8737_v18  ;;  %v14288_v13 = vand.u32 4294901760, %v14167_v16  ;;  %v14289_v31 = vand.u32 4294901760, %v14171_v28  ;;  %v14290_v57 = vand.u32 4294901760, %v14170_v44  ;;  %v8745_v3 = vpack.c.bf16 %v2993_v36, %v2986_v33  ;;  %v14307_v33 = vld [vmem:[#allocation58_spill] sm:$0xff] }
 0x266   :  { %v3000_v38 = vand.u32 4294901760, %v2999_v24  ;;  %v3007_v34 = vand.u32 4294901760, %v3006_v17  ;;  %v3013_v19 = vsub.f32 %v11419_v39, %v3012_v11  ;;  %v3020_v42 = vsub.f32 %v11424_v63, %v3019_v62  ;;  %v14308_v24 = vld [vmem:[#allocation105_spill] sm:$0xff] }
 0x267   :  { %8452 = vmatpush3.bf16.msra.mxu1 %v8451_v60  ;;  %v8455_v6 = vpack.c.bf16 %v14288_v13, %v14287_v59  ;;  %v8457_v20 = vpack.c.bf16 %v14290_v57, %v14289_v31  ;;  %v14291_v28 = vand.u32 4294901760, %v14178_v53  ;;  %v14292_v16 = vand.u32 4294901760, %v14177_v47  ;;  %v14297_v47 = vld [vmem:[#allocation85_spill] sm:$0xff]  ;;  %v14310_v59 = vld [vmem:[#allocation110_spill] sm:$0xff]  ;;  %v14313_v31 = vld [vmem:[#allocation20_spill] sm:$0xff] }
 0x268   :  { %8740 = vmatpush3.bf16.msra.mxu0 %v8737_v18  ;;  %8454 = vmatprep.subr.bf16.mxu1 %v8453_v37  ;;  %v14293_v27 = vand.u32 4294901760, %v14181_v2  ;;  %v14294_v15 = vand.u32 4294901760, %v14180_v25  ;;  %v8749_v18 = vpack.c.bf16 %v3007_v34, %v3000_v38  ;;  %v3014_v9 = vand.u32 4294901760, %v3013_v19  ;;  %v14301_v25 = vld [vmem:[#allocation92_spill] sm:$0xff]  ;;  %v14309_v17 = vld [vmem:[#allocation53_spill] sm:$0xff]  ;;  %v14311_v13 = vld [vmem:[#allocation18_spill] sm:$0xff] }
 0x269   :  { %8742 = vmatprep.subr.bf16.mxu0 %v8741_v29  ;;  %v8459_v44 = vpack.c.bf16 %v14292_v16, %v14291_v28  ;;  %v3021_v21 = vand.u32 4294901760, %v3020_v42  ;;  %v14295_v40 = vand.u32 4294901760, %v14189_v56  ;;  %v14296_v46 = vand.u32 4294901760, %v14188_v4  ;;  %v14305_v56 = vld [vmem:[#allocation16_spill] sm:$0xff]  ;;  %v14317_v19 = vld [vmem:[#allocation26_spill] sm:$0xff] }
 0x26a   :  { %v8461_v35 = vpack.c.bf16 %v14294_v15, %v14293_v27  ;;  %v14298_v51 = vand.u32 4294901760, %v14297_v47  ;;  %v14300_v5 = vand.u32 4294901760, %v14299_v54  ;;  %v14302_v60 = vand.u32 4294901760, %v14301_v25  ;;  %v14316_v38 = vld [vmem:[#allocation24_spill] sm:$0xff]  ;;  %v14319_v16 = vld [vmem:[#allocation30_spill] sm:$0xff]  ;;  %v14322_v15 = vld [vmem:[#allocation37_spill] sm:$0xff] }
 0x26b   :  { %8456 = vmatpush3.bf16.msra.mxu1 %v8455_v6  ;;  %v8463_v53 = vpack.c.bf16 %v14296_v46, %v14295_v40  ;;  %v8753_v23 = vpack.c.bf16 %v3021_v21, %v3014_v9  ;;  %v14304_v58 = vand.u32 4294901760, %v14303_v14  ;;  %v8757_v4 = vpack.c.bf16 %v11217_v41, %v11201_v0  ;;  %v14312_v6 = vld [vmem:[#allocation97_spill] sm:$0xff]  ;;  %v14318_v42 = vld [vmem:[#allocation28_spill] sm:$0xff]  ;;  %v14321_v27 = vld [vmem:[#allocation34_spill] sm:$0xff] }
 0x26c   :  { %8744 = vmatpush3.bf16.msra.mxu0 %v8741_v29  ;;  %8458 = vmatprep.subr.bf16.mxu1 %v8457_v20  ;;  %v8465_v2 = vpack.c.bf16 %v14300_v5, %v14298_v51  ;;  %v14306_v29 = vld [vmem:[#allocation59_spill] sm:$0xff]  ;;  %v8765_v57 = vpack.c.bf16 %v11280_v1, %v11275_v48  ;;  %v8769_v34 = vpack.c.bf16 %v11289_v45, %v11286_v55  ;;  %v14325_v21 = vld [vmem:[#allocation61_spill] sm:$0xff]  ;;  %v14327_v47 = vld [vmem:[#allocation68_spill] sm:$0xff] }
 0x26d   :  { %8746 = vmatprep.subr.bf16.mxu0 %v8745_v3  ;;  %v8467_v37 = vpack.c.bf16 %v14304_v58, %v14302_v60  ;;  %v8761_v36 = vpack.c.bf16 %v14307_v33, %v14306_v29  ;;  %v14314_v20 = vld [vmem:[#allocation111_spill] sm:$0xff]  ;;  %v8773_v28 = vpack.c.bf16 %v11326_v43, %v11321_v10  ;;  %v14326_v40 = vand.u32 4294901760, %v14325_v21  ;;  %v14328_v51 = vld [vmem:[#allocation38_spill] sm:$0xff] }
 0x26e   :  { %v14329_v54 = vand.u32 4294901760, %v14328_v51  ;;  %v14331_v60 = vld [vmem:[#allocation39_spill] sm:$0xff] }
 0x26f   :  { %8460 = vmatpush3.bf16.msra.mxu1 %v8459_v44  ;;  %v8777_v44 = vpack.c.bf16 %v11360_v26, %v11355_v30  ;;  %v2142_v46 = vsub.f32 %v14325_v21, %v14326_v40  ;;  %v14332_v14 = vand.u32 4294901760, %v14331_v60  ;;  %v14345_v21 = vld [vmem:[#allocation45_spill] sm:$0xff]  ;;  %v8845_v30 = vpack.c.bf16 %v3005_v49, %v2998_v50  ;;  %v14433_v50 = vld [vmem:[#allocation94_spill] sm:$0xff] }
 0x270   :  { %8748 = vmatpush3.bf16.msra.mxu0 %v8745_v3  ;;  %8462 = vmatprep.subr.bf16.mxu1 %v8461_v35  ;;  %v14315_v3 = vld [vmem:[#allocation22_spill] sm:$0xff]  ;;  %v14323_v35 = vld [vmem:[#allocation57_spill] sm:$0xff]  ;;  %v2023_v5 = vsub.f32 %v14328_v51, %v14329_v54  ;;  %v14346_v40 = vand.u32 4294901760, %v14345_v21 }
 0x271   :  { %8750 = vmatprep.subr.bf16.mxu0 %v8749_v18  ;;  %v2143_v25 = vand.u32 4294901760, %v2142_v46  ;;  %v2030_v58 = vsub.f32 %v14331_v60, %v14332_v14  ;;  %v14434_v49 = vld [vmem:[#allocation113_spill] sm:$0xff] }
 0x272   :  { %v2170_v46 = vsub.f32 %v14345_v21, %v14346_v40  ;;  %v14362_v21 = vld [vmem:[#allocation55_spill] sm:$0xff] }
 0x273   :  { %8464 = vmatpush3.bf16.msra.mxu1 %v8463_v53  ;;  %v8781_v53 = vpack.c.bf16 %v11395_v8, %v11390_v12  ;;  %v14363_v40 = vand.u32 4294901760, %v14362_v21  ;;  %v14431_v12 = vld [vmem:[#allocation83_spill] sm:$0xff]  ;;  %v14432_v8 = vld [vmem:[#allocation88_spill] sm:$0xff] }
 0x274   :  { %8752 = vmatpush3.bf16.msra.mxu0 %v8749_v18  ;;  %8466 = vmatprep.subr.bf16.mxu1 %v8465_v2  ;;  %v14324_v18 = vand.u32 4294901760, %v14323_v35  ;;  %v14330_v2 = vld [vmem:[#allocation73_spill] sm:$0xff] }
 0x275   :  { %8754 = vmatprep.subr.bf16.mxu0 %v8753_v23 }
 0x276   :  { %v2135_v9 = vsub.f32 %v14323_v35, %v14324_v18  ;;  %v14343_v35 = vld [vmem:[#allocation44_spill] sm:$0xff] }
 0x277   :  { %8468 = vmatpush3.bf16.msra.mxu1 %v8467_v37  ;;  %v8785_v37 = vpack.c.bf16 %v11424_v63, %v11419_v39  ;;  %v14344_v18 = vand.u32 4294901760, %v14343_v35  ;;  %v14435_v39 = vand.u32 4294901760, %v14434_v49  ;;  %v14436_v63 = vld [vmem:[#allocation117_spill] sm:$0xff] }
 0x278   :  { %8756 = vmatpush3.bf16.msra.mxu0 %v8753_v23  ;;  %8470 = vmatprep.subr.bf16.mxu1 %v14305_v56  ;;  %v2136_v23 = vand.u32 4294901760, %v2135_v9 }
 0x279   :  { %8758 = vmatprep.subr.bf16.mxu0 %v8757_v4  ;;  %v2163_v9 = vsub.f32 %v14343_v35, %v14344_v18 }
 0x27a   :  { %1769 = vmatmul.mubr.f32.vlgmr.msra.gmra.mrb[18].mxu1 %v14308_v24 }
 0x27b   :  { %7765 = vmatmul.mubr.f32.vlgmr.msra.gmra.mrb[14].mxu0 %v14309_v17  ;;  %1774 = vmatprep.mubr.f32.mxu1 %v14310_v59 }
 0x27c   :  { %8472 = vmatpush3.bf16.msra.mxu1 %v14311_v13  ;;  %8760 = vmatpush3.bf16.msra.mxu0 %v8757_v4  ;;  %v14333_v4 = vld [vmem:[#allocation40_spill] sm:$0xff]  ;;  %v14335_v13 = vld [vmem:[#allocation41_spill] sm:$0xff] }
 0x27d   :  { %7799 = vmatprep.mubr.f32.mxu0 %v14312_v6  ;;  %8474 = vmatprep.subr.bf16.mxu1 %v14313_v31  ;;  %v14334_v56 = vand.u32 4294901760, %v14333_v4  ;;  %v14336_v31 = vand.u32 4294901760, %v14335_v13 }
 0x27e   :  { %8762 = vmatprep.subr.bf16.mxu0 %v8761_v36  ;;  %1776 = vmatmul.mubr.f32.gmra.mrb[20].mxu1 %v14314_v20 }
 0x27f   :  { %1878 = vmatprep.mubr.f32.mxu1 %v14276_v52  ;;  %v14320_v52 = vld [vmem:[#allocation32_spill] sm:$0xff] }
 0x280   :  { %8476 = vmatpush3.bf16.msra.mxu1 %v14315_v3  ;;  %8764 = vmatpush3.bf16.msra.mxu0 %v8761_v36  ;;  %v2149_v36 = vsub.f32 %v14333_v4, %v14334_v56  ;;  %v14337_v3 = vld [vmem:[#allocation79_spill] sm:$0xff]  ;;  %v2164_v4 = vand.u32 4294901760, %v2163_v9  ;;  %v2171_v56 = vand.u32 4294901760, %v2170_v46  ;;  %v2191_v46 = vsub.f32 %v14362_v21, %v14363_v40 }
 0x281   :  { %8478 = vmatprep.subr.bf16.mxu1 %v14316_v38  ;;  %8766 = vmatprep.subr.bf16.mxu0 %v8765_v57  ;;  %v2024_v38 = vand.u32 4294901760, %v2023_v5 }
 0x284   :  { %8480 = vmatpush3.bf16.msra.mxu1 %v14317_v19  ;;  %8768 = vmatpush3.bf16.msra.mxu0 %v8765_v57  ;;  %v2156_v57 = vsub.f32 %v14335_v13, %v14336_v31  ;;  %v14351_v13 = vld [vmem:[#allocation98_spill] sm:$0xff]  ;;  %v14352_v31 = vld [vmem:[#allocation48_spill] sm:$0xff] }
 0x285   :  { %8482 = vmatprep.subr.bf16.mxu1 %v14318_v42  ;;  %8770 = vmatprep.subr.bf16.mxu0 %v8769_v34 }
 0x286   :  { %v2157_v51 = vand.u32 4294901760, %v2156_v57 }
 0x288   :  { %8484 = vmatpush3.bf16.msra.mxu1 %v14319_v16  ;;  %8772 = vmatpush3.bf16.msra.mxu0 %v8769_v34  ;;  %v14338_v34 = vld [vmem:[#allocation42_spill] sm:$0xff] }
 0x289   :  { %8486 = vmatprep.subr.bf16.mxu1 %v14320_v52  ;;  %8774 = vmatprep.subr.bf16.mxu0 %v8773_v28  ;;  %v14339_v19 = vand.u32 4294901760, %v14338_v34 }
 0x28b   :  { %v2037_v42 = vsub.f32 %v14338_v34, %v14339_v19 }
 0x28c   :  { %8488 = vmatpush3.bf16.msra.mxu1 %v14321_v27  ;;  %8776 = vmatpush3.bf16.msra.mxu0 %v8773_v28  ;;  %v14340_v28 = vld [vmem:[#allocation43_spill] sm:$0xff]  ;;  %v8533_v27 = vpack.c.bf16 %v2143_v25, %v2136_v23 }
 0x28d   :  { %8490 = vmatprep.subr.bf16.mxu1 %v14322_v15  ;;  %8778 = vmatprep.subr.bf16.mxu0 %v8777_v44  ;;  %v14341_v16 = vand.u32 4294901760, %v14340_v28  ;;  %v2031_v15 = vand.u32 4294901760, %v2030_v58  ;;  %v2038_v54 = vand.u32 4294901760, %v2037_v42  ;;  %v14349_v25 = vld [vmem:[#allocation47_spill] sm:$0xff] }
 0x28e   :  { %v14350_v60 = vand.u32 4294901760, %v14349_v25  ;;  %v14356_v42 = vld [vmem:[#allocation63_spill] sm:$0xff] }
 0x28f   :  { %v2044_v52 = vsub.f32 %v14340_v28, %v14341_v16  ;;  %v8535_v58 = vpack.c.bf16 %v2031_v15, %v2024_v38  ;;  %v8541_v16 = vpack.c.bf16 %v2171_v56, %v2164_v4  ;;  %v14359_v15 = vld [vmem:[#allocation52_spill] sm:$0xff] }
 0x290   :  { %8492 = vmatpush3.bf16.msra.mxu1 %v14327_v47  ;;  %8780 = vmatpush3.bf16.msra.mxu0 %v8777_v44  ;;  %v14342_v44 = vld [vmem:[#allocation86_spill] sm:$0xff]  ;;  %v2150_v47 = vand.u32 4294901760, %v2149_v36  ;;  %v2058_v14 = vsub.f32 %v14349_v25, %v14350_v60  ;;  %v14360_v35 = vand.u32 4294901760, %v14359_v15 }
 0x291   :  { %8494 = vmatprep.subr.bf16.mxu1 %v14330_v2  ;;  %8782 = vmatprep.subr.bf16.mxu0 %v8781_v53  ;;  %v2045_v5 = vand.u32 4294901760, %v2044_v52  ;;  %v14357_v52 = vld [vmem:[#allocation51_spill] sm:$0xff]  ;;  %v14370_v60 = vld [vmem:[#allocation62_spill] sm:$0xff] }
 0x292   :  { %v8537_v36 = vpack.c.bf16 %v2157_v51, %v2150_v47  ;;  %v2059_v28 = vand.u32 4294901760, %v2058_v14  ;;  %v2072_v18 = vsub.f32 %v14359_v15, %v14360_v35  ;;  %v14364_v47 = vld [vmem:[#allocation56_spill] sm:$0xff]  ;;  %v14371_v14 = vand.u32 4294901760, %v14370_v60 }
 0x293   :  { %v14365_v51 = vand.u32 4294901760, %v14364_v47  ;;  %v14379_v35 = vld [vmem:[#allocation72_spill] sm:$0xff] }
 0x294   :  { %8496 = vmatpush3.bf16.msra.mxu1 %v14337_v3  ;;  %8784 = vmatpush3.bf16.msra.mxu0 %v8781_v53  ;;  %v14347_v53 = vld [vmem:[#allocation46_spill] sm:$0xff]  ;;  %v14354_v3 = vld [vmem:[#allocation49_spill] sm:$0xff]  ;;  %v2073_v56 = vand.u32 4294901760, %v2072_v18  ;;  %v14380_v18 = vand.u32 4294901760, %v14379_v35 }
 0x295   :  { %8498 = vmatprep.subr.bf16.mxu1 %v14342_v44  ;;  %8786 = vmatprep.subr.bf16.mxu0 %v8785_v37  ;;  %v14348_v2 = vand.u32 4294901760, %v14347_v53  ;;  %v14355_v34 = vand.u32 4294901760, %v14354_v3  ;;  %v14358_v44 = vand.u32 4294901760, %v14357_v52 }
 0x297   :  { %v2051_v23 = vsub.f32 %v14347_v53, %v14348_v2  ;;  %v2184_v19 = vsub.f32 %v14354_v3, %v14355_v34  ;;  %v14367_v53 = vld [vmem:[#allocation108_spill] sm:$0xff] }
 0x298   :  { %8500 = vmatpush3.bf16.msra.mxu1 %v14256_v32  ;;  %8788 = vmatpush3.bf16.msra.mxu0 %v8785_v37  ;;  %v14353_v32 = vand.u32 4294901760, %v14352_v31  ;;  %v8539_v37 = vpack.c.bf16 %v2045_v5, %v2038_v54  ;;  %v2198_v54 = vsub.f32 %v14364_v47, %v14365_v51  ;;  %v14366_v5 = vld [vmem:[#allocation99_spill] sm:$0xff]  ;;  %v14376_v34 = vld [vmem:[#allocation100_spill] sm:$0xff] }
 0x299   :  { %8534 = vmatprep.subr.bf16.mxu1 %v8533_v27  ;;  %8790 = vmatprep.subr.bf16.mxu0 %v14351_v13  ;;  %v2052_v38 = vand.u32 4294901760, %v2051_v23  ;;  %v2065_v27 = vsub.f32 %v14357_v52, %v14358_v44  ;;  %v2185_v9 = vand.u32 4294901760, %v2184_v19  ;;  %v14377_v44 = vld [vmem:[#allocation71_spill] sm:$0xff] }
 0x29a   :  { %v2177_v57 = vsub.f32 %v14352_v31, %v14353_v32  ;;  %v14374_v32 = vld [vmem:[#allocation67_spill] sm:$0xff]  ;;  %v14378_v15 = vand.u32 4294901760, %v14377_v44 }
 0x29b   :  { %1880 = vmatmul.mubr.f32.vlgmr.msra.gmra.mrb[22].mxu1 %v14308_v24  ;;  %7800 = vmatmul.mubr.f32.vlgmr.msra.gmra.mrb[14].mxu0 %v14356_v42  ;;  %v14361_v24 = vand.u32 4294901760, %v14312_v6  ;;  %v8543_v2 = vpack.c.bf16 %v2059_v28, %v2052_v38  ;;  %v14368_v6 = vld [vmem:[#allocation60_spill] sm:$0xff]  ;;  %v2066_v4 = vand.u32 4294901760, %v2065_v27  ;;  %v2192_v38 = vand.u32 4294901760, %v2191_v46 }
 0x29c   :  { %1885 = vmatprep.mubr.f32.mxu1 %v14310_v59  ;;  %8536 = vmatpush3.bf16.msra.mxu1 %v8535_v58  ;;  %v2178_v59 = vand.u32 4294901760, %v2177_v57  ;;  %v14369_v23 = vand.u32 4294901760, %v14368_v6  ;;  %v2086_v58 = vsub.f32 %v14370_v60, %v14371_v14  ;;  %v14375_v57 = vand.u32 4294901760, %v14374_v32  ;;  %v14382_v46 = vld [vmem:[#allocation76_spill] sm:$0xff] }
 0x29d   :  { %8792 = vmatpush3.bf16.msra.mxu0 %v14351_v13  ;;  %7834 = vmatprep.mubr.f32.mxu0 %v14361_v24  ;;  %v2199_v28 = vand.u32 4294901760, %v2198_v54  ;;  %v2093_v27 = vsub.f32 %v14377_v44, %v14378_v15  ;;  %v2100_v24 = vsub.f32 %v14379_v35, %v14380_v18  ;;  %v8547_v21 = vpack.c.bf16 %v2073_v56, %v2066_v4  ;;  %v14384_v54 = vld [vmem:[#allocation78_spill] sm:$0xff]  ;;  %v14395_v18 = vld [vmem:[#allocation95_spill] sm:$0xff] }
 0x29e   :  { %8538 = vmatprep.subr.bf16.mxu1 %v8537_v36  ;;  %8794 = vmatprep.subr.bf16.mxu0 %v14366_v5  ;;  %v2079_v25 = vsub.f32 %v14368_v6, %v14369_v23  ;;  %v14372_v36 = vld [vmem:[#allocation66_spill] sm:$0xff]  ;;  %v2212_v3 = vsub.f32 %v14374_v32, %v14375_v57  ;;  %v8545_v19 = vpack.c.bf16 %v2185_v9, %v2178_v59  ;;  %v14381_v59 = vld [vmem:[#allocation101_spill] sm:$0xff]  ;;  %v14383_v47 = vand.u32 4294901760, %v14382_v46 }
 0x29f   :  { %1887 = vmatmul.mubr.f32.gmra.mrb[24].mxu1 %v14314_v20  ;;  %v14373_v20 = vand.u32 4294901760, %v14372_v36  ;;  %v8549_v9 = vpack.c.bf16 %v2199_v28, %v2192_v38  ;;  %v14385_v6 = vand.u32 4294901760, %v14384_v54  ;;  %v2094_v60 = vand.u32 4294901760, %v2093_v27  ;;  %v14390_v32 = vld [vmem:[#allocation50_spill] sm:$0xff] }
 0x2a0   :  { %2244 = vmatprep.mubr.f32.mxu1 %v14367_v53  ;;  %8540 = vmatpush3.bf16.msra.mxu1 %v8539_v37  ;;  %v2080_v52 = vand.u32 4294901760, %v2079_v25  ;;  %v2087_v37 = vand.u32 4294901760, %v2086_v58  ;;  %v2213_v40 = vand.u32 4294901760, %v2212_v3  ;;  %v2219_v51 = vsub.f32 %v14382_v46, %v14383_v47  ;;  %v14386_v58 = vld [vmem:[#allocation82_spill] sm:$0xff] }
 0x2a1   :  { %8796 = vmatpush3.bf16.msra.mxu0 %v14366_v5  ;;  %v2205_v31 = vsub.f32 %v14372_v36, %v14373_v20  ;;  %8542 = vmatprep.subr.bf16.mxu1 %v8541_v16  ;;  %v2226_v23 = vsub.f32 %v14384_v54, %v14385_v6  ;;  %v14387_v4 = vand.u32 4294901760, %v14386_v58  ;;  %v14388_v36 = vld [vmem:[#allocation84_spill] sm:$0xff]  ;;  %v14399_v46 = vld [vmem:[#allocation54_spill] sm:$0xff] }
 0x2a2   :  { %8798 = vmatprep.subr.bf16.mxu0 %v14376_v34  ;;  %v8551_v25 = vpack.c.bf16 %v2087_v37, %v2080_v52  ;;  %v14389_v20 = vand.u32 4294901760, %v14388_v36  ;;  %v2220_v57 = vand.u32 4294901760, %v2219_v51  ;;  %v14393_v52 = vld [vmem:[#allocation90_spill] sm:$0xff] }
 0x2a3   :  { %v2206_v16 = vand.u32 4294901760, %v2205_v31  ;;  %v2107_v56 = vsub.f32 %v14386_v58, %v14387_v4  ;;  %v2227_v3 = vand.u32 4294901760, %v2226_v23  ;;  %v14394_v37 = vand.u32 4294901760, %v14393_v52 }
 0x2a4   :  { %8544 = vmatpush3.bf16.msra.mxu1 %v8543_v2  ;;  %v2101_v2 = vand.u32 4294901760, %v2100_v24  ;;  %v2114_v31 = vsub.f32 %v14388_v36, %v14389_v20  ;;  %v14396_v24 = vand.u32 4294901760, %v14395_v18  ;;  %v14402_v4 = vand.u32 4294901760, %v11201_v0  ;;  %v14404_v20 = vld [vmem:[#allocation17_spill] sm:$0xff]  ;;  %v14409_v0 = vld [vmem:[#allocation115_spill] sm:$0xff] }
 0x2a5   :  { %8800 = vmatpush3.bf16.msra.mxu0 %v14376_v34  ;;  %8546 = vmatprep.subr.bf16.mxu1 %v8545_v19  ;;  %v8553_v14 = vpack.c.bf16 %v2213_v40, %v2206_v16  ;;  %v14391_v19 = vld [vmem:[#allocation89_spill] sm:$0xff]  ;;  %v2240_v44 = vsub.f32 %v14393_v52, %v14394_v37  ;;  %v2108_v27 = vand.u32 4294901760, %v2107_v56  ;;  %v14397_v16 = vld [vmem:[#allocation96_spill] sm:$0xff]  ;;  %v8557_v47 = vpack.c.bf16 %v2227_v3, %v2220_v57  ;;  %v14414_v37 = vld [vmem:[#allocation118_spill] sm:$0xff] }
 0x2a6   :  { %8802 = vmatprep.subr.bf16.mxu0 %v14381_v59  ;;  %v14392_v38 = vand.u32 4294901760, %v14391_v19  ;;  %v8555_v15 = vpack.c.bf16 %v2101_v2, %v2094_v60  ;;  %v2115_v35 = vand.u32 4294901760, %v2114_v31  ;;  %v14398_v40 = vand.u32 4294901760, %v14397_v16  ;;  %v14400_v60 = vld [vmem:[#allocation64_spill] sm:$0xff] }
 0x2a7   :  { %v2241_v54 = vand.u32 4294901760, %v2240_v44  ;;  %v14403_v56 = vand.u32 4294901760, %v11217_v41  ;;  %v14405_v31 = vand.u32 4294901760, %v14306_v29  ;;  %v14406_v57 = vand.u32 4294901760, %v14307_v33  ;;  %v14410_v41 = vld [vmem:[#allocation19_spill] sm:$0xff] }
 0x2a8   :  { %8548 = vmatpush3.bf16.msra.mxu1 %v8547_v21  ;;  %v2233_v28 = vsub.f32 %v14391_v19, %v14392_v38  ;;  %v2121_v21 = vsub.f32 %v14395_v18, %v14396_v24  ;;  %v8559_v6 = vpack.c.bf16 %v2115_v35, %v2108_v27  ;;  %v14407_v19 = vld [vmem:[#allocation109_spill] sm:$0xff]  ;;  %v14408_v38 = vand.u32 4294901760, %v14356_v42  ;;  %v14415_v44 = vld [vmem:[#allocation23_spill] sm:$0xff]  ;;  %v14416_v42 = vld [vmem:[#allocation112_spill] sm:$0xff] }
 0x2a9   :  { %8804 = vmatpush3.bf16.msra.mxu0 %v14381_v59  ;;  %8550 = vmatprep.subr.bf16.mxu1 %v8549_v9  ;;  %v2128_v9 = vsub.f32 %v14397_v16, %v14398_v40  ;;  %v8821_v36 = vpack.c.bf16 %v14403_v56, %v14402_v4  ;;  %v8825_v3 = vpack.c.bf16 %v14406_v57, %v14405_v31  ;;  %v14412_v29 = vand.u32 4294901760, %v11275_v48  ;;  %v14418_v27 = vld [vmem:[#allocation25_spill] sm:$0xff]  ;;  %v14421_v48 = vld [vmem:[#allocation27_spill] sm:$0xff] }
 0x2aa   :  { %8806 = vmatprep.subr.bf16.mxu0 %v14390_v32  ;;  %v2234_v51 = vand.u32 4294901760, %v2233_v28  ;;  %v2122_v23 = vand.u32 4294901760, %v2121_v21  ;;  %v14411_v28 = vld [vmem:[#allocation21_spill] sm:$0xff]  ;;  %v14413_v33 = vand.u32 4294901760, %v11280_v1  ;;  %v14419_v35 = vand.u32 4294901760, %v11286_v55 }
 0x2ab   :  { %v14420_v18 = vand.u32 4294901760, %v11289_v45  ;;  %v14422_v1 = vld [vmem:[#allocation29_spill] sm:$0xff]  ;;  %v14423_v21 = vand.u32 4294901760, %v11321_v10  ;;  %v14424_v16 = vand.u32 4294901760, %v11326_v43  ;;  %v8841_v45 = vpack.c.bf16 %v2991_v22, %v2984_v7  ;;  %v14429_v7 = vld [vmem:[#allocation70_spill] sm:$0xff] }
 0x2ac   :  { %8552 = vmatpush3.bf16.msra.mxu1 %v8551_v25  ;;  %v2129_v25 = vand.u32 4294901760, %v2128_v9  ;;  %v8561_v2 = vpack.c.bf16 %v2241_v54, %v2234_v51  ;;  %v8829_v52 = vpack.c.bf16 %v14413_v33, %v14412_v29  ;;  %v14425_v9 = vld [vmem:[#allocation31_spill] sm:$0xff]  ;;  %v14428_v43 = vld [vmem:[#allocation65_spill] sm:$0xff] }
 0x2ad   :  { %8808 = vmatpush3.bf16.msra.mxu0 %v14390_v32  ;;  %8554 = vmatprep.subr.bf16.mxu1 %v8553_v14  ;;  %v14401_v14 = vld [vmem:[#allocation120_spill] sm:$0xff]  ;;  %v8833_v24 = vpack.c.bf16 %v14420_v18, %v14419_v35  ;;  %v8837_v40 = vpack.c.bf16 %v14424_v16, %v14423_v21  ;;  %v14430_v4 = vld [vmem:[#allocation77_spill] sm:$0xff] }
 0x2ae   :  { %8810 = vmatprep.subr.bf16.mxu0 %v14399_v46  ;;  %v8563_v58 = vpack.c.bf16 %v2129_v25, %v2122_v23 }
 0x2b0   :  { %8556 = vmatpush3.bf16.msra.mxu1 %v8555_v15  ;;  %v14417_v15 = vand.u32 4294901760, %v14416_v42 }
 0x2b1   :  { %8812 = vmatpush3.bf16.msra.mxu0 %v14399_v46  ;;  %8558 = vmatprep.subr.bf16.mxu1 %v8557_v47  ;;  %v14426_v47 = vld [vmem:[#allocation33_spill] sm:$0xff] }
 0x2b2   :  { %8814 = vmatprep.subr.bf16.mxu0 %v14400_v60 }
 0x2b4   :  { %8560 = vmatpush3.bf16.msra.mxu1 %v8559_v6  ;;  %v14427_v6 = vld [vmem:[#allocation35_spill] sm:$0xff] }
 0x2b5   :  { %8816 = vmatpush3.bf16.msra.mxu0 %v14400_v60  ;;  %8562 = vmatprep.subr.bf16.mxu1 %v8561_v2 }
 0x2b6   :  { %8818 = vmatprep.subr.bf16.mxu0 %v14401_v14 }
 0x2b8   :  { %8564 = vmatpush3.bf16.msra.mxu1 %v8563_v58 }
 0x2b9   :  { %8820 = vmatpush3.bf16.msra.mxu0 %v14401_v14  ;;  %8598 = vmatprep.subr.bf16.mxu1 %v14404_v20 }
 0x2ba   :  { %8822 = vmatprep.subr.bf16.mxu0 %v8821_v36 }
 0x2bb   :  { %2246 = vmatmul.mubr.f32.vlgmr.msra.gmra.mrb[26].mxu1 %v14407_v19 }
 0x2bc   :  { %7835 = vmatmul.mubr.f32.vlgmr.msra.gmra.mrb[14].mxu0 %v14408_v38  ;;  %2251 = vmatprep.mubr.f32.mxu1 %v14409_v0 }
 0x2bd   :  { %8600 = vmatpush3.bf16.msra.mxu1 %v14410_v41  ;;  %8824 = vmatpush3.bf16.msra.mxu0 %v8821_v36  ;;  %v8849_v36 = vpack.c.bf16 %v3019_v62, %v3012_v11  ;;  %v14437_v11 = vand.u32 4294901760, %v14436_v63  ;;  %v14438_v62 = vld [vmem:[#allocation119_spill] sm:$0xff] }
 0x2be   :  { %7869 = vmatprep.mubr.f32.mxu0 %v11094_v61  ;;  %8602 = vmatprep.subr.bf16.mxu1 %v14411_v28 }
 0x2bf   :  { %8826 = vmatprep.subr.bf16.mxu0 %v8825_v3  ;;  %2253 = vmatmul.mubr.f32.gmra.mrb[28].mxu1 %v14414_v37 }
 0x2c0   :  { %2504 = vmatprep.mubr.f32.mxu1 %v14417_v15 }
 0x2c1   :  { %8604 = vmatpush3.bf16.msra.mxu1 %v14415_v44  ;;  %8828 = vmatpush3.bf16.msra.mxu0 %v8825_v3 }
 0x2c2   :  { %8606 = vmatprep.subr.bf16.mxu1 %v14418_v27  ;;  %8830 = vmatprep.subr.bf16.mxu0 %v8829_v52 }
 0x2c5   :  { %8608 = vmatpush3.bf16.msra.mxu1 %v14421_v48  ;;  %8832 = vmatpush3.bf16.msra.mxu0 %v8829_v52 }
 0x2c6   :  { %8610 = vmatprep.subr.bf16.mxu1 %v14422_v1  ;;  %8834 = vmatprep.subr.bf16.mxu0 %v8833_v24 }
 0x2c9   :  { %8612 = vmatpush3.bf16.msra.mxu1 %v14425_v9  ;;  %8836 = vmatpush3.bf16.msra.mxu0 %v8833_v24 }
 0x2ca   :  { %8614 = vmatprep.subr.bf16.mxu1 %v14426_v47  ;;  %8838 = vmatprep.subr.bf16.mxu0 %v8837_v40  ;;  %v6391_v55 = vpop.f32.mrb[2].mxu1 }
 0x2cb   :  { %v6619_v51 = vpop.f32.mrb[2].mxu0  ;;  %v6392_v54 = vpop.f32.mrb[3].mxu1 }
 0x2cc   :  { %v6393_v10 = vadd.f32 %v6392_v54, %v6391_v55  ;;  %v6620_v23 = vpop.f32.mrb[3].mxu0 }
 0x2cd   :  { %8616 = vmatpush3.bf16.msra.mxu1 %v14427_v6  ;;  %8840 = vmatpush3.bf16.msra.mxu0 %v8837_v40  ;;  %v11676_v25 = vadd.f32 %v6620_v23, %v6619_v51 }
 0x2ce   :  { %8618 = vmatprep.subr.bf16.mxu1 %v14428_v43  ;;  %8842 = vmatprep.subr.bf16.mxu0 %v8841_v45  ;;  %v6394_v2 = vpop.f32.mrb[4].mxu1 }
 0x2cf   :  { %v6395_v26 = vpop.f32.mrb[5].mxu1 }
 0x2d0   :  { %v6396_v22 = vadd.f32 %v6395_v26, %v6394_v2 }
 0x2d1   :  { %8620 = vmatpush3.bf16.msra.mxu1 %v14429_v7  ;;  %8844 = vmatpush3.bf16.msra.mxu0 %v8841_v45  ;;  %v6622_v58 = vpop.f32.mrb[4].mxu0 }
 0x2d2   :  { %8622 = vmatprep.subr.bf16.mxu1 %v14430_v4  ;;  %8846 = vmatprep.subr.bf16.mxu0 %v8845_v30  ;;  %v6623_v56 = vpop.f32.mrb[5].mxu0 }
 0x2d3   :  { %v11688_v31 = vadd.f32 %v6623_v56, %v6622_v58 }
 0x2d5   :  { %8624 = vmatpush3.bf16.msra.mxu1 %v14431_v12  ;;  %8848 = vmatpush3.bf16.msra.mxu0 %v8845_v30 }
 0x2d6   :  { %8626 = vmatprep.subr.bf16.mxu1 %v14432_v8  ;;  %8850 = vmatprep.subr.bf16.mxu0 %v8849_v36 }
 0x2d9   :  { %8628 = vmatpush3.bf16.msra.mxu1 %v14433_v50  ;;  %8852 = vmatpush3.bf16.msra.mxu0 %v8849_v36 }
 0x2da   :  { %8662 = vmatprep.subr.bf16.mxu1 %v14404_v20  ;;  %8854 = vmatprep.subr.bf16.mxu0 %v14351_v13  ;;  %v14439_v20 = vand.u32 4294901760, %v14438_v62  ;;  %v11753_v62 = vld [vmem:[#allocation8 + $0x80] sm:$0xff] }
 0x2dc   :  { %2508 = vmatmul.mubr.f32.vlgmr.msra.gmra.mrb[30].mxu1 %v14435_v39  ;;  %7870 = vmatmul.mubr.f32.vlgmr.msra.gmra.mrb[14].mxu0 %v14309_v17 }
 0x2dd   :  { %2515 = vmatprep.mubr.f32.mxu1 %v14437_v11  ;;  %8664 = vmatpush3.bf16.msra.mxu1 %v14410_v41 }
 0x2de   :  { %8856 = vmatpush3.bf16.msra.mxu0 %v14351_v13  ;;  %7904 = vmatprep.mubr.f32.mxu0 %v11094_v61  ;;  %v14440_v13 = vld [vmem:[#allocation102_spill] sm:$0xff]  ;;  %v9511_v61 = vld [vmem:[#allocation10] sm:$0xff] }
 0x2df   :  { %8666 = vmatprep.subr.bf16.mxu1 %v14411_v28  ;;  %8858 = vmatprep.subr.bf16.mxu0 %v14366_v5  ;;  %v972_v57 = vsub.s32 3, %v14440_v13 }
 0x2e0   :  { %2519 = vmatmul.mubr.f32.gmra.mrb[32].mxu1 %v14439_v20  ;;  %v11755_v20 = vld [vmem:[#allocation8 + $0x88] sm:$0xff] }
 0x2e1   :  { %2796 = vmatprep.mubr.f32.mxu1 %v14367_v53  ;;  %8668 = vmatpush3.bf16.msra.mxu1 %v14415_v44  ;;  %v973_v53 = vrot.slane %v9511_v61, %v972_v57  ;;  %v11757_v57 = vld [vmem:[#allocation8 + $0x180] sm:$0xff]  ;;  %v13654_v61 = vand.u32 4294901760, %v11753_v62 }
 0x2e2   :  { %8860 = vmatpush3.bf16.msra.mxu0 %v14366_v5  ;;  %8670 = vmatprep.subr.bf16.mxu1 %v14418_v27 }
 0x2e3   :  { %8862 = vmatprep.subr.bf16.mxu0 %v14376_v34  ;;  %v1083_v41 = vadd.f32 %v6393_v10, %v973_v53  ;;  %v1098_v42 = vadd.f32 %v6396_v22, %v973_v53  ;;  %v13653_v53 = vand.u32 4294901760, %v11755_v20 }
 0x2e5   :  { %8672 = vmatpush3.bf16.msra.mxu1 %v14421_v48 }
 0x2e6   :  { %8864 = vmatpush3.bf16.msra.mxu0 %v14376_v34  ;;  %8674 = vmatprep.subr.bf16.mxu1 %v14422_v1 }
 0x2e7   :  { %8866 = vmatprep.subr.bf16.mxu0 %v14381_v59 }
 0x2e9   :  { %8676 = vmatpush3.bf16.msra.mxu1 %v14425_v9 }
 0x2ea   :  { %8868 = vmatpush3.bf16.msra.mxu0 %v14381_v59  ;;  %8678 = vmatprep.subr.bf16.mxu1 %v14426_v47  ;;  %v6429_v5 = vpop.f32.mrb[6].mxu1 }
 0x2eb   :  { %8870 = vmatprep.subr.bf16.mxu0 %v14390_v32  ;;  %v6695_v3 = vpop.f32.mrb[6].mxu0  ;;  %v6430_v38 = vpop.f32.mrb[7].mxu1 }
 0x2ec   :  { %v6431_v28 = vadd.f32 %v6430_v38, %v6429_v5  ;;  %v6696_v34 = vpop.f32.mrb[7].mxu0  ;;  %v11761_v5 = vld [vmem:[#allocation8 + $0x188] sm:$0xff] }
 0x2ed   :  { %8680 = vmatpush3.bf16.msra.mxu1 %v14427_v6  ;;  %v11723_v29 = vadd.f32 %v6696_v34, %v6695_v3  ;;  %v13652_v3 = vand.u32 4294901760, %v11757_v57  ;;  %v11766_v38 = vld [vmem:[#allocation8 + $0x8] sm:$0xff]  ;;  %v11771_v34 = vld [vmem:[#allocation8 + $0x100] sm:$0xff] }
 0x2ee   :  { %8872 = vmatpush3.bf16.msra.mxu0 %v14390_v32  ;;  %v1330_v33 = vadd.f32 %v6431_v28, %v1083_v41  ;;  %8682 = vmatprep.subr.bf16.mxu1 %v14428_v43  ;;  %v6432_v59 = vpop.f32.mrb[8].mxu1  ;;  %v13649_v28 = vand.u32 4294901760, %v11766_v38 }
 0x2ef   :  { %8874 = vmatprep.subr.bf16.mxu0 %v14399_v46  ;;  %v6698_v52 = vpop.f32.mrb[8].mxu0  ;;  %v6433_v44 = vpop.f32.mrb[9].mxu1 }
 0x2f0   :  { %v6434_v15 = vadd.f32 %v6433_v44, %v6432_v59  ;;  %v6699_v27 = vpop.f32.mrb[9].mxu0  ;;  %v11779_v59 = vpack.c.bf16 %v13653_v53, %v13654_v61 }
 0x2f1   :  { %8684 = vmatpush3.bf16.msra.mxu1 %v14429_v7  ;;  %v11729_v35 = vadd.f32 %v6699_v27, %v6698_v52  ;;  %v13648_v52 = vand.u32 4294901760, %v11771_v34  ;;  %v11795_v27 = vld [vmem:[#allocation8 + $0x90] sm:$0xff] }
 0x2f2   :  { %8876 = vmatpush3.bf16.msra.mxu0 %v14399_v46  ;;  %v1337_v32 = vadd.f32 %v6434_v15, %v1098_v42  ;;  %8686 = vmatprep.subr.bf16.mxu1 %v14430_v4  ;;  %14441 = vst [vmem:[#allocation36_spill] sm:$0xff] %v11779_v59 }
 0x2f3   :  { %8878 = vmatprep.subr.bf16.mxu0 %v14400_v60 }
 0x2f5   :  { %8688 = vmatpush3.bf16.msra.mxu1 %v14431_v12 }
 0x2f6   :  { %8880 = vmatpush3.bf16.msra.mxu0 %v14400_v60  ;;  %8690 = vmatprep.subr.bf16.mxu1 %v14432_v8 }
 0x2f7   :  { %8882 = vmatprep.subr.bf16.mxu0 %v14401_v14 }
 0x2f9   :  { %8692 = vmatpush3.bf16.msra.mxu1 %v14433_v50 }
 0x2fa   :  { %8884 = vmatpush3.bf16.msra.mxu0 %v14401_v14  ;;  %8886 = vmatprep.subr.bf16.mxu1 %v11779_v59 }
 0x2fc   :  { %2798 = vmatmul.mubr.f32.vlgmr.msra.gmra.mrb[34].mxu1 %v14407_v19 }
 0x2fd   :  { %7905 = vmatmul.mubr.f32.vlgmr.msra.gmra.mrb[14].mxu0 %v14309_v17  ;;  %2803 = vmatprep.mubr.f32.mxu1 %v14409_v0 }
 0x300   :  { %2805 = vmatmul.mubr.f32.gmra.mrb[36].mxu1 %v14414_v37 }
 0x30b   :  { %v6467_v46 = vpop.f32.mrb[10].mxu1 }
 0x30c   :  { %v6771_v18 = vpop.f32.mrb[10].mxu0  ;;  %v6468_v24 = vpop.f32.mrb[11].mxu1 }
 0x30d   :  { %v6469_v60 = vadd.f32 %v6468_v24, %v6467_v46  ;;  %v6772_v48 = vpop.f32.mrb[11].mxu0  ;;  %v11799_v46 = vld [vmem:[#allocation8 + $0x190] sm:$0xff]  ;;  %v13646_v24 = vand.u32 4294901760, %v11795_v27 }
 0x30e   :  { %v11743_v1 = vadd.f32 %v6772_v48, %v6771_v18  ;;  %v11811_v48 = vld [vmem:[#allocation8 + $0x10] sm:$0xff] }
 0x30f   :  { %v1475_v21 = vadd.f32 %v6469_v60, %v1330_v33  ;;  %v6470_v16 = vpop.f32.mrb[12].mxu1  ;;  %v11773_v33 = vld [vmem:[#allocation8 + $0x108] sm:$0xff]  ;;  %v11809_v60 = vld [vmem:[#allocation8 + $0x198] sm:$0xff] }
 0x310   :  { %v6774_v40 = vpop.f32.mrb[12].mxu0  ;;  %v6471_v9 = vpop.f32.mrb[13].mxu1  ;;  %v13647_v44 = vand.u32 4294901760, %v11773_v33 }
 0x311   :  { %v6472_v14 = vadd.f32 %v6471_v9, %v6470_v16  ;;  %v6775_v47 = vpop.f32.mrb[13].mxu0  ;;  %v13643_v9 = vand.u32 4294901760, %v11809_v60 }
 0x312   :  { %v11745_v19 = vadd.f32 %v6775_v47, %v6774_v40  ;;  %v11806_v18 = vpack.c.bf16 %v13647_v44, %v13648_v52  ;;  %v13644_v40 = vand.u32 4294901760, %v11799_v46  ;;  %v11821_v47 = vld [vmem:[#allocation8 + $0x110] sm:$0xff] }
 0x313   :  { %v1484_v17 = vadd.f32 %v6472_v14, %v1337_v32  ;;  %v11797_v32 = vld [vmem:[#allocation8 + $0x98] sm:$0xff]  ;;  %v13642_v14 = vand.u32 4294901760, %v11811_v48 }
 0x314   :  { %14444 = vst [vmem:[#allocation74_spill] sm:$0xff] %v11806_v18  ;;  %v13645_v16 = vand.u32 4294901760, %v11797_v32 }
 0x32c   :  { %v6505_v55 = vpop.f32.mrb[14].mxu1 }
 0x32d   :  { %v6506_v0 = vpop.f32.mrb[15].mxu1 }
 0x32e   :  { %v6507_v45 = vadd.f32 %v6506_v0, %v6505_v55  ;;  %v4591_v0 = vand.u32 4294901760, %v11821_v47 }
 0x330   :  { %v1592_v37 = vadd.f32 %v6507_v45, %v1475_v21  ;;  %v11813_v21 = vld [vmem:[#allocation8 + $0x18] sm:$0xff] }
 0x331   :  { %v6508_v51 = vpop.f32.mrb[16].mxu1  ;;  %v3676_v55 = vand.u32 4294901760, %v11813_v21 }
 0x332   :  { %v6509_v54 = vpop.f32.mrb[17].mxu1 }
 0x333   :  { %v6510_v6 = vadd.f32 %v6509_v54, %v6508_v51  ;;  %v11839_v51 = vpack.c.bf16 %v13643_v9, %v13644_v40  ;;  %v3602_v54 = vld [vmem:[#allocation8 + $0xa0] sm:$0xff]  ;;  %v3604_v40 = vld [vmem:[#allocation8 + $0xb0] sm:$0xff] }
 0x334   :  { %v3733_v52 = vand.u32 4294901760, %v3604_v40 }
 0x335   :  { %v1603_v10 = vadd.f32 %v6510_v6, %v1484_v17  ;;  %v11823_v17 = vld [vmem:[#allocation8 + $0x118] sm:$0xff]  ;;  %14446 = vst [vmem:[#allocation80_spill] sm:$0xff] %v11839_v51  ;;  %v3603_v6 = vld [vmem:[#allocation8 + $0xa8] sm:$0xff] }
 0x336   :  { %v4594_v45 = vand.u32 4294901760, %v11823_v17 }
 0x34d   :  { %v6543_v23 = vpop.f32.mrb[18].mxu1 }
 0x34e   :  { %v6544_v43 = vpop.f32.mrb[19].mxu1 }
 0x34f   :  { %v6545_v2 = vadd.f32 %v6544_v43, %v6543_v23  ;;  %v11843_v23 = vpack.c.bf16 %v3676_v55, %v13642_v14  ;;  %v11845_v43 = vpack.c.bf16 %v4594_v45, %v4591_v0 }
 0x351   :  { %v1771_v30 = vadd.f32 %v6545_v2, %v1592_v37  ;;  %v6546_v26 = vpop.f32.mrb[20].mxu1  ;;  %v11833_v37 = vpack.c.bf16 %v13645_v16, %v13646_v24  ;;  %14447 = vst [vmem:[#allocation107_spill] sm:$0xff] %v11843_v23  ;;  %14448 = vst [vmem:[#allocation114_spill] sm:$0xff] %v11845_v43  ;;  %v3727_v2 = vand.u32 4294901760, %v3602_v54  ;;  %v3605_v16 = vld [vmem:[#allocation8 + $0xb8] sm:$0xff]  ;;  %v3636_v24 = vld [vmem:[#allocation8 + $0x1b0] sm:$0xff] }
 0x352   :  { %v6547_v7 = vpop.f32.mrb[21].mxu1  ;;  %v4651_v53 = vand.u32 4294901760, %v3636_v24 }
 0x353   :  { %v6548_v22 = vadd.f32 %v6547_v7, %v6546_v26  ;;  %14445 = vst [vmem:[#allocation81_spill] sm:$0xff] %v11833_v37  ;;  %v3635_v26 = vld [vmem:[#allocation8 + $0x1a8] sm:$0xff]  ;;  %v3586_v7 = vld [vmem:[#allocation8 + $0x20] sm:$0xff] }
 0x355   :  { %v1778_v58 = vadd.f32 %v6548_v22, %v1603_v10  ;;  %v3634_v10 = vld [vmem:[#allocation8 + $0x1a0] sm:$0xff]  ;;  %v3587_v22 = vld [vmem:[#allocation8 + $0x28] sm:$0xff] }
 0x36e   :  { %v6581_v4 = vpop.f32.mrb[22].mxu1 }
 0x36f   :  { %v6582_v56 = vpop.f32.mrb[23].mxu1 }
 0x370   :  { %v6583_v36 = vadd.f32 %v6582_v56, %v6581_v4  ;;  %v4648_v4 = vand.u32 4294901760, %v3635_v26  ;;  %v3679_v56 = vand.u32 4294901760, %v3586_v7 }
 0x372   :  { %v1882_v12 = vadd.f32 %v6583_v36, %v1771_v30  ;;  %v6584_v8 = vpop.f32.mrb[24].mxu1  ;;  %v3730_v30 = vand.u32 4294901760, %v3603_v6  ;;  %v3682_v36 = vand.u32 4294901760, %v3587_v22 }
 0x373   :  { %v6585_v50 = vpop.f32.mrb[25].mxu1 }
 0x374   :  { %v6586_v49 = vadd.f32 %v6585_v50, %v6584_v8  ;;  %v11748_v39 = vadd.f32 %v11676_v25, %v1882_v12  ;;  %v11764_v25 = vld [vmem:[#allocation8] sm:$0xff]  ;;  %v3619_v8 = vld [vmem:[#allocation8 + $0x128] sm:$0xff]  ;;  %v11851_v50 = vpack.c.bf16 %v3730_v30, %v3727_v2  ;;  %v11855_v9 = vpack.c.bf16 %v3682_v36, %v3679_v56 }
 0x375   :  { %v13650_v41 = vand.u32 4294901760, %v11764_v25  ;;  %v3618_v12 = vld [vmem:[#allocation8 + $0x120] sm:$0xff] }
 0x376   :  { %v1889_v63 = vadd.f32 %v6586_v49, %v1778_v58  ;;  %v4645_v58 = vand.u32 4294901760, %v3634_v10  ;;  %14449 = vst [vmem:[#allocation116_spill] sm:$0xff] %v11851_v50  ;;  %v4597_v49 = vand.u32 4294901760, %v3618_v12  ;;  %14451 = vst [vmem:[#allocation91_spill] sm:$0xff] %v11855_v9 }
 0x377   :  { %v11793_v15 = vpack.c.bf16 %v13649_v28, %v13650_v41  ;;  %v3736_v28 = vand.u32 4294901760, %v3605_v16  ;;  %v3637_v41 = vld [vmem:[#allocation8 + $0x1b8] sm:$0xff] }
 0x378   :  { %v11751_v11 = vadd.f32 %v11688_v31, %v1889_v63  ;;  %v13651_v31 = vand.u32 4294901760, %v11761_v5  ;;  %v4600_v63 = vand.u32 4294901760, %v3619_v8  ;;  %v11853_v14 = vpack.c.bf16 %v4648_v4, %v4645_v58 }
 0x379   :  { %14443 = vst [vmem:[#allocation75_spill] sm:$0xff] %v11793_v15  ;;  %8888 = vmatpush3.bf16.msra.mxu1 %v11793_v15  ;;  %v4654_v61 = vand.u32 4294901760, %v3637_v41 }
 0x37a   :  { %v11787_v42 = vpack.c.bf16 %v13651_v31, %v13652_v3  ;;  %8890 = vmatprep.subr.bf16.mxu1 %v11833_v37  ;;  %14450 = vst [vmem:[#allocation121_spill] sm:$0xff] %v11853_v14  ;;  %v11858_v44 = vpack.c.bf16 %v4600_v63, %v4597_v49  ;;  %v3588_v31 = vld [vmem:[#allocation8 + $0x30] sm:$0xff]  ;;  %v3589_v3 = vld [vmem:[#allocation8 + $0x38] sm:$0xff]  ;;  %v14457_v37 = vand.u32 4294901760, %v11757_v57 }
 0x37c   :  { %14442 = vst [vmem:[#allocation69_spill] sm:$0xff] %v11787_v42  ;;  %9078 = vmatprep.subr.bf16.mxu0 %v11787_v42  ;;  %14452 = vst [vmem:[#allocation106_spill] sm:$0xff] %v11858_v44  ;;  %v11874_v15 = vsub.f32 %v11757_v57, %v14457_v37  ;;  %v14463_v57 = vand.u32 4294901760, %v11771_v34 }
 0x37d   :  { %9080 = vmatpush3.bf16.msra.mxu0 %v11806_v18  ;;  %8892 = vmatpush3.bf16.msra.mxu1 %v11843_v23  ;;  %v14453_v18 = vand.u32 4294901760, %v11753_v62 }
 0x37e   :  { %9082 = vmatprep.subr.bf16.mxu0 %v11839_v51  ;;  %8894 = vmatprep.subr.bf16.mxu1 %v11851_v50  ;;  %v3688_v51 = vand.u32 4294901760, %v3589_v3  ;;  %v14455_v50 = vand.u32 4294901760, %v11755_v20  ;;  %14458 = vst [vmem:[#allocation92_spill] sm:$0xff] %v11874_v15  ;;  %v11895_v37 = vsub.f32 %v11771_v34, %v14463_v57  ;;  %v14469_v34 = vand.u32 4294901760, %v11799_v46 }
 0x37f   :  { %v11864_v42 = vsub.f32 %v11753_v62, %v14453_v18  ;;  %v14461_v62 = vand.u32 4294901760, %v11764_v25 }
 0x380   :  { %v11869_v23 = vsub.f32 %v11755_v20, %v14455_v50  ;;  %v14462_v20 = vand.u32 4294901760, %v11766_v38  ;;  %14464 = vst [vmem:[#allocation16_spill] sm:$0xff] %v11895_v37  ;;  %v11916_v57 = vsub.f32 %v11799_v46, %v14469_v34  ;;  %v11935_v46 = vsub.f32 %v11823_v17, %v4594_v45  ;;  %v3621_v45 = vld [vmem:[#allocation8 + $0x138] sm:$0xff] }
 0x381   :  { %9084 = vmatpush3.bf16.msra.mxu0 %v11845_v43  ;;  %v3685_v43 = vand.u32 4294901760, %v3588_v31  ;;  %14454 = vst [vmem:[#allocation85_spill] sm:$0xff] %v11864_v42  ;;  %8896 = vmatpush3.bf16.msra.mxu1 %v11855_v9  ;;  %v11885_v18 = vsub.f32 %v11764_v25, %v14461_v62  ;;  %v14467_v25 = vand.u32 4294901760, %v11795_v27  ;;  %v11937_v34 = vsub.f32 %v3602_v54, %v3727_v2  ;;  %v3606_v54 = vld [vmem:[#allocation8 + $0xc0] sm:$0xff] }
 0x382   :  { %9086 = vmatprep.subr.bf16.mxu0 %v11853_v14  ;;  %14456 = vst [vmem:[#allocation87_spill] sm:$0xff] %v11869_v23  ;;  %v14459_v14 = vand.u32 4294901760, %v11761_v5  ;;  %v11890_v50 = vsub.f32 %v11766_v38, %v14462_v20  ;;  %v14468_v38 = vand.u32 4294901760, %v11797_v32  ;;  %14470 = vst [vmem:[#allocation58_spill] sm:$0xff] %v11916_v57  ;;  %v11952_v17 = vsub.f32 %v3619_v8, %v4600_v63  ;;  %v3622_v8 = vld [vmem:[#allocation8 + $0x140] sm:$0xff]  ;;  %v3608_v63 = vld [vmem:[#allocation8 + $0xd0] sm:$0xff] }
 0x383   :  { %v11906_v62 = vsub.f32 %v11795_v27, %v14467_v25  ;;  %v11929_v25 = vsub.f32 %v11813_v21, %v3676_v55  ;;  %14475 = vst [vmem:[#allocation110_spill] sm:$0xff] %v11935_v46  ;;  %v11949_v21 = vsub.f32 %v3618_v12, %v4597_v49  ;;  %v11960_v2 = vpack.c.bf16 %v4654_v61, %v4651_v53  ;;  %v3591_v12 = vld [vmem:[#allocation8 + $0x48] sm:$0xff] }
 0x384   :  { %v11879_v59 = vsub.f32 %v11761_v5, %v14459_v14  ;;  %v14465_v5 = vand.u32 4294901760, %v11773_v33  ;;  %v11911_v20 = vsub.f32 %v11797_v32, %v14468_v38  ;;  %v11932_v32 = vsub.f32 %v11821_v47, %v4591_v0  ;;  %14479 = vst [vmem:[#allocation111_spill] sm:$0xff] %v11952_v17  ;;  %v3620_v0 = vld [vmem:[#allocation8 + $0x130] sm:$0xff] }
 0x385   :  { %9088 = vmatpush3.bf16.msra.mxu0 %v11858_v44  ;;  %14478 = vst [vmem:[#allocation20_spill] sm:$0xff] %v11949_v21  ;;  %14481 = vst [vmem:[#allocation24_spill] sm:$0xff] %v11960_v2  ;;  %v3612_v17 = vld [vmem:[#allocation8 + $0xf0] sm:$0xff]  ;;  %v3613_v21 = vld [vmem:[#allocation8 + $0xf8] sm:$0xff] }
 0x386   :  { %14460 = vst [vmem:[#allocation93_spill] sm:$0xff] %v11879_v59  ;;  %v11900_v14 = vsub.f32 %v11773_v33, %v14465_v5  ;;  %v14471_v33 = vand.u32 4294901760, %v11809_v60  ;;  %14474 = vst [vmem:[#allocation53_spill] sm:$0xff] %v11932_v32  ;;  %9090 = vmatprep.subr.bf16.mxu0 %v11960_v2  ;;  %v3629_v32 = vld [vmem:[#allocation8 + $0x178] sm:$0xff] }
 0x388   :  { %14466 = vst [vmem:[#allocation59_spill] sm:$0xff] %v11900_v14  ;;  %v11921_v5 = vsub.f32 %v11809_v60, %v14471_v33  ;;  %v14473_v14 = vand.u32 4294901760, %v11811_v48  ;;  %v11939_v60 = vsub.f32 %v3603_v6, %v3730_v30  ;;  %v11941_v33 = vsub.f32 %v3634_v10, %v4645_v58 }
 0x389   :  { %v11958_v10 = vsub.f32 %v3605_v16, %v3736_v28  ;;  %v11962_v30 = vsub.f32 %v3636_v24, %v4651_v53  ;;  %v4603_v53 = vand.u32 4294901760, %v3620_v0 }
 0x38a   :  { %14472 = vst [vmem:[#allocation105_spill] sm:$0xff] %v11921_v5  ;;  %v11926_v27 = vsub.f32 %v11811_v48, %v14473_v14  ;;  %14476 = vst [vmem:[#allocation18_spill] sm:$0xff] %v11941_v33  ;;  %v11943_v5 = vsub.f32 %v3635_v26, %v4648_v4  ;;  %v11945_v48 = vsub.f32 %v3586_v7, %v3679_v56  ;;  %v3638_v7 = vld [vmem:[#allocation8 + $0x1c0] sm:$0xff] }
 0x38b   :  { %v11947_v14 = vsub.f32 %v3587_v22, %v3682_v36  ;;  %14482 = vst [vmem:[#allocation26_spill] sm:$0xff] %v11962_v30  ;;  %v11964_v26 = vsub.f32 %v3637_v41, %v4654_v61  ;;  %v3639_v22 = vld [vmem:[#allocation8 + $0x1c8] sm:$0xff]  ;;  %v4606_v61 = vand.u32 4294901760, %v3621_v45  ;;  %v3739_v41 = vand.u32 4294901760, %v3606_v54  ;;  %v3590_v36 = vld [vmem:[#allocation8 + $0x40] sm:$0xff] }
 0x38c   :  { %14477 = vst [vmem:[#allocation97_spill] sm:$0xff] %v11943_v5  ;;  %v4660_v56 = vand.u32 4294901760, %v3639_v22  ;;  %v3627_v30 = vld [vmem:[#allocation8 + $0x168] sm:$0xff] }
 0x38d   :  { %14483 = vst [vmem:[#allocation28_spill] sm:$0xff] %v11964_v26  ;;  %v11979_v49 = vpack.c.bf16 %v4606_v61, %v4603_v53  ;;  %v3626_v26 = vld [vmem:[#allocation8 + $0x160] sm:$0xff] }
 0x38e   :  { %v6657_v9 = vpop.f32.mrb[26].mxu1 }
 0x38f   :  { %v6658_v44 = vpop.f32.mrb[27].mxu1  ;;  %14487 = vst [vmem:[#allocation37_spill] sm:$0xff] %v11979_v49  ;;  %9092 = vmatpush3.bf16.msra.mxu0 %v11979_v49  ;;  %v3625_v49 = vld [vmem:[#allocation8 + $0x158] sm:$0xff] }
 0x390   :  { %v6659_v38 = vadd.f32 %v6658_v44, %v6657_v9  ;;  %v11954_v44 = vpack.c.bf16 %v3736_v28, %v3733_v52  ;;  %v11956_v9 = vsub.f32 %v3604_v40, %v3733_v52  ;;  %v11970_v52 = vpack.c.bf16 %v3688_v51, %v3685_v43 }
 0x391   :  { %v11972_v40 = vsub.f32 %v3588_v31, %v3685_v43  ;;  %v11975_v28 = vsub.f32 %v3589_v3, %v3688_v51  ;;  %v11981_v31 = vsub.f32 %v3620_v0, %v4603_v53  ;;  %v11983_v43 = vsub.f32 %v3621_v45, %v4606_v61  ;;  %v3623_v51 = vld [vmem:[#allocation8 + $0x148] sm:$0xff] }
 0x392   :  { %v2248_v47 = vadd.f32 %v6659_v38, %v11748_v39  ;;  %v6660_v55 = vpop.f32.mrb[28].mxu1  ;;  %14480 = vst [vmem:[#allocation22_spill] sm:$0xff] %v11954_v44  ;;  %v3607_v39 = vld [vmem:[#allocation8 + $0xc8] sm:$0xff]  ;;  %8898 = vmatprep.subr.bf16.mxu1 %v11954_v44  ;;  %14484 = vst [vmem:[#allocation30_spill] sm:$0xff] %v11970_v52  ;;  %v11985_v3 = vsub.f32 %v3606_v54, %v3739_v41  ;;  %v3609_v38 = vld [vmem:[#allocation8 + $0xd8] sm:$0xff]  ;;  %v11999_v45 = vsub.f32 %v3639_v22, %v4660_v56 }
 0x393   :  { %v6661_v6 = vpop.f32.mrb[29].mxu1  ;;  %14485 = vst [vmem:[#allocation32_spill] sm:$0xff] %v11972_v40  ;;  %14486 = vst [vmem:[#allocation34_spill] sm:$0xff] %v11975_v28  ;;  %8900 = vmatpush3.bf16.msra.mxu1 %v11970_v52  ;;  %v3742_v16 = vand.u32 4294901760, %v3607_v39  ;;  %v3691_v54 = vand.u32 4294901760, %v3590_v36  ;;  %v3694_v53 = vand.u32 4294901760, %v3591_v12 }
 0x394   :  { %v6662_v58 = vadd.f32 %v6661_v6, %v6660_v55  ;;  %v11967_v4 = vadd.f32 %v11723_v29, %v2248_v47  ;;  %v4657_v29 = vand.u32 4294901760, %v3638_v7  ;;  %14488 = vst [vmem:[#allocation57_spill] sm:$0xff] %v11981_v31  ;;  %14489 = vst [vmem:[#allocation61_spill] sm:$0xff] %v11983_v43  ;;  %v4612_v61 = vand.u32 4294901760, %v3623_v51  ;;  %v3611_v43 = vld [vmem:[#allocation8 + $0xe8] sm:$0xff] }
 0x395   :  { %14490 = vst [vmem:[#allocation68_spill] sm:$0xff] %v11985_v3  ;;  %v11990_v47 = vpack.c.bf16 %v3742_v16, %v3739_v41  ;;  %v11992_v55 = vsub.f32 %v3607_v39, %v3742_v16  ;;  %14495 = vst [vmem:[#allocation41_spill] sm:$0xff] %v11999_v45  ;;  %v3745_v41 = vand.u32 4294901760, %v3608_v63  ;;  %v3748_v39 = vand.u32 4294901760, %v3609_v38  ;;  %v3592_v16 = vld [vmem:[#allocation8 + $0x50] sm:$0xff] }
 0x396   :  { %v2255_v24 = vadd.f32 %v6662_v58, %v11751_v11  ;;  %v11994_v6 = vpack.c.bf16 %v4660_v56, %v4657_v29  ;;  %v3640_v58 = vld [vmem:[#allocation8 + $0x1d0] sm:$0xff]  ;;  %v11997_v0 = vsub.f32 %v3638_v7, %v4657_v29  ;;  %v12003_v2 = vpack.c.bf16 %v3694_v53, %v3691_v54  ;;  %v3593_v29 = vld [vmem:[#allocation8 + $0x58] sm:$0xff] }
 0x397   :  { %14491 = vst [vmem:[#allocation38_spill] sm:$0xff] %v11990_v47  ;;  %14492 = vst [vmem:[#allocation73_spill] sm:$0xff] %v11992_v55  ;;  %8902 = vmatprep.subr.bf16.mxu1 %v11990_v47  ;;  %v12005_v52 = vsub.f32 %v3590_v36, %v3691_v54  ;;  %v12007_v7 = vsub.f32 %v3591_v12, %v3694_v53  ;;  %v4663_v22 = vand.u32 4294901760, %v3640_v58  ;;  %v3624_v56 = vld [vmem:[#allocation8 + $0x150] sm:$0xff] }
 0x398   :  { %v11988_v11 = vadd.f32 %v11729_v35, %v2255_v24  ;;  %14493 = vst [vmem:[#allocation39_spill] sm:$0xff] %v11994_v6  ;;  %14494 = vst [vmem:[#allocation40_spill] sm:$0xff] %v11997_v0  ;;  %9094 = vmatprep.subr.bf16.mxu0 %v11994_v6  ;;  %v4609_v35 = vand.u32 4294901760, %v3622_v8  ;;  %v3641_v24 = vld [vmem:[#allocation8 + $0x1d8] sm:$0xff]  ;;  %v12013_v6 = vsub.f32 %v3623_v51, %v4612_v61  ;;  %v3610_v0 = vld [vmem:[#allocation8 + $0xe0] sm:$0xff]  ;;  %8904 = vmatpush3.bf16.msra.mxu1 %v12003_v2 }
 0x399   :  { %14496 = vst [vmem:[#allocation79_spill] sm:$0xff] %v12003_v2  ;;  %14497 = vst [vmem:[#allocation42_spill] sm:$0xff] %v12005_v52  ;;  %v12015_v45 = vpack.c.bf16 %v3748_v39, %v3745_v41  ;;  %v12018_v36 = vsub.f32 %v3608_v63, %v3745_v41  ;;  %v12020_v12 = vsub.f32 %v3609_v38, %v3748_v39  ;;  %v4666_v54 = vand.u32 4294901760, %v3641_v24  ;;  %v3643_v38 = vld [vmem:[#allocation8 + $0x1e8] sm:$0xff]  ;;  %v3594_v39 = vld [vmem:[#allocation8 + $0x60] sm:$0xff] }
 0x39a   :  { %14498 = vst [vmem:[#allocation43_spill] sm:$0xff] %v12007_v7  ;;  %v12009_v44 = vpack.c.bf16 %v4612_v61, %v4609_v35  ;;  %v12011_v47 = vsub.f32 %v3622_v8, %v4609_v35  ;;  %14501 = vst [vmem:[#allocation45_spill] sm:$0xff] %v12013_v6  ;;  %v12022_v53 = vsub.f32 %v3640_v58, %v4663_v22  ;;  %v3697_v8 = vand.u32 4294901760, %v3592_v16  ;;  %v3642_v6 = vld [vmem:[#allocation8 + $0x1e0] sm:$0xff]  ;;  %v3595_v2 = vld [vmem:[#allocation8 + $0x68] sm:$0xff] }
 0x39b   :  { %14502 = vst [vmem:[#allocation46_spill] sm:$0xff] %v12015_v45  ;;  %14503 = vst [vmem:[#allocation47_spill] sm:$0xff] %v12018_v36  ;;  %8906 = vmatprep.subr.bf16.mxu1 %v12015_v45  ;;  %v3700_v51 = vand.u32 4294901760, %v3593_v29  ;;  %v4615_v35 = vand.u32 4294901760, %v3624_v56  ;;  %v4618_v61 = vand.u32 4294901760, %v3625_v49  ;;  %v12028_v31 = vsub.f32 %v3641_v24, %v4666_v54 }
 0x39c   :  { %14499 = vst [vmem:[#allocation86_spill] sm:$0xff] %v12009_v44  ;;  %14500 = vst [vmem:[#allocation44_spill] sm:$0xff] %v12011_v47  ;;  %9096 = vmatpush3.bf16.msra.mxu0 %v12009_v44  ;;  %v12026_v47 = vpack.c.bf16 %v4666_v54, %v4663_v22  ;;  %v3751_v63 = vand.u32 4294901760, %v3610_v0  ;;  %v3754_v41 = vand.u32 4294901760, %v3611_v43 }
 0x39d   :  { %14504 = vst [vmem:[#allocation98_spill] sm:$0xff] %v12020_v12  ;;  %14505 = vst [vmem:[#allocation48_spill] sm:$0xff] %v12022_v53  ;;  %v12030_v58 = vpack.c.bf16 %v3700_v51, %v3697_v8  ;;  %v12032_v53 = vsub.f32 %v3592_v16, %v3697_v8  ;;  %v12034_v44 = vsub.f32 %v3593_v29, %v3700_v51  ;;  %v4669_v29 = vand.u32 4294901760, %v3642_v6 }
 0x39e   :  { %14506 = vst [vmem:[#allocation49_spill] sm:$0xff] %v12026_v47  ;;  %14507 = vst [vmem:[#allocation63_spill] sm:$0xff] %v12028_v31  ;;  %v12036_v45 = vpack.c.bf16 %v4618_v61, %v4615_v35  ;;  %9098 = vmatprep.subr.bf16.mxu0 %v12026_v47  ;;  %v12039_v24 = vsub.f32 %v3624_v56, %v4615_v35  ;;  %v12041_v22 = vsub.f32 %v3625_v49, %v4618_v61  ;;  %v3644_v47 = vld [vmem:[#allocation8 + $0x1f0] sm:$0xff] }
 0x39f   :  { %14508 = vst [vmem:[#allocation51_spill] sm:$0xff] %v12030_v58  ;;  %14509 = vst [vmem:[#allocation52_spill] sm:$0xff] %v12032_v53  ;;  %v12043_v54 = vpack.c.bf16 %v3754_v41, %v3751_v63  ;;  %v12045_v31 = vsub.f32 %v3610_v0, %v3751_v63  ;;  %8908 = vmatpush3.bf16.msra.mxu1 %v12030_v58  ;;  %v12049_v16 = vsub.f32 %v3611_v43, %v3754_v41  ;;  %v3596_v41 = vld [vmem:[#allocation8 + $0x70] sm:$0xff] }
 0x3a0   :  { %14510 = vst [vmem:[#allocation55_spill] sm:$0xff] %v12034_v44  ;;  %14511 = vst [vmem:[#allocation56_spill] sm:$0xff] %v12036_v45  ;;  %9100 = vmatpush3.bf16.msra.mxu0 %v12036_v45  ;;  %v4672_v8 = vand.u32 4294901760, %v3643_v38  ;;  %v3703_v51 = vand.u32 4294901760, %v3594_v39  ;;  %v3706_v56 = vand.u32 4294901760, %v3595_v2  ;;  %v4621_v35 = vand.u32 4294901760, %v3626_v26 }
 0x3a1   :  { %14512 = vst [vmem:[#allocation99_spill] sm:$0xff] %v12039_v24  ;;  %14513 = vst [vmem:[#allocation108_spill] sm:$0xff] %v12041_v22  ;;  %8910 = vmatprep.subr.bf16.mxu1 %v12043_v54  ;;  %v4624_v49 = vand.u32 4294901760, %v3627_v30  ;;  %v3757_v61 = vand.u32 4294901760, %v3612_v17  ;;  %v3645_v22 = vld [vmem:[#allocation8 + $0x1f8] sm:$0xff]  ;;  %v12054_v63 = vsub.f32 %v3642_v6, %v4669_v29  ;;  %v3628_v24 = vld [vmem:[#allocation8 + $0x170] sm:$0xff] }
 0x3a2   :  { %14514 = vst [vmem:[#allocation60_spill] sm:$0xff] %v12043_v54  ;;  %14515 = vst [vmem:[#allocation62_spill] sm:$0xff] %v12045_v31  ;;  %v12052_v0 = vpack.c.bf16 %v4672_v8, %v4669_v29  ;;  %v12056_v58 = vsub.f32 %v3643_v38, %v4672_v8  ;;  %v12058_v43 = vsub.f32 %v3594_v39, %v3703_v51  ;;  %v3597_v45 = vld [vmem:[#allocation8 + $0x78] sm:$0xff]  ;;  %v3760_v38 = vand.u32 4294901760, %v3613_v21 }
 0x3a3   :  { %14516 = vst [vmem:[#allocation66_spill] sm:$0xff] %v12049_v16  ;;  %14518 = vst [vmem:[#allocation100_spill] sm:$0xff] %v12054_v63  ;;  %v12060_v5 = vpack.c.bf16 %v3706_v56, %v3703_v51  ;;  %v12062_v54 = vsub.f32 %v3595_v2, %v3706_v56  ;;  %v12064_v33 = vpack.c.bf16 %v4624_v49, %v4621_v35  ;;  %v4675_v39 = vand.u32 4294901760, %v3644_v47 }
 0x3a4   :  { %14517 = vst [vmem:[#allocation67_spill] sm:$0xff] %v12052_v0  ;;  %14519 = vst [vmem:[#allocation71_spill] sm:$0xff] %v12056_v58  ;;  %v12066_v46 = vsub.f32 %v3626_v26, %v4621_v35  ;;  %9102 = vmatprep.subr.bf16.mxu0 %v12052_v0  ;;  %v12069_v6 = vsub.f32 %v3627_v30, %v4624_v49  ;;  %v12071_v29 = vsub.f32 %v3612_v17, %v3757_v61 }
 0x3a5   :  { %14520 = vst [vmem:[#allocation72_spill] sm:$0xff] %v12058_v43  ;;  %14521 = vst [vmem:[#allocation101_spill] sm:$0xff] %v12060_v5  ;;  %8912 = vmatpush3.bf16.msra.mxu1 %v12060_v5  ;;  %9104 = vmatpush3.bf16.msra.mxu0 %v12064_v33  ;;  %v4678_v8 = vand.u32 4294901760, %v3645_v22  ;;  %v3709_v2 = vand.u32 4294901760, %v3596_v41  ;;  %v3712_v51 = vand.u32 4294901760, %v3597_v45  ;;  %v4627_v56 = vand.u32 4294901760, %v3628_v24 }
 0x3a6   :  { %14522 = vst [vmem:[#allocation76_spill] sm:$0xff] %v12062_v54  ;;  %14523 = vst [vmem:[#allocation78_spill] sm:$0xff] %v12064_v33  ;;  %v12075_v58 = vpack.c.bf16 %v3760_v38, %v3757_v61  ;;  %v12077_v26 = vsub.f32 %v3613_v21, %v3760_v38  ;;  %v12079_v35 = vsub.f32 %v3644_v47, %v4675_v39  ;;  %v4630_v30 = vand.u32 4294901760, %v3629_v32 }
 0x3a7   :  { %14524 = vst [vmem:[#allocation82_spill] sm:$0xff] %v12066_v46  ;;  %14525 = vst [vmem:[#allocation84_spill] sm:$0xff] %v12069_v6  ;;  %v12081_v49 = vpack.c.bf16 %v4678_v8, %v4675_v39  ;;  %v12083_v17 = vsub.f32 %v3645_v22, %v4678_v8  ;;  %v12085_v0 = vpack.c.bf16 %v3712_v51, %v3709_v2  ;;  %v13733_v47 = vand.u32 4294901760, %v11864_v42 }
 0x3a8   :  { %14526 = vst [vmem:[#allocation50_spill] sm:$0xff] %v12071_v29  ;;  %14527 = vst [vmem:[#allocation89_spill] sm:$0xff] %v12075_v58  ;;  %v12087_v5 = vsub.f32 %v3596_v41, %v3709_v2  ;;  %8914 = vmatprep.subr.bf16.mxu1 %v12075_v58  ;;  %v12090_v33 = vsub.f32 %v3597_v45, %v3712_v51  ;;  %v12092_v6 = vpack.c.bf16 %v4630_v30, %v4627_v56 }
 0x3a9   :  { %14528 = vst [vmem:[#allocation90_spill] sm:$0xff] %v12077_v26  ;;  %14529 = vst [vmem:[#allocation95_spill] sm:$0xff] %v12079_v35  ;;  %v12094_v61 = vsub.f32 %v3628_v24, %v4627_v56  ;;  %v12096_v21 = vsub.f32 %v3629_v32, %v4630_v30  ;;  %9106 = vmatprep.subr.bf16.mxu0 %v12081_v49  ;;  %8916 = vmatpush3.bf16.msra.mxu1 %v12085_v0  ;;  %v13734_v22 = vand.u32 4294901760, %v11869_v23 }
 0x3aa   :  { %14530 = vst [vmem:[#allocation96_spill] sm:$0xff] %v12081_v49  ;;  %14531 = vst [vmem:[#allocation54_spill] sm:$0xff] %v12083_v17  ;;  %v9141_v41 = vpack.c.bf16 %v11879_v59, %v11874_v15  ;;  %v13741_v45 = vand.u32 4294901760, %v11885_v18  ;;  %9108 = vmatpush3.bf16.msra.mxu0 %v12092_v6  ;;  %v13746_v24 = vand.u32 4294901760, %v11890_v50  ;;  %v13749_v32 = vand.u32 4294901760, %v11906_v62 }
 0x3ab   :  { %14532 = vst [vmem:[#allocation64_spill] sm:$0xff] %v12085_v0  ;;  %14533 = vst [vmem:[#allocation120_spill] sm:$0xff] %v12087_v5  ;;  %v13750_v38 = vand.u32 4294901760, %v11911_v20  ;;  %v3909_v39 = vsub.f32 %v11864_v42, %v13733_v47  ;;  %v3916_v8 = vsub.f32 %v11869_v23, %v13734_v22  ;;  %v13766_v22 = vand.u32 4294901760, %v11926_v27 }
 0x3ac   :  { %14534 = vst [vmem:[#allocation17_spill] sm:$0xff] %v12090_v33  ;;  %14535 = vst [vmem:[#allocation109_spill] sm:$0xff] %v12092_v6  ;;  %9142 = vmatprep.subr.bf16.mxu0 %v9141_v41  ;;  %v3797_v2 = vsub.f32 %v11885_v18, %v13741_v45  ;;  %v3804_v56 = vsub.f32 %v11890_v50, %v13746_v24  ;;  %v3923_v30 = vsub.f32 %v11906_v62, %v13749_v32 }
 0x3ad   :  { %14536 = vst [vmem:[#allocation115_spill] sm:$0xff] %v12094_v61  ;;  %14537 = vst [vmem:[#allocation19_spill] sm:$0xff] %v12096_v21  ;;  %v3930_v47 = vsub.f32 %v11911_v20, %v13750_v38  ;;  %v3910_v6 = vand.u32 4294901760, %v3909_v39  ;;  %v3917_v49 = vand.u32 4294901760, %v3916_v8  ;;  %v13763_v45 = vand.u32 4294901760, %v11929_v25 }
 0x3ae   :  { %v3798_v0 = vand.u32 4294901760, %v3797_v2  ;;  %v3805_v21 = vand.u32 4294901760, %v3804_v56  ;;  %v3924_v61 = vand.u32 4294901760, %v3923_v30  ;;  %v3811_v32 = vsub.f32 %v11926_v27, %v13766_v22 }
 0x3af   :  { %v6733_v51 = vpop.f32.mrb[30].mxu1  ;;  %v3931_v24 = vand.u32 4294901760, %v3930_v47  ;;  %v8917_v59 = vpack.c.bf16 %v3917_v49, %v3910_v6  ;;  %v3818_v38 = vsub.f32 %v11929_v25, %v13763_v45  ;;  %v13757_v47 = vand.u32 4294901760, %v11939_v60 }
 0x3b0   :  { %v6734_v41 = vpop.f32.mrb[31].mxu1  ;;  %v12136_v8 = vpack.c.bf16 %v3805_v21, %v3798_v0  ;;  %v3812_v6 = vand.u32 4294901760, %v3811_v32 }
 0x3b1   :  { %v6735_v58 = vadd.f32 %v6734_v41, %v6733_v51  ;;  %v12138_v2 = vpack.c.bf16 %v3931_v24, %v3924_v61  ;;  %v13760_v51 = vand.u32 4294901760, %v11937_v34  ;;  %8918 = vmatprep.subr.bf16.mxu1 %v8917_v59  ;;  %v3819_v49 = vand.u32 4294901760, %v3818_v38 }
 0x3b2   :  { %v3944_v59 = vsub.f32 %v11939_v60, %v13757_v47  ;;  %v13753_v61 = vand.u32 4294901760, %v11947_v14 }
 0x3b3   :  { %v2510_v15 = vadd.f32 %v6735_v58, %v11967_v4  ;;  %v6736_v39 = vpop.f32.mrb[32].mxu1  ;;  %v3937_v4 = vsub.f32 %v11937_v34, %v13760_v51  ;;  %v13754_v58 = vand.u32 4294901760, %v11945_v48  ;;  %v12149_v0 = vpack.c.bf16 %v3819_v49, %v3812_v6 }
 0x3b4   :  { %v6737_v56 = vpop.f32.mrb[33].mxu1  ;;  %v3945_v32 = vand.u32 4294901760, %v3944_v59  ;;  %v3832_v38 = vsub.f32 %v11947_v14, %v13753_v61  ;;  %v13758_v49 = vand.u32 4294901760, %v11972_v40  ;;  %v13759_v61 = vand.u32 4294901760, %v11975_v28 }
 0x3b5   :  { %v6738_v30 = vadd.f32 %v6737_v56, %v6736_v39  ;;  %v12143_v41 = vadd.f32 %v11743_v1, %v2510_v15  ;;  %v3938_v24 = vand.u32 4294901760, %v3937_v4  ;;  %v3825_v1 = vsub.f32 %v11945_v48, %v13754_v58 }
 0x3b6   :  { %v13755_v15 = vand.u32 4294901760, %v11956_v9  ;;  %v13756_v39 = vand.u32 4294901760, %v11958_v10  ;;  %v3833_v4 = vand.u32 4294901760, %v3832_v38 }
 0x3b7   :  { %v2521_v21 = vadd.f32 %v6738_v30, %v11988_v11  ;;  %v3826_v6 = vand.u32 4294901760, %v3825_v1  ;;  %v12171_v30 = vpack.c.bf16 %v3945_v32, %v3938_v24  ;;  %v3846_v24 = vsub.f32 %v11975_v28, %v13759_v61 }
 0x3b8   :  { %v3951_v11 = vsub.f32 %v11956_v9, %v13755_v15  ;;  %v3958_v59 = vsub.f32 %v11958_v10, %v13756_v39  ;;  %v13762_v32 = vand.u32 4294901760, %v11992_v55  ;;  %v13764_v39 = vand.u32 4294901760, %v12005_v52 }
 0x3b9   :  { %v12165_v56 = vadd.f32 %v11745_v19, %v2521_v21  ;;  %v3839_v19 = vsub.f32 %v11972_v40, %v13758_v49  ;;  %v13761_v21 = vand.u32 4294901760, %v11985_v3  ;;  %v12181_v1 = vpack.c.bf16 %v3833_v4, %v3826_v6 }
 0x3ba   :  { %v3952_v58 = vand.u32 4294901760, %v3951_v11  ;;  %v3959_v15 = vand.u32 4294901760, %v3958_v59  ;;  %v3847_v49 = vand.u32 4294901760, %v3846_v24  ;;  %v3972_v6 = vsub.f32 %v11992_v55, %v13762_v32 }
 0x3bb   :  { %v3840_v38 = vand.u32 4294901760, %v3839_v19  ;;  %v3965_v11 = vsub.f32 %v11985_v3, %v13761_v21  ;;  %v13765_v4 = vand.u32 4294901760, %v12007_v7  ;;  %v3853_v19 = vsub.f32 %v12005_v52, %v13764_v39 }
 0x3bc   :  { %v12191_v47 = vpack.c.bf16 %v3959_v15, %v3952_v58  ;;  %v13767_v61 = vand.u32 4294901760, %v12018_v36  ;;  %v3973_v21 = vand.u32 4294901760, %v3972_v6  ;;  %v13768_v15 = vand.u32 4294901760, %v12020_v12 }
 0x3bd   :  { %v3966_v59 = vand.u32 4294901760, %v3965_v11  ;;  %v12201_v51 = vpack.c.bf16 %v3847_v49, %v3840_v38  ;;  %v3860_v58 = vsub.f32 %v12007_v7, %v13765_v4  ;;  %v3854_v24 = vand.u32 4294901760, %v3853_v19 }
 0x3be   :  { %v3979_v11 = vsub.f32 %v12018_v36, %v13767_v61  ;;  %v13770_v32 = vand.u32 4294901760, %v12032_v53  ;;  %v3986_v49 = vsub.f32 %v12020_v12, %v13768_v15  ;;  %v13771_v38 = vand.u32 4294901760, %v12034_v44 }
 0x3bf   :  { %v12211_v45 = vpack.c.bf16 %v3973_v21, %v3966_v59  ;;  %v3861_v39 = vand.u32 4294901760, %v3860_v58  ;;  %v13773_v4 = vand.u32 4294901760, %v12045_v31  ;;  %v13774_v59 = vand.u32 4294901760, %v12049_v16 }
 0x3c0   :  { %v3980_v6 = vand.u32 4294901760, %v3979_v11  ;;  %v3867_v19 = vsub.f32 %v12032_v53, %v13770_v32  ;;  %v3987_v61 = vand.u32 4294901760, %v3986_v49  ;;  %v3874_v21 = vsub.f32 %v12034_v44, %v13771_v38  ;;  %v12355_v53 = vld [vmem:[#allocation8 + $0x240] sm:$0xff] }
 0x3c1   :  { %v12221_v22 = vpack.c.bf16 %v3861_v39, %v3854_v24  ;;  %v3993_v11 = vsub.f32 %v12045_v31, %v13773_v4  ;;  %v13776_v15 = vand.u32 4294901760, %v12058_v43  ;;  %v4000_v39 = vsub.f32 %v12049_v16, %v13774_v59  ;;  %14550 = vst [vmem:[#allocation77_spill] sm:$0xff] %v12355_v53 }
 0x3c2   :  { %v3868_v58 = vand.u32 4294901760, %v3867_v19  ;;  %v12231_v17 = vpack.c.bf16 %v3987_v61, %v3980_v6  ;;  %v3875_v32 = vand.u32 4294901760, %v3874_v21  ;;  %v13777_v24 = vand.u32 4294901760, %v12062_v54 }
 0x3c3   :  { %v3994_v49 = vand.u32 4294901760, %v3993_v11  ;;  %v3881_v19 = vsub.f32 %v12058_v43, %v13776_v15  ;;  %v13778_v38 = vand.u32 4294901760, %v12071_v29  ;;  %v4001_v4 = vand.u32 4294901760, %v4000_v39 }
 0x3c4   :  { %v12241_v35 = vpack.c.bf16 %v3875_v32, %v3868_v58  ;;  %v3888_v61 = vsub.f32 %v12062_v54, %v13777_v24  ;;  %v13779_v6 = vand.u32 4294901760, %v12077_v26  ;;  %v13780_v59 = vand.u32 4294901760, %v12087_v5 }
 0x3c5   :  { %v3882_v21 = vand.u32 4294901760, %v3881_v19  ;;  %v4007_v11 = vsub.f32 %v12071_v29, %v13778_v38  ;;  %v12251_v46 = vpack.c.bf16 %v4001_v4, %v3994_v49  ;;  %v13785_v58 = vand.u32 4294901760, %v12090_v33 }
 0x3c6   :  { %14538 = vst [vmem:[#allocation21_spill] sm:$0xff] %v12241_v35  ;;  %v3889_v15 = vand.u32 4294901760, %v3888_v61  ;;  %v4014_v32 = vsub.f32 %v12077_v26, %v13779_v6  ;;  %v3895_v19 = vsub.f32 %v12087_v5, %v13780_v59 }
 0x3c7   :  { %v4008_v39 = vand.u32 4294901760, %v4007_v11  ;;  %v3902_v4 = vsub.f32 %v12090_v33, %v13785_v58 }
 0x3c8   :  { %v12262_v38 = vpack.c.bf16 %v3889_v15, %v3882_v21  ;;  %v4015_v35 = vand.u32 4294901760, %v4014_v32  ;;  %v3896_v49 = vand.u32 4294901760, %v3895_v19 }
 0x3c9   :  { %v3903_v11 = vand.u32 4294901760, %v3902_v4 }
 0x3ca   :  { %v12269_v6 = vpack.c.bf16 %v4015_v35, %v4008_v39  ;;  %v12319_v39 = vld [vmem:[#allocation8 + $0x218] sm:$0xff] }
 0x3cb   :  { %v12275_v32 = vpack.c.bf16 %v3903_v11, %v3896_v49  ;;  %14542 = vst [vmem:[#allocation25_spill] sm:$0xff] %v12319_v39  ;;  %v13801_v29 = vand.u32 4294901760, %v12319_v39 }
 0x3cf   :  { %v6809_v15 = vpop.f32.mrb[34].mxu1 }
 0x3d0   :  { %v7906_v21 = vpop.f32.mrb[14].mxu0  ;;  %v6810_v42 = vpop.f32.mrb[35].mxu1 }
 0x3d1   :  { %v3484_v23 = vpop.f32.mrb[15].mxu0  ;;  %v6811_v58 = vadd.f32 %v6810_v42, %v6809_v15 }
 0x3d3   :  { %v2800_v4 = vadd.f32 %v6811_v58, %v12143_v41  ;;  %v6812_v59 = vpop.f32.mrb[36].mxu1  ;;  %v12317_v41 = vld [vmem:[#allocation8 + $0x210] sm:$0xff] }
 0x3d4   :  { %v6813_v49 = vpop.f32.mrb[37].mxu1  ;;  %14541 = vst [vmem:[#allocation112_spill] sm:$0xff] %v12317_v41 }
 0x3d5   :  { %v12288_v61 = vadd.f32 %v3484_v23, %v2800_v4  ;;  %v6814_v19 = vadd.f32 %v6813_v49, %v6812_v59  ;;  %v12313_v49 = vld [vmem:[#allocation8 + $0x208] sm:$0xff]  ;;  %v13802_v4 = vand.u32 4294901760, %v12317_v41 }
 0x3d6   :  { %14540 = vst [vmem:[#allocation23_spill] sm:$0xff] %v12313_v49  ;;  %v13800_v43 = vand.u32 4294901760, %v12313_v49 }
 0x3d7   :  { %v2807_v15 = vadd.f32 %v6814_v19, %v12165_v56  ;;  %v3501_v59 = vmul.f32 %v12288_v61, %v12288_v61 }
 0x3d9   :  { %v12297_v58 = vadd.f32 %v7906_v21, %v2807_v15  ;;  %v12311_v21 = vld [vmem:[#allocation8 + $0x200] sm:$0xff] }
 0x3da   :  { %14539 = vst [vmem:[#allocation118_spill] sm:$0xff] %v12311_v21  ;;  %v13803_v35 = vand.u32 4294901760, %v12311_v21 }
 0x3db   :  { %v3494_v56 = vadd.f32 %v12288_v61, %v12297_v58  ;;  %v3502_v19 = vmul.f32 %v12297_v58, %v12297_v58 }
 0x3dd   :  { %v3495_v15 = vrot.slane %v3494_v56, 4  ;;  %v3503_v24 = vadd.f32 %v3502_v19, %v3501_v59  ;;  %v12329_v59 = vpack.c.bf16 %v13800_v43, %v13803_v35  ;;  %v12337_v19 = vld [vmem:[#allocation8 + $0x220] sm:$0xff]  ;;  %v12349_v35 = vld [vmem:[#allocation8 + $0x230] sm:$0xff] }
 0x3de   :  { %14545 = vst [vmem:[#allocation31_spill] sm:$0xff] %v12337_v19  ;;  %14548 = vst [vmem:[#allocation65_spill] sm:$0xff] %v12349_v35 }
 0x3df   :  { %v3496_v42 = vadd.f32 %v3495_v15, %v3494_v56  ;;  %v3504_v11 = vrot.slane %v3503_v24, 4  ;;  %14543 = vst [vmem:[#allocation27_spill] sm:$0xff] %v12329_v59  ;;  %v12335_v56 = vpack.c.bf16 %v13801_v29, %v13802_v4  ;;  %v12339_v15 = vld [vmem:[#allocation8 + $0x228] sm:$0xff]  ;;  %v13815_v59 = vand.u32 4294901760, %v12349_v35 }
 0x3e0   :  { %14546 = vst [vmem:[#allocation33_spill] sm:$0xff] %v12339_v15 }
 0x3e1   :  { %v3497_v26 = vrot.slane %v3496_v42, 2  ;;  %v3505_v54 = vadd.f32 %v3504_v11, %v3503_v24  ;;  %14544 = vst [vmem:[#allocation29_spill] sm:$0xff] %v12335_v56  ;;  %v13813_v24 = vand.u32 4294901760, %v12337_v19  ;;  %v13812_v11 = vand.u32 4294901760, %v12339_v15  ;;  %v12351_v56 = vld [vmem:[#allocation8 + $0x238] sm:$0xff] }
 0x3e2   :  { %14549 = vst [vmem:[#allocation70_spill] sm:$0xff] %v12351_v56  ;;  %v13814_v16 = vand.u32 4294901760, %v12351_v56 }
 0x3e3   :  { %v3498_v23 = vadd.f32 %v3497_v26, %v3496_v42  ;;  %v3506_v5 = vrot.slane %v3505_v54, 2  ;;  %v12347_v43 = vpack.c.bf16 %v13812_v11, %v13813_v24  ;;  %v12369_v11 = vld [vmem:[#allocation8 + $0x258] sm:$0xff] }
 0x3e4   :  { %14554 = vst [vmem:[#allocation113_spill] sm:$0xff] %v12369_v11 }
 0x3e5   :  { %v3499_v33 = vrot.slane %v3498_v23, 1  ;;  %v3507_v31 = vadd.f32 %v3506_v5, %v3505_v54  ;;  %14547 = vst [vmem:[#allocation35_spill] sm:$0xff] %v12347_v43  ;;  %v12357_v5 = vld [vmem:[#allocation8 + $0x248] sm:$0xff] }
 0x3e6   :  { %14551 = vst [vmem:[#allocation83_spill] sm:$0xff] %v12357_v5 }
 0x3e7   :  { %v3500_v29 = vadd.f32 %v3499_v33, %v3498_v23  ;;  %v3508_v4 = vrot.slane %v3507_v31, 1  ;;  %v12363_v33 = vpack.c.bf16 %v13814_v16, %v13815_v59  ;;  %v12381_v59 = vld [vmem:[#allocation8 + $0x268] sm:$0xff] }
 0x3e8   :  { %14557 = vst [vmem:[#allocation122_spill] sm:$0xff] %v12381_v59 }
 0x3e9   :  { %v3509_v26 = vadd.f32 %v3508_v4, %v3507_v31  ;;  %v3510_v42 = vmul.f32 0.0625, %v3500_v29  ;;  %14552 = vst [vmem:[#allocation88_spill] sm:$0xff] %v12363_v33  ;;  %v13818_v31 = vand.u32 4294901760, %v12355_v53  ;;  %v13817_v29 = vand.u32 4294901760, %v12357_v5  ;;  %v12367_v4 = vld [vmem:[#allocation8 + $0x250] sm:$0xff] }
 0x3ea   :  { %14553 = vst [vmem:[#allocation94_spill] sm:$0xff] %v12367_v4  ;;  %v13824_v16 = vand.u32 4294901760, %v12367_v4  ;;  %v3530_v53 = vsub.s32 5, %v14440_v13 }
 0x3eb   :  { %v3511_v54 = vmul.f32 0.0625, %v3509_v26  ;;  %v3512_v44 = vmul.f32 %v3510_v42, %v3510_v42  ;;  %v12375_v26 = vpack.c.bf16 %v13817_v29, %v13818_v31  ;;  %v13828_v29 = vand.u32 4294901760, %v12381_v59  ;;  %v12397_v31 = vld [vmem:[#allocation8 + $0x270] sm:$0xff]  ;;  %v9512_v59 = vld [vmem:[#allocation10] sm:$0xff] }
 0x3ec   :  { %14560 = vst [vmem:[#allocation125_spill] sm:$0xff] %v12397_v31  ;;  %v13848_v43 = vand.u32 4294901760, %v12397_v31 }
 0x3ed   :  { %v3513_v23 = vsub.f32 %v3511_v54, %v3512_v44  ;;  %14555 = vst [vmem:[#allocation117_spill] sm:$0xff] %v12375_v26  ;;  %v13823_v44 = vand.u32 4294901760, %v12369_v11  ;;  %v12379_v54 = vld [vmem:[#allocation8 + $0x260] sm:$0xff]  ;;  %v12399_v26 = vld [vmem:[#allocation8 + $0x278] sm:$0xff] }
 0x3ee   :  { %14556 = vst [vmem:[#allocation119_spill] sm:$0xff] %v12379_v54  ;;  %v13829_v33 = vand.u32 4294901760, %v12379_v54  ;;  %14561 = vst [vmem:[#allocation126_spill] sm:$0xff] %v12399_v26  ;;  %v13847_v11 = vand.u32 4294901760, %v12399_v26 }
 0x3ef   :  { %v3514_v24 = vadd.f32 1e-05, %v3513_v23  ;;  %v12387_v23 = vpack.c.bf16 %v13823_v44, %v13824_v16  ;;  %v3524_v16 = vsub.s32 4, %v14440_v13 }
 0x3f0   :  { %v12407_v44 = vpack.c.bf16 %v13847_v11, %v13848_v43 }
 0x3f1   :  { %9507 = vrsqrt.f32 %v3514_v24  ;;  %14558 = vst [vmem:[#allocation123_spill] sm:$0xff] %v12387_v23  ;;  %v12395_v24 = vpack.c.bf16 %v13828_v29, %v13829_v33 }
 0x3f2   :  { %14562 = vst [vmem:[#allocation127_spill] sm:$0xff] %v12407_v44 }
 0x3f3   :  { %14559 = vst [vmem:[#allocation124_spill] sm:$0xff] %v12395_v24 }
 0x3fb   :  { %v9508_v23 = vpop.eup %9507 }
 0x3fc   :  { %v3516_v29 = vmul.f32 %v9512_v59, %v9508_v23 }
 0x3fe   :  { %v3517_v33 = vmul.f32 %v3516_v29, %v3510_v42  ;;  %v3525_v24 = vrot.slane %v3516_v29, %v3524_v16 }
 0x400   :  { %v3519_v54 = vrot.slane %v3517_v33, 7  ;;  %v3526_v4 = vmul.f32 %v12288_v61, %v3525_v24  ;;  %v3527_v5 = vmul.f32 %v12297_v58, %v3525_v24 }
 0x402   :  { %v3521_v56 = vsub.f32 %v9512_v59, %v3519_v54 }
 0x404   :  { %v3531_v31 = vrot.slane %v3521_v56, %v3530_v53 }
 0x406   :  { %v3532_v35 = vadd.f32 %v3531_v31, %v3526_v4  ;;  %v3533_v26 = vadd.f32 %v3531_v31, %v3527_v5 }
 0x408   :  { %v3534_v11 = vmax.f32 %v3532_v35, 0.0  ;;  %v3535_v43 = vmax.f32 %v3533_v26, 0.0 }
 0x40a   :  { %v3538_v44 = vrot.slane %v3534_v11, 6  ;;  %v3539_v15 = vrot.slane %v3535_v43, 6 }
 0x40c   :  { %v12414_v19 = vsel %vm845_vm0, 0.0, %v3538_v44  ;;  %v12417_v16 = vsel %vm845_vm0, 0.0, %v3539_v15  ;;  %v12420_v61 = vsel %vm845_vm0, %v3538_v44, 0.0  ;;  %v12423_v58 = vsel %vm845_vm0, %v3539_v15, 0.0 }
 0x40d   :  { %v3550_v53 = vrot.slane %v12414_v19, 1  ;;  %v3551_v59 = vrot.slane %v12420_v61, 1  ;;  %v3566_v35 = vrot.slane %v12414_v19, 3  ;;  %v3567_v43 = vrot.slane %v12420_v61, 3 }
 0x40e   :  { %v12430_v56 = vand.u32 4294901760, %v12414_v19  ;;  %v3558_v11 = vrot.slane %v12414_v19, 2  ;;  %v3559_v42 = vrot.slane %v12420_v61, 2  ;;  %v3553_v5 = vrot.slane %v12417_v16, 1 }
 0x40f   :  { %v3552_v15 = vsel %vm854_vm1, %v3550_v53, %v3551_v59  ;;  %v3568_v33 = vsel %vm872_vm2, %v3566_v35, %v3567_v43  ;;  %v3554_v31 = vrot.slane %v12423_v58, 1  ;;  %v3569_v29 = vrot.slane %v12417_v16, 3 }
 0x410   :  { %14563 = vst [vmem:[#allocation128_spill] sm:$0xff] %v12430_v56  ;;  %v12439_v4 = vand.u32 4294901760, %v3552_v15  ;;  %v12441_v26 = vand.u32 4294901760, %v3568_v33  ;;  %v12445_v44 = vsub.f32 %v12414_v19, %v12430_v56  ;;  %v3560_v54 = vsel %vm863_vm3, %v3558_v11, %v3559_v42 }
 0x411   :  { %v12448_v23 = vand.u32 4294901760, %v3560_v54  ;;  %v3555_v24 = vsel %vm854_vm1, %v3553_v5, %v3554_v31  ;;  %v3570_v53 = vrot.slane %v12423_v58, 3  ;;  %v12453_v59 = vand.u32 4294901760, %v12417_v16 }
 0x412   :  { %14564 = vst [vmem:[#allocation129_spill] sm:$0xff] %v12439_v4  ;;  %14565 = vst [vmem:[#allocation130_spill] sm:$0xff] %v12441_v26  ;;  %v12456_v35 = vsub.f32 %v3552_v15, %v12439_v4  ;;  %v12459_v43 = vsub.f32 %v3568_v33, %v12441_v26  ;;  %v13867_v13 = vand.u32 4294901760, %v12445_v44  ;;  %v12462_v36 = vand.u32 4294901760, %v3555_v24 }
 0x413   :  { %14566 = vst [vmem:[#allocation131_spill] sm:$0xff] %v12445_v44  ;;  %14567 = vst [vmem:[#allocation132_spill] sm:$0xff] %v12448_v23  ;;  %v12465_v11 = vsub.f32 %v3560_v54, %v12448_v23  ;;  %v3571_v42 = vsel %vm872_vm2, %v3569_v29, %v3570_v53  ;;  %v12470_v5 = vsub.f32 %v12417_v16, %v12453_v59  ;;  %v3561_v31 = vrot.slane %v12417_v16, 2 }
 0x414   :  { %14568 = vst [vmem:[#allocation133_spill] sm:$0xff] %v12453_v59  ;;  %14569 = vst [vmem:[#allocation134_spill] sm:$0xff] %v12459_v43  ;;  %v13876_v15 = vand.u32 4294901760, %v12456_v35  ;;  %v13879_v33 = vand.u32 4294901760, %v12459_v43  ;;  %v3771_v12 = vsub.f32 %v12445_v44, %v13867_v13  ;;  %v12479_v52 = vsub.f32 %v3555_v24, %v12462_v36  ;;  %v14575_v13 = vld [vmem:[#allocation59_spill] sm:$0xff] }
 0x415   :  { %14570 = vst [vmem:[#allocation135_spill] sm:$0xff] %v12462_v36  ;;  %14571 = vst [vmem:[#allocation136_spill] sm:$0xff] %v12465_v11  ;;  %v12482_v29 = vand.u32 4294901760, %v3571_v42  ;;  %v3562_v23 = vrot.slane %v12423_v58, 2  ;;  %v9143_v24 = vpack.c.bf16 %v14575_v13, %v11895_v37  ;;  %v14576_v41 = vand.u32 4294901760, %v12465_v11 }
 0x416   :  { %14572 = vst [vmem:[#allocation137_spill] sm:$0xff] %v12470_v5  ;;  %14573 = vst [vmem:[#allocation138_spill] sm:$0xff] %v12479_v52  ;;  %v3765_v7 = vsub.f32 %v12456_v35, %v13876_v15  ;;  %v4683_v39 = vsub.f32 %v12459_v43, %v13879_v33  ;;  %v13886_v44 = vand.u32 4294901760, %v12479_v52  ;;  %v3772_v54 = vand.u32 4294901760, %v3771_v12 }
 0x417   :  { %14574 = vst [vmem:[#allocation139_spill] sm:$0xff] %v12482_v29  ;;  %v4689_v53 = vsub.f32 %v12465_v11, %v14576_v41  ;;  %v12499_v3 = vsub.f32 %v3571_v42, %v12482_v29  ;;  %v3563_v55 = vsel %vm863_vm3, %v3561_v31, %v3562_v23  ;;  %v14579_v21 = vand.u32 4294901760, %v12470_v5  ;;  %v14611_v29 = vld [vmem:[#allocation19_spill] sm:$0xff] }
 0x418   :  { %v3766_v15 = vand.u32 4294901760, %v3765_v7  ;;  %v4684_v40 = vand.u32 4294901760, %v4683_v39  ;;  %v3780_v33 = vsub.f32 %v12479_v52, %v13886_v44  ;;  %v12505_v28 = vand.u32 4294901760, %v3563_v55  ;;  %v14580_v7 = vld [vmem:[#allocation105_spill] sm:$0xff] }
 0x419   :  { %14577 = vst [vmem:[#allocation140_spill] sm:$0xff] %v12499_v3  ;;  %v4690_v49 = vand.u32 4294901760, %v4689_v53  ;;  %v13890_v12 = vand.u32 4294901760, %v12499_v3  ;;  %v3786_v41 = vsub.f32 %v12470_v5, %v14579_v21  ;;  %v3574_v42 = vrot.slane %v12414_v19, 4  ;;  %v14609_v5 = vld [vmem:[#allocation93_spill] sm:$0xff] }
 0x41a   :  { %14578 = vst [vmem:[#allocation141_spill] sm:$0xff] %v12505_v28  ;;  %3767 = vmatprep.mubr.f32.mxu1 %v3766_v15  ;;  %4685 = vmatprep.mubr.f32.mxu0 %v4684_v40  ;;  %v9145_v39 = vpack.c.bf16 %v14580_v7, %v11916_v57  ;;  %v12515_v23 = vsub.f32 %v3563_v55, %v12505_v28  ;;  %v3575_v31 = vrot.slane %v12420_v61, 4  ;;  %v3577_v53 = vrot.slane %v12417_v16, 4  ;;  %v14582_v55 = vld [vmem:[#allocation53_spill] sm:$0xff]  ;;  %v14583_v15 = vld [vmem:[#allocation110_spill] sm:$0xff] }
 0x41b   :  { %3773 = vmatmul.mubr.f32.vlgmr.msra.gmra.mrb[38].mxu1 %v3772_v54  ;;  %4691 = vmatmul.mubr.f32.vlgmr.msra.gmra.mrb[16].mxu0 %v4690_v49  ;;  %v3781_v44 = vand.u32 4294901760, %v3780_v33  ;;  %v4698_v21 = vsub.f32 %v12499_v3, %v13890_v12  ;;  %v3578_v19 = vrot.slane %v12423_v58, 4  ;;  %v9147_v28 = vpack.c.bf16 %v14583_v15, %v14582_v55  ;;  %v14586_v58 = vld [vmem:[#allocation18_spill] sm:$0xff]  ;;  %v14587_v54 = vld [vmem:[#allocation97_spill] sm:$0xff] }
 0x41c   :  { %14581 = vst [vmem:[#allocation142_spill] sm:$0xff] %v12515_v23  ;;  %8920 = vmatpush3.bf16.msra.mxu1 %v12136_v8  ;;  %9144 = vmatpush3.bf16.msra.mxu0 %v9143_v24  ;;  %v13889_v40 = vand.u32 4294901760, %v12515_v23  ;;  %v12528_v61 = vsel %vm881_vm4, %v3574_v42, %v3575_v31  ;;  %v3787_v16 = vand.u32 4294901760, %v3786_v41  ;;  %v9149_v24 = vpack.c.bf16 %v14587_v54, %v14586_v58  ;;  %v14588_v42 = vld [vmem:[#allocation20_spill] sm:$0xff]  ;;  %v14603_v12 = vld [vmem:[#allocation21_spill] sm:$0xff] }
 0x41d   :  { %14584 = vst [vmem:[#allocation143_spill] sm:$0xff] %v12528_v61  ;;  %3782 = vmatprep.mubr.f32.mxu1 %v3781_v44  ;;  %v4699_v49 = vand.u32 4294901760, %v4698_v21  ;;  %8922 = vmatprep.subr.bf16.mxu1 %v12138_v2  ;;  %v12532_v33 = vsel %vm881_vm4, %v3577_v53, %v3578_v19  ;;  %v14589_v2 = vld [vmem:[#allocation111_spill] sm:$0xff]  ;;  %v14591_v31 = vld [vmem:[#allocation28_spill] sm:$0xff]  ;;  %v14593_v21 = vld [vmem:[#allocation61_spill] sm:$0xff]  ;;  %v13906_v52 = vand.u32 4294901760, %v11916_v57 }
 0x41e   :  { %14585 = vst [vmem:[#allocation144_spill] sm:$0xff] %v12532_v33  ;;  %9146 = vmatprep.subr.bf16.mxu0 %v9145_v39  ;;  %v4704_v8 = vsub.f32 %v12515_v23, %v13889_v40  ;;  %v9151_v41 = vpack.c.bf16 %v14589_v2, %v14588_v42  ;;  %v14590_v39 = vld [vmem:[#allocation26_spill] sm:$0xff]  ;;  %v14594_v19 = vld [vmem:[#allocation40_spill] sm:$0xff] }
 0x41f   :  { %4700 = vmatprep.mubr.f32.mxu0 %v4699_v49  ;;  %3788 = vmatmul.mubr.f32.gmra.mrb[40].mxu1 %v3787_v16  ;;  %v9153_v53 = vpack.c.bf16 %v14591_v31, %v14590_v39  ;;  %v14595_v49 = vld [vmem:[#allocation41_spill] sm:$0xff]  ;;  %v14608_v33 = vld [vmem:[#allocation92_spill] sm:$0xff] }
 0x420   :  { %8924 = vmatpush3.bf16.msra.mxu1 %v12149_v0  ;;  %v4705_v44 = vand.u32 4294901760, %v4704_v8  ;;  %9148 = vmatpush3.bf16.msra.mxu0 %v9147_v28  ;;  %v14592_v0 = vld [vmem:[#allocation57_spill] sm:$0xff]  ;;  %v9157_v16 = vpack.c.bf16 %v14595_v49, %v14594_v19  ;;  %v13903_v61 = vand.u32 4294901760, %v14608_v33 }
 0x421   :  { %4018 = vmatprep.mubr.f32.mxu1 %v12439_v4  ;;  %8926 = vmatprep.subr.bf16.mxu1 %v12171_v30  ;;  %v9155_v28 = vpack.c.bf16 %v14593_v21, %v14592_v0  ;;  %v14596_v30 = vld [vmem:[#allocation44_spill] sm:$0xff]  ;;  %v14597_v8 = vld [vmem:[#allocation45_spill] sm:$0xff] }
 0x422   :  { %4706 = vmatmul.mubr.f32.gmra.mrb[18].mxu0 %v4705_v44  ;;  %9150 = vmatprep.subr.bf16.mxu0 %v9149_v24  ;;  %v9159_v24 = vpack.c.bf16 %v14597_v8, %v14596_v30  ;;  %v14599_v44 = vld [vmem:[#allocation63_spill] sm:$0xff] }
 0x423   :  { %5080 = vmatprep.mubr.f32.mxu0 %v12459_v43 }
 0x424   :  { %8928 = vmatpush3.bf16.msra.mxu1 %v12181_v1  ;;  %9152 = vmatpush3.bf16.msra.mxu0 %v9151_v41  ;;  %v14598_v1 = vld [vmem:[#allocation48_spill] sm:$0xff] }
 0x425   :  { %8930 = vmatprep.subr.bf16.mxu1 %v12191_v47  ;;  %9154 = vmatprep.subr.bf16.mxu0 %v9153_v53  ;;  %v9161_v41 = vpack.c.bf16 %v14599_v44, %v14598_v1  ;;  %v14600_v47 = vld [vmem:[#allocation99_spill] sm:$0xff]  ;;  %v14601_v53 = vld [vmem:[#allocation108_spill] sm:$0xff] }
 0x426   :  { %v9163_v40 = vpack.c.bf16 %v14601_v53, %v14600_v47 }
 0x428   :  { %8932 = vmatpush3.bf16.msra.mxu1 %v12201_v51  ;;  %9156 = vmatpush3.bf16.msra.mxu0 %v9155_v28  ;;  %v14602_v51 = vld [vmem:[#allocation71_spill] sm:$0xff] }
 0x429   :  { %8934 = vmatprep.subr.bf16.mxu1 %v12211_v45  ;;  %9158 = vmatprep.subr.bf16.mxu0 %v9157_v16  ;;  %v9165_v28 = vpack.c.bf16 %v14602_v51, %v12054_v63  ;;  %v14604_v45 = vld [vmem:[#allocation82_spill] sm:$0xff]  ;;  %v14605_v16 = vld [vmem:[#allocation84_spill] sm:$0xff] }
 0x42a   :  { %v9167_v43 = vpack.c.bf16 %v14605_v16, %v14604_v45 }
 0x42c   :  { %8936 = vmatpush3.bf16.msra.mxu1 %v12221_v22  ;;  %9160 = vmatpush3.bf16.msra.mxu0 %v9159_v24  ;;  %v14606_v22 = vld [vmem:[#allocation95_spill] sm:$0xff]  ;;  %v14607_v24 = vld [vmem:[#allocation54_spill] sm:$0xff] }
 0x42d   :  { %8938 = vmatprep.subr.bf16.mxu1 %v12231_v17  ;;  %9162 = vmatprep.subr.bf16.mxu0 %v9161_v41  ;;  %v9169_v4 = vpack.c.bf16 %v14607_v24, %v14606_v22  ;;  %v13902_v17 = vand.u32 4294901760, %v14609_v5  ;;  %v14610_v41 = vld [vmem:[#allocation115_spill] sm:$0xff]  ;;  %v13910_v5 = vand.u32 4294901760, %v14587_v54 }
 0x430   :  { %8940 = vmatpush3.bf16.msra.mxu1 %v14603_v12  ;;  %9164 = vmatpush3.bf16.msra.mxu0 %v9163_v40  ;;  %v9171_v12 = vpack.c.bf16 %v14611_v29, %v14610_v41  ;;  %v13908_v40 = vand.u32 4294901760, %v11895_v37  ;;  %v14613_v29 = vld [vmem:[#allocation85_spill] sm:$0xff] }
 0x431   :  { %8942 = vmatprep.subr.bf16.mxu1 %v12251_v46  ;;  %9166 = vmatprep.subr.bf16.mxu0 %v9165_v28  ;;  %v9205_v46 = vpack.c.bf16 %v13902_v17, %v13903_v61  ;;  %v13907_v28 = vand.u32 4294901760, %v14575_v13  ;;  %v13912_v17 = vand.u32 4294901760, %v14582_v55  ;;  %v13909_v61 = vand.u32 4294901760, %v14583_v15  ;;  %v14670_v15 = vld [vmem:[#allocation70_spill] sm:$0xff]  ;;  %v14682_v55 = vld [vmem:[#allocation77_spill] sm:$0xff] }
 0x434   :  { %8944 = vmatpush3.bf16.msra.mxu1 %v12262_v38  ;;  %9168 = vmatpush3.bf16.msra.mxu0 %v9167_v43  ;;  %v13905_v38 = vand.u32 4294901760, %v14580_v7  ;;  %v14612_v43 = vld [vmem:[#allocation87_spill] sm:$0xff] }
 0x435   :  { %8946 = vmatprep.subr.bf16.mxu1 %v12269_v6  ;;  %9170 = vmatprep.subr.bf16.mxu0 %v9169_v4  ;;  %v14614_v6 = vpack.c.bf16 %v14612_v43, %v14613_v29  ;;  %v9207_v4 = vpack.c.bf16 %v13907_v28, %v13908_v40  ;;  %v14616_v28 = vpack.c.bf16 %v11911_v20, %v11906_v62  ;;  %v13915_v40 = vand.u32 4294901760, %v14591_v31  ;;  %v14661_v31 = vld [vmem:[#allocation62_spill] sm:$0xff] }
 0x438   :  { %8948 = vmatpush3.bf16.msra.mxu1 %v12275_v32  ;;  %9172 = vmatpush3.bf16.msra.mxu0 %v9171_v12  ;;  %v9209_v32 = vpack.c.bf16 %v13905_v38, %v13906_v52  ;;  %v13911_v12 = vand.u32 4294901760, %v14586_v58  ;;  %v13914_v38 = vand.u32 4294901760, %v14588_v42  ;;  %v13913_v52 = vand.u32 4294901760, %v14589_v2  ;;  %v14665_v2 = vld [vmem:[#allocation19_spill] sm:$0xff] }
 0x439   :  { %8950 = vmatprep.subr.bf16.mxu1 %v14614_v6  ;;  %9206 = vmatprep.subr.bf16.mxu0 %v9205_v46  ;;  %v14615_v46 = vpack.c.bf16 %v11890_v50, %v11885_v18  ;;  %v9211_v6 = vpack.c.bf16 %v13909_v61, %v13912_v17  ;;  %v14617_v61 = vpack.c.bf16 %v11929_v25, %v11926_v27 }
 0x43a   :  { %v14620_v17 = vpack.c.bf16 %v11958_v10, %v11956_v9 }
 0x43b   :  { %4020 = vmatmul.mubr.f32.vlgmr.msra.gmra.mrb[42].mxu1 %v12430_v56  ;;  %5083 = vmatmul.mubr.f32.vlgmr.msra.gmra.mrb[20].mxu0 %v12465_v11  ;;  %v14698_v56 = vld [vmem:[#allocation132_spill] sm:$0xff] }
 0x43c   :  { %4025 = vmatprep.mubr.f32.mxu1 %v12462_v36  ;;  %8952 = vmatpush3.bf16.msra.mxu1 %v14615_v46  ;;  %v9213_v46 = vpack.c.bf16 %v13910_v5, %v13911_v12  ;;  %v13920_v5 = vand.u32 4294901760, %v14593_v21  ;;  %v13923_v12 = vand.u32 4294901760, %v14594_v19  ;;  %v14650_v21 = vand.u32 4294901760, %v14602_v51 }
 0x43d   :  { %5089 = vmatprep.mubr.f32.mxu0 %v12499_v3  ;;  %9208 = vmatpush3.bf16.msra.mxu0 %v9207_v4  ;;  %v13916_v4 = vand.u32 4294901760, %v14590_v39  ;;  %v14664_v39 = vand.u32 4294901760, %v14605_v16  ;;  %v14671_v16 = vand.u32 4294901760, %v14670_v15 }
 0x43e   :  { %8954 = vmatprep.subr.bf16.mxu1 %v14616_v28  ;;  %9210 = vmatprep.subr.bf16.mxu0 %v9209_v32  ;;  %v9215_v32 = vpack.c.bf16 %v13913_v52, %v13914_v38  ;;  %v14619_v28 = vpack.c.bf16 %v11947_v14, %v11945_v48  ;;  %v14632_v38 = vld [vmem:[#allocation73_spill] sm:$0xff] }
 0x43f   :  { %4027 = vmatmul.mubr.f32.gmra.mrb[44].mxu1 %v12453_v59  ;;  %5092 = vmatmul.mubr.f32.gmra.mrb[22].mxu0 %v12515_v23 }
 0x440   :  { %8956 = vmatpush3.bf16.msra.mxu1 %v14617_v61  ;;  %4162 = vmatprep.mubr.f32.mxu1 %v12456_v35  ;;  %v14618_v61 = vpack.c.bf16 %v11939_v60, %v11937_v34 }
 0x441   :  { %9212 = vmatpush3.bf16.msra.mxu0 %v9211_v6  ;;  %5377 = vmatprep.mubr.f32.mxu0 %v12441_v26  ;;  %v9217_v6 = vpack.c.bf16 %v13915_v40, %v13916_v4  ;;  %v14622_v40 = vand.u32 4294901760, %v14595_v49 }
 0x442   :  { %8958 = vmatprep.subr.bf16.mxu1 %v14618_v61  ;;  %9214 = vmatprep.subr.bf16.mxu0 %v9213_v46  ;;  %v14621_v46 = vand.u32 4294901760, %v14592_v0 }
 0x443   :  { %v9221_v4 = vpack.c.bf16 %v14622_v40, %v13923_v12  ;;  %v14630_v40 = vand.u32 4294901760, %v14596_v30  ;;  %v14636_v30 = vand.u32 4294901760, %v14599_v44  ;;  %v14648_v44 = vand.u32 4294901760, %v14601_v53 }
 0x444   :  { %8960 = vmatpush3.bf16.msra.mxu1 %v14619_v28  ;;  %v9219_v61 = vpack.c.bf16 %v13920_v5, %v14621_v46  ;;  %v14627_v46 = vld [vmem:[#allocation34_spill] sm:$0xff]  ;;  %v14628_v5 = vld [vmem:[#allocation32_spill] sm:$0xff] }
 0x445   :  { %9216 = vmatpush3.bf16.msra.mxu0 %v9215_v32  ;;  %8962 = vmatprep.subr.bf16.mxu1 %v14620_v17  ;;  %v14623_v32 = vld [vmem:[#allocation118_spill] sm:$0xff]  ;;  %v14625_v17 = vld [vmem:[#allocation23_spill] sm:$0xff]  ;;  %v14629_v26 = vpack.c.bf16 %v14627_v46, %v14628_v5  ;;  %v14633_v28 = vld [vmem:[#allocation68_spill] sm:$0xff] }
 0x446   :  { %9218 = vmatprep.subr.bf16.mxu0 %v9217_v6  ;;  %v14624_v52 = vand.u32 4294901760, %v14623_v32  ;;  %v14626_v3 = vand.u32 4294901760, %v14625_v17  ;;  %v14631_v6 = vand.u32 4294901760, %v14597_v8  ;;  %v14634_v49 = vpack.c.bf16 %v14632_v38, %v14633_v28 }
 0x448   :  { %v12666_v23 = vsub.f32 %v14623_v32, %v14624_v52  ;;  %v12671_v11 = vsub.f32 %v14625_v17, %v14626_v3  ;;  %8964 = vmatpush3.bf16.msra.mxu1 %v14629_v26  ;;  %v9223_v12 = vpack.c.bf16 %v14631_v6, %v14630_v40  ;;  %v14635_v26 = vand.u32 4294901760, %v14598_v1  ;;  %v14637_v6 = vld [vmem:[#allocation112_spill] sm:$0xff]  ;;  %v14639_v32 = vld [vmem:[#allocation25_spill] sm:$0xff]  ;;  %v14642_v17 = vld [vmem:[#allocation42_spill] sm:$0xff] }
 0x449   :  { %9220 = vmatpush3.bf16.msra.mxu0 %v9219_v61  ;;  %8966 = vmatprep.subr.bf16.mxu1 %v14634_v49  ;;  %v14638_v49 = vand.u32 4294901760, %v14637_v6  ;;  %v14640_v19 = vand.u32 4294901760, %v14639_v32  ;;  %v14647_v40 = vand.u32 4294901760, %v14600_v47 }
 0x44a   :  { %9222 = vmatprep.subr.bf16.mxu0 %v9221_v4  ;;  %v9225_v8 = vpack.c.bf16 %v14636_v30, %v14635_v26  ;;  %v14641_v4 = vld [vmem:[#allocation43_spill] sm:$0xff]  ;;  %v14644_v30 = vld [vmem:[#allocation98_spill] sm:$0xff] }
 0x44b   :  { %v12696_v52 = vsub.f32 %v14637_v6, %v14638_v49  ;;  %v12701_v3 = vsub.f32 %v14639_v32, %v14640_v19  ;;  %v14643_v1 = vpack.c.bf16 %v14641_v4, %v14642_v17  ;;  %v14645_v26 = vld [vmem:[#allocation47_spill] sm:$0xff]  ;;  %v9227_v6 = vpack.c.bf16 %v14648_v44, %v14647_v40 }
 0x44c   :  { %v14646_v61 = vpack.c.bf16 %v14644_v30, %v14645_v26  ;;  %v14649_v49 = vand.u32 4294901760, %v12054_v63  ;;  %v14652_v44 = vand.u32 4294901760, %v12671_v11  ;;  %v14657_v63 = vld [vmem:[#allocation55_spill] sm:$0xff] }
 0x44d   :  { %8968 = vmatpush3.bf16.msra.mxu1 %v14643_v1  ;;  %9224 = vmatpush3.bf16.msra.mxu0 %v9223_v12  ;;  %v14655_v1 = vld [vmem:[#allocation33_spill] sm:$0xff] }
 0x44e   :  { %8970 = vmatprep.subr.bf16.mxu1 %v14646_v61  ;;  %v9229_v19 = vpack.c.bf16 %v14650_v21, %v14649_v49  ;;  %9226 = vmatprep.subr.bf16.mxu0 %v9225_v8  ;;  %v14651_v61 = vand.u32 4294901760, %v12666_v23  ;;  %v5614_v40 = vsub.f32 %v12671_v11, %v14652_v44  ;;  %v14653_v49 = vld [vmem:[#allocation31_spill] sm:$0xff]  ;;  %v14656_v0 = vand.u32 4294901760, %v14655_v1  ;;  %v14660_v44 = vld [vmem:[#allocation66_spill] sm:$0xff] }
 0x44f   :  { %v14654_v32 = vand.u32 4294901760, %v14653_v49  ;;  %v14662_v51 = vpack.c.bf16 %v14660_v44, %v14661_v31  ;;  %v14663_v21 = vand.u32 4294901760, %v14604_v45 }
 0x450   :  { %v5607_v47 = vsub.f32 %v12666_v23, %v14651_v61  ;;  %v12737_v12 = vsub.f32 %v14655_v1, %v14656_v0  ;;  %v14658_v61 = vld [vmem:[#allocation52_spill] sm:$0xff]  ;;  %v14666_v0 = vld [vmem:[#allocation65_spill] sm:$0xff]  ;;  %v5615_v45 = vand.u32 4294901760, %v5614_v40 }
 0x451   :  { %v12732_v8 = vsub.f32 %v14653_v49, %v14654_v32  ;;  %v14659_v53 = vpack.c.bf16 %v14657_v63, %v14658_v61  ;;  %9228 = vmatpush3.bf16.msra.mxu0 %v9227_v6  ;;  %v9231_v32 = vpack.c.bf16 %v14664_v39, %v14663_v21  ;;  %v14667_v1 = vand.u32 4294901760, %v14666_v0 }
 0x452   :  { %9230 = vmatprep.subr.bf16.mxu0 %v9229_v19  ;;  %v14669_v6 = vand.u32 4294901760, %v14607_v24  ;;  %v5608_v58 = vand.u32 4294901760, %v5607_v47  ;;  %v12763_v39 = vsub.f32 %v14670_v15, %v14671_v16  ;;  %v14672_v21 = vand.u32 4294901760, %v12696_v52  ;;  %v14675_v47 = vld [vmem:[#allocation72_spill] sm:$0xff]  ;;  %v14678_v15 = vld [vmem:[#allocation50_spill] sm:$0xff] }
 0x453   :  { %8972 = vmatpush3.bf16.msra.mxu1 %v14659_v53  ;;  %v12754_v54 = vsub.f32 %v14666_v0, %v14667_v1  ;;  %v14668_v53 = vand.u32 4294901760, %v14606_v22  ;;  %v14673_v0 = vand.u32 4294901760, %v12701_v3  ;;  %v14680_v24 = vand.u32 4294901760, %v14610_v41 }
 0x454   :  { %8974 = vmatprep.subr.bf16.mxu1 %v14662_v51  ;;  %v5621_v42 = vsub.f32 %v12696_v52, %v14672_v21  ;;  %v14681_v21 = vand.u32 4294901760, %v14665_v2  ;;  %v14683_v1 = vand.u32 4294901760, %v14682_v55  ;;  %v9301_v7 = vpack.c.bf16 %v5615_v45, %v5608_v58  ;;  %v14691_v45 = vld [vmem:[#allocation36_spill] sm:$0xff] }
 0x455   :  { %v9233_v51 = vpack.c.bf16 %v14669_v6, %v14668_v53  ;;  %v5628_v19 = vsub.f32 %v12701_v3, %v14673_v0  ;;  %v14674_v53 = vld [vmem:[#allocation76_spill] sm:$0xff]  ;;  %9232 = vmatpush3.bf16.msra.mxu0 %v9231_v32  ;;  %v14677_v6 = vld [vmem:[#allocation90_spill] sm:$0xff]  ;;  %v13964_v32 = vand.u32 4294901760, %v12763_v39  ;;  %v14687_v0 = vand.u32 4294901760, %v12737_v12 }
 0x456   :  { %v14676_v40 = vpack.c.bf16 %v14674_v53, %v14675_v47  ;;  %v14679_v16 = vpack.c.bf16 %v14677_v6, %v14678_v15  ;;  %v9235_v22 = vpack.c.bf16 %v14681_v21, %v14680_v24  ;;  %v12787_v49 = vsub.f32 %v14682_v55, %v14683_v1  ;;  %v14688_v1 = vld [vmem:[#allocation17_spill] sm:$0xff]  ;;  %v14713_v6 = vld [vmem:[#allocation107_spill] sm:$0xff] }
 0x457   :  { %9234 = vmatprep.subr.bf16.mxu0 %v9233_v51  ;;  %v5622_v41 = vand.u32 4294901760, %v5621_v42  ;;  %v5629_v13 = vand.u32 4294901760, %v5628_v19  ;;  %v14686_v24 = vand.u32 4294901760, %v12732_v8  ;;  %v5642_v55 = vsub.f32 %v12737_v12, %v14687_v0  ;;  %v14689_v51 = vld [vmem:[#allocation120_spill] sm:$0xff]  ;;  %v14700_v0 = vld [vmem:[#allocation75_spill] sm:$0xff] }
 0x458   :  { %8976 = vmatpush3.bf16.msra.mxu1 %v14676_v40  ;;  %v14684_v40 = vld [vmem:[#allocation83_spill] sm:$0xff]  ;;  %v14690_v58 = vpack.c.bf16 %v14688_v1, %v14689_v51 }
 0x459   :  { %8978 = vmatprep.subr.bf16.mxu1 %v14679_v16  ;;  %v14685_v57 = vand.u32 4294901760, %v14684_v40  ;;  %v5635_v21 = vsub.f32 %v12732_v8, %v14686_v24  ;;  %9236 = vmatpush3.bf16.msra.mxu0 %v9235_v22  ;;  %v14693_v24 = vld [vmem:[#allocation94_spill] sm:$0xff]  ;;  %v14695_v22 = vld [vmem:[#allocation113_spill] sm:$0xff]  ;;  %v9305_v19 = vpack.c.bf16 %v5629_v13, %v5622_v41  ;;  %v5643_v36 = vand.u32 4294901760, %v5642_v55 }
 0x45a   :  { %9302 = vmatprep.subr.bf16.mxu0 %v9301_v7  ;;  %v14694_v2 = vand.u32 4294901760, %v14693_v24  ;;  %v14696_v37 = vand.u32 4294901760, %v14695_v22  ;;  %v14712_v55 = vand.u32 4294901760, %v12456_v35 }
 0x45b   :  { %v12793_v16 = vsub.f32 %v14684_v40, %v14685_v57  ;;  %v14692_v57 = vand.u32 4294901760, %v12754_v54  ;;  %v5656_v40 = vsub.f32 %v12763_v39, %v13964_v32  ;;  %v5636_v59 = vand.u32 4294901760, %v5635_v21  ;;  %v14699_v32 = vld [vmem:[#allocation138_spill] sm:$0xff]  ;;  %v14711_v21 = vld [vmem:[#allocation141_spill] sm:$0xff] }
 0x45c   :  { %8980 = vmatpush3.bf16.msra.mxu1 %v14690_v58  ;;  %v12816_v58 = vsub.f32 %v14693_v24, %v14694_v2  ;;  %v12821_v33 = vsub.f32 %v14695_v22, %v14696_v37  ;;  %5379 = vmatmul.mubr.f32.vlgmr.msra.gmra.mrb[24].mxu0 %v14698_v56  ;;  %v14702_v24 = vand.u32 4294901760, %v12787_v49  ;;  %v14703_v37 = vld [vmem:[#allocation81_spill] sm:$0xff] }
 0x45d   :  { %8982 = vmatprep.subr.bf16.mxu1 %v14691_v45  ;;  %v5649_v42 = vsub.f32 %v12754_v54, %v14692_v57  ;;  %v14697_v57 = vld [vmem:[#allocation131_spill] sm:$0xff]  ;;  %9304 = vmatpush3.bf16.msra.mxu0 %v9301_v7  ;;  %v5657_v22 = vand.u32 4294901760, %v5656_v40  ;;  %v14704_v13 = vand.u32 4294901760, %v12793_v16  ;;  %v14705_v56 = vld [vmem:[#allocation137_spill] sm:$0xff]  ;;  %v14709_v40 = vld [vmem:[#allocation122_spill] sm:$0xff] }
 0x45e   :  { %v14701_v45 = vld [vmem:[#allocation139_spill] sm:$0xff]  ;;  %v5663_v1 = vsub.f32 %v12787_v49, %v14702_v24  ;;  %9306 = vmatprep.subr.bf16.mxu0 %v9305_v19  ;;  %v14710_v51 = vand.u32 4294901760, %v14709_v40  ;;  %v14715_v15 = vand.u32 4294901760, %v12816_v58 }
 0x45f   :  { %4165 = vmatmul.mubr.f32.vlgmr.msra.gmra.mrb[46].mxu1 %v14697_v57  ;;  %5384 = vmatprep.mubr.f32.mxu0 %v14701_v45  ;;  %v5650_v2 = vand.u32 4294901760, %v5649_v42  ;;  %v5670_v41 = vsub.f32 %v12793_v16, %v14704_v13  ;;  %v14706_v42 = vld [vmem:[#allocation143_spill] sm:$0xff] }
 0x460   :  { %4171 = vmatprep.mubr.f32.mxu1 %v14699_v32  ;;  %8984 = vmatpush3.bf16.msra.mxu1 %v14700_v0  ;;  %v12839_v45 = vand.u32 4294901760, %v14706_v42  ;;  %v9309_v0 = vpack.c.bf16 %v5643_v36, %v5636_v59  ;;  %v14707_v24 = vld [vmem:[#allocation119_spill] sm:$0xff]  ;;  %v12849_v13 = vsub.f32 %v14709_v40, %v14710_v51  ;;  %v5664_v36 = vand.u32 4294901760, %v5663_v1  ;;  %v14714_v59 = vld [vmem:[#allocation116_spill] sm:$0xff] }
 0x461   :  { %8986 = vmatprep.subr.bf16.mxu1 %v14703_v37  ;;  %v14708_v7 = vand.u32 4294901760, %v14707_v24  ;;  %5386 = vmatmul.mubr.f32.gmra.mrb[26].mxu0 %v14711_v21  ;;  %v5677_v51 = vsub.f32 %v12816_v58, %v14715_v15  ;;  %v14716_v40 = vand.u32 4294901760, %v12821_v33  ;;  %v14721_v15 = vld [vmem:[#allocation91_spill] sm:$0xff] }
 0x462   :  { %7974 = vmatprep.mubr.f32.mxu0 %v12839_v45  ;;  %9308 = vmatpush3.bf16.msra.mxu0 %v9305_v19 }
 0x463   :  { %4174 = vmatmul.mubr.f32.gmra.mrb[48].mxu1 %v14705_v56  ;;  %v12844_v37 = vsub.f32 %v14707_v24, %v14708_v7  ;;  %v9313_v24 = vpack.c.bf16 %v5657_v22, %v5650_v2  ;;  %v5671_v7 = vand.u32 4294901760, %v5670_v41  ;;  %v5684_v21 = vsub.f32 %v12821_v33, %v14716_v40  ;;  %9310 = vmatprep.subr.bf16.mxu0 %v9309_v0  ;;  %v14719_v2 = vld [vmem:[#allocation126_spill] sm:$0xff] }
 0x464   :  { %4278 = vmatprep.mubr.f32.mxu1 %v14712_v55  ;;  %8988 = vmatpush3.bf16.msra.mxu1 %v14713_v6  ;;  %v14717_v6 = vld [vmem:[#allocation125_spill] sm:$0xff]  ;;  %v14720_v22 = vand.u32 4294901760, %v14719_v2  ;;  %v5678_v53 = vand.u32 4294901760, %v5677_v51 }
 0x465   :  { %8990 = vmatprep.subr.bf16.mxu1 %v14714_v59  ;;  %v14718_v1 = vand.u32 4294901760, %v14717_v6  ;;  %v14722_v59 = vld [vmem:[#allocation22_spill] sm:$0xff]  ;;  %v9317_v40 = vpack.c.bf16 %v5671_v7, %v5664_v36  ;;  %v5685_v35 = vand.u32 4294901760, %v5684_v21  ;;  %v14723_v55 = vand.u32 4294901760, %v12844_v37 }
 0x466   :  { %v12873_v41 = vsub.f32 %v14719_v2, %v14720_v22  ;;  %9312 = vmatpush3.bf16.msra.mxu0 %v9309_v0  ;;  %v14726_v0 = vld [vmem:[#allocation38_spill] sm:$0xff] }
 0x467   :  { %v12868_v19 = vsub.f32 %v14717_v6, %v14718_v1  ;;  %9314 = vmatprep.subr.bf16.mxu0 %v9313_v24  ;;  %v5691_v47 = vsub.f32 %v12844_v37, %v14723_v55  ;;  %v14724_v6 = vand.u32 4294901760, %v12849_v13  ;;  %v9321_v36 = vpack.c.bf16 %v5685_v35, %v5678_v53  ;;  %v14729_v35 = vld [vmem:[#allocation51_spill] sm:$0xff] }
 0x468   :  { %8992 = vmatpush3.bf16.msra.mxu1 %v14721_v15  ;;  %v13966_v22 = vand.u32 4294901760, %v12873_v41  ;;  %v14725_v15 = vld [vmem:[#allocation30_spill] sm:$0xff] }
 0x469   :  { %8994 = vmatprep.subr.bf16.mxu1 %v14722_v59  ;;  %v5698_v1 = vsub.f32 %v12849_v13, %v14724_v6  ;;  %v13965_v2 = vand.u32 4294901760, %v12868_v19  ;;  %v5692_v21 = vand.u32 4294901760, %v5691_v47  ;;  %v14727_v6 = vld [vmem:[#allocation79_spill] sm:$0xff]  ;;  %v14728_v59 = vld [vmem:[#allocation46_spill] sm:$0xff]  ;;  %v14730_v47 = vld [vmem:[#allocation60_spill] sm:$0xff] }
 0x46a   :  { %9316 = vmatpush3.bf16.msra.mxu0 %v9313_v24  ;;  %v5712_v55 = vsub.f32 %v12873_v41, %v13966_v22  ;;  %v14732_v22 = vld [vmem:[#allocation89_spill] sm:$0xff] }
 0x46b   :  { %9318 = vmatprep.subr.bf16.mxu0 %v9317_v40  ;;  %v5699_v7 = vand.u32 4294901760, %v5698_v1  ;;  %v5705_v51 = vsub.f32 %v12868_v19, %v13965_v2  ;;  %v14731_v2 = vld [vmem:[#allocation101_spill] sm:$0xff] }
 0x46c   :  { %8996 = vmatpush3.bf16.msra.mxu1 %v14725_v15  ;;  %v5713_v53 = vand.u32 4294901760, %v5712_v55  ;;  %v14738_v55 = vld [vmem:[#allocation144_spill] sm:$0xff] }
 0x46d   :  { %8998 = vmatprep.subr.bf16.mxu1 %v14726_v0  ;;  %v9325_v24 = vpack.c.bf16 %v5699_v7, %v5692_v21  ;;  %v5706_v0 = vand.u32 4294901760, %v5705_v51  ;;  %v9333_v21 = vpack.c.bf16 %v12671_v11, %v12666_v23  ;;  %v14735_v7 = vld [vmem:[#allocation64_spill] sm:$0xff] }
 0x46e   :  { %9320 = vmatpush3.bf16.msra.mxu0 %v9317_v40  ;;  %v14733_v40 = vand.u32 4294901760, %v14613_v29  ;;  %v14739_v29 = vand.u32 4294901760, %v11906_v62  ;;  %v14743_v62 = vand.u32 4294901760, %v11926_v27  ;;  %v14749_v27 = vand.u32 4294901760, %v11945_v48 }
 0x46f   :  { %9322 = vmatprep.subr.bf16.mxu0 %v9321_v36  ;;  %v9329_v1 = vpack.c.bf16 %v5713_v53, %v5706_v0  ;;  %v14736_v0 = vand.u32 4294901760, %v11885_v18  ;;  %v14741_v53 = vand.u32 4294901760, %v14697_v57  ;;  %v14742_v18 = vand.u32 4294901760, %v14699_v32 }
 0x470   :  { %9000 = vmatpush3.bf16.msra.mxu1 %v14727_v6 }
 0x471   :  { %9002 = vmatprep.subr.bf16.mxu1 %v14728_v59  ;;  %v14734_v59 = vand.u32 4294901760, %v14612_v43  ;;  %v14740_v43 = vand.u32 4294901760, %v11911_v20  ;;  %v14744_v20 = vand.u32 4294901760, %v11929_v25  ;;  %v14750_v25 = vand.u32 4294901760, %v11947_v14 }
 0x472   :  { %9324 = vmatpush3.bf16.msra.mxu0 %v9321_v36  ;;  %v14737_v36 = vand.u32 4294901760, %v11890_v50  ;;  %v12926_v50 = vsub.f32 %v14706_v42, %v12839_v45  ;;  %v14747_v42 = vand.u32 4294901760, %v14705_v56  ;;  %v9345_v56 = vpack.c.bf16 %v12763_v39, %v12754_v54 }
 0x473   :  { %9326 = vmatprep.subr.bf16.mxu0 %v9325_v24  ;;  %v9013_v6 = vpack.c.bf16 %v14734_v59, %v14733_v40  ;;  %v9017_v59 = vpack.c.bf16 %v14740_v43, %v14739_v29  ;;  %v9019_v57 = vpack.c.bf16 %v14744_v20, %v14743_v62  ;;  %v14746_v40 = vand.u32 4294901760, %v11939_v60 }
 0x474   :  { %9004 = vmatpush3.bf16.msra.mxu1 %v14729_v35  ;;  %v9015_v51 = vpack.c.bf16 %v14737_v36, %v14736_v0  ;;  %v9341_v0 = vpack.c.bf16 %v12737_v12, %v12732_v8  ;;  %v9023_v36 = vpack.c.bf16 %v14750_v25, %v14749_v27  ;;  %v14752_v60 = vand.u32 4294901760, %v11958_v10  ;;  %v14771_v27 = vld [vmem:[#allocation90_spill] sm:$0xff] }
 0x475   :  { %9006 = vmatprep.subr.bf16.mxu1 %v14730_v47  ;;  %v14753_v29 = vand.u32 4294901760, %v14628_v5  ;;  %v14754_v43 = vand.u32 4294901760, %v14627_v46  ;;  %v14755_v14 = vand.u32 4294901760, %v14633_v28  ;;  %v9349_v10 = vpack.c.bf16 %v12793_v16, %v12787_v49 }
 0x476   :  { %9328 = vmatpush3.bf16.msra.mxu0 %v9325_v24  ;;  %v12911_v24 = vand.u32 4294901760, %v14738_v55  ;;  %v14759_v46 = vand.u32 4294901760, %v14645_v26  ;;  %v14761_v62 = vand.u32 4294901760, %v14658_v61  ;;  %v14762_v20 = vand.u32 4294901760, %v14657_v63  ;;  %v14769_v63 = vld [vmem:[#allocation50_spill] sm:$0xff] }
 0x477   :  { %9330 = vmatprep.subr.bf16.mxu0 %v9329_v1  ;;  %v9027_v48 = vpack.c.bf16 %v14754_v43, %v14753_v29  ;;  %v14772_v25 = vand.u32 4294901760, %v14771_v27  ;;  %v14777_v29 = vld [vmem:[#allocation36_spill] sm:$0xff] }
 0x478   :  { %9008 = vmatpush3.bf16.msra.mxu1 %v14731_v2  ;;  %v12999_v43 = vsub.f32 %v14738_v55, %v12911_v24  ;;  %v14783_v55 = vld [vmem:[#allocation29_spill] sm:$0xff] }
 0x479   :  { %9010 = vmatprep.subr.bf16.mxu1 %v14732_v22 }
 0x47a   :  { %9332 = vmatpush3.bf16.msra.mxu0 %v9329_v1  ;;  %v14745_v1 = vand.u32 4294901760, %v11937_v34  ;;  %v14751_v34 = vand.u32 4294901760, %v11956_v9 }
 0x47b   :  { %9334 = vmatprep.subr.bf16.mxu0 %v9333_v21 }
 0x47c   :  { %9012 = vmatpush3.bf16.msra.mxu1 %v14735_v7  ;;  %v9021_v32 = vpack.c.bf16 %v14746_v40, %v14745_v1  ;;  %v14765_v1 = vld [vmem:[#allocation72_spill] sm:$0xff] }
 0x47d   :  { %9014 = vmatprep.subr.bf16.mxu1 %v9013_v6  ;;  %v9337_v6 = vpack.c.bf16 %v12701_v3, %v12696_v52  ;;  %7975 = vmatmul.mubr.f32.vlgmr.msra.gmra.mrb[28].mxu0 %v12911_v24  ;;  %v14766_v40 = vand.u32 4294901760, %v14765_v1  ;;  %v14797_v1 = vld [vmem:[#allocation93_spill] sm:$0xff] }
 0x47e   :  { %9336 = vmatpush3.bf16.msra.mxu0 %v9333_v21  ;;  %8009 = vmatprep.mubr.f32.mxu0 %v12926_v50  ;;  %v14748_v21 = vld [vmem:[#allocation129_spill] sm:$0xff] }
 0x47f   :  { %4282 = vmatmul.mubr.f32.vlgmr.msra.gmra.mrb[50].mxu1 %v14741_v53  ;;  %9338 = vmatprep.subr.bf16.mxu0 %v9337_v6  ;;  %v14757_v53 = vand.u32 4294901760, %v14642_v17  ;;  %v9035_v17 = vpack.c.bf16 %v14762_v20, %v14761_v62  ;;  %v14790_v62 = vld [vmem:[#allocation88_spill] sm:$0xff]  ;;  %v14791_v20 = vld [vmem:[#allocation38_spill] sm:$0xff] }
 0x480   :  { %4289 = vmatprep.mubr.f32.mxu1 %v14742_v18  ;;  %9016 = vmatpush3.bf16.msra.mxu1 %v9015_v51  ;;  %v9025_v51 = vpack.c.bf16 %v14752_v60, %v14751_v34  ;;  %v14760_v18 = vand.u32 4294901760, %v14644_v30  ;;  %v9357_v30 = vpack.c.bf16 %v12849_v13, %v12844_v37  ;;  %v14775_v60 = vld [vmem:[#allocation17_spill] sm:$0xff] }
 0x481   :  { %9018 = vmatprep.subr.bf16.mxu1 %v9017_v59  ;;  %v14756_v59 = vand.u32 4294901760, %v14632_v38  ;;  %v9353_v38 = vpack.c.bf16 %v12821_v33, %v12816_v58 }
 0x482   :  { %9340 = vmatpush3.bf16.msra.mxu0 %v9337_v6  ;;  %v14758_v6 = vand.u32 4294901760, %v14641_v4  ;;  %v9033_v28 = vpack.c.bf16 %v14760_v18, %v14759_v46  ;;  %v14763_v4 = vand.u32 4294901760, %v14661_v31  ;;  %v14786_v46 = vld [vmem:[#allocation116_spill] sm:$0xff]  ;;  %v14787_v18 = vld [vmem:[#allocation35_spill] sm:$0xff] }
 0x483   :  { %4293 = vmatmul.mubr.f32.gmra.mrb[52].mxu1 %v14747_v42  ;;  %9342 = vmatprep.subr.bf16.mxu0 %v9341_v0  ;;  %v9029_v9 = vpack.c.bf16 %v14756_v59, %v14755_v14  ;;  %v14770_v42 = vand.u32 4294901760, %v14769_v63  ;;  %v14779_v14 = vld [vmem:[#allocation128_spill] sm:$0xff]  ;;  %v5585_v59 = vand.u32 4294901760, %v12926_v50 }
 0x484   :  { %4459 = vmatprep.mubr.f32.mxu1 %v14748_v21  ;;  %9020 = vmatpush3.bf16.msra.mxu1 %v9019_v57  ;;  %v9031_v5 = vpack.c.bf16 %v14758_v6, %v14757_v53  ;;  %v14764_v57 = vand.u32 4294901760, %v14660_v44  ;;  %v9361_v44 = vpack.c.bf16 %v12873_v41, %v12868_v19  ;;  %v14782_v53 = vld [vmem:[#allocation81_spill] sm:$0xff] }
 0x485   :  { %9022 = vmatprep.subr.bf16.mxu1 %v9021_v32  ;;  %v14767_v32 = vld [vmem:[#allocation76_spill] sm:$0xff]  ;;  %v9041_v31 = vpack.c.bf16 %v14772_v25, %v14770_v42  ;;  %v14784_v6 = vld [vmem:[#allocation133_spill] sm:$0xff]  ;;  %v14802_v25 = vld [vmem:[#allocation59_spill] sm:$0xff] }
 0x486   :  { %9344 = vmatpush3.bf16.msra.mxu0 %v9341_v0  ;;  %v9037_v26 = vpack.c.bf16 %v14764_v57, %v14763_v4  ;;  %v14768_v0 = vand.u32 4294901760, %v14767_v32  ;;  %v14794_v4 = vld [vmem:[#allocation46_spill] sm:$0xff]  ;;  %v14795_v57 = vld [vmem:[#allocation92_spill] sm:$0xff]  ;;  %v14799_v32 = vld [vmem:[#allocation123_spill] sm:$0xff] }
 0x487   :  { %9346 = vmatprep.subr.bf16.mxu0 %v9345_v56 }
 0x488   :  { %9024 = vmatpush3.bf16.msra.mxu1 %v9023_v36  ;;  %v9039_v61 = vpack.c.bf16 %v14768_v0, %v14766_v40  ;;  %v14773_v36 = vld [vmem:[#allocation120_spill] sm:$0xff]  ;;  %v14798_v40 = vand.u32 4294901760, %v14797_v1 }
 0x489   :  { %9026 = vmatprep.subr.bf16.mxu1 %v9025_v51  ;;  %v14774_v34 = vand.u32 4294901760, %v14773_v36  ;;  %v14776_v51 = vand.u32 4294901760, %v14775_v60  ;;  %v14800_v0 = vld [vmem:[#allocation16_spill] sm:$0xff] }
 0x48a   :  { %9348 = vmatpush3.bf16.msra.mxu0 %v9345_v56  ;;  %v14804_v36 = vld [vmem:[#allocation124_spill] sm:$0xff] }
 0x48b   :  { %9350 = vmatprep.subr.bf16.mxu0 %v9349_v10  ;;  %v9043_v56 = vpack.c.bf16 %v14776_v51, %v14774_v34  ;;  %v14805_v34 = vld [vmem:[#allocation58_spill] sm:$0xff]  ;;  %v14807_v51 = vld [vmem:[#allocation105_spill] sm:$0xff] }
 0x48c   :  { %9028 = vmatpush3.bf16.msra.mxu1 %v9027_v48  ;;  %v14778_v48 = vld [vmem:[#allocation27_spill] sm:$0xff]  ;;  %v14806_v60 = vand.u32 4294901760, %v14805_v34 }
 0x48d   :  { %9030 = vmatprep.subr.bf16.mxu1 %v9029_v9  ;;  %v14780_v9 = vld [vmem:[#allocation135_spill] sm:$0xff] }
 0x48e   :  { %9352 = vmatpush3.bf16.msra.mxu0 %v9349_v10  ;;  %v14781_v10 = vld [vmem:[#allocation75_spill] sm:$0xff] }
 0x48f   :  { %9354 = vmatprep.subr.bf16.mxu0 %v9353_v38 }
 0x490   :  { %9032 = vmatpush3.bf16.msra.mxu1 %v9031_v5  ;;  %v14785_v5 = vld [vmem:[#allocation107_spill] sm:$0xff] }
 0x491   :  { %9034 = vmatprep.subr.bf16.mxu1 %v9033_v28  ;;  %v14788_v28 = vld [vmem:[#allocation91_spill] sm:$0xff] }
 0x492   :  { %9356 = vmatpush3.bf16.msra.mxu0 %v9353_v38  ;;  %v14789_v38 = vld [vmem:[#allocation22_spill] sm:$0xff] }
 0x493   :  { %9358 = vmatprep.subr.bf16.mxu0 %v9357_v30 }
 0x494   :  { %9036 = vmatpush3.bf16.msra.mxu1 %v9035_v17  ;;  %v14793_v17 = vld [vmem:[#allocation79_spill] sm:$0xff] }
 0x495   :  { %9038 = vmatprep.subr.bf16.mxu1 %v9037_v26  ;;  %v14796_v26 = vand.u32 4294901760, %v14795_v57 }
 0x496   :  { %9360 = vmatpush3.bf16.msra.mxu0 %v9357_v30 }
 0x497   :  { %9362 = vmatprep.subr.bf16.mxu0 %v9361_v44  ;;  %v4827_v30 = vsub.f32 %v14795_v57, %v14796_v26 }
 0x498   :  { %9040 = vmatpush3.bf16.msra.mxu1 %v9039_v61  ;;  %v14801_v61 = vand.u32 4294901760, %v14800_v0 }
 0x499   :  { %9042 = vmatprep.subr.bf16.mxu1 %v9041_v31  ;;  %v4828_v42 = vand.u32 4294901760, %v4827_v30  ;;  %v14803_v31 = vand.u32 4294901760, %v14802_v25 }
 0x49a   :  { %9364 = vmatpush3.bf16.msra.mxu0 %v9361_v44  ;;  %v4715_v63 = vsub.f32 %v14800_v0, %v14801_v61  ;;  %v14819_v0 = vand.u32 4294901760, %v12671_v11 }
 0x49b   :  { %9366 = vmatprep.subr.bf16.mxu0 %v14778_v48  ;;  %v4722_v44 = vsub.f32 %v14802_v25, %v14803_v31 }
 0x49c   :  { %9044 = vmatpush3.bf16.msra.mxu1 %v9043_v56  ;;  %v14808_v56 = vand.u32 4294901760, %v14807_v51 }
 0x49d   :  { %9046 = vmatprep.subr.bf16.mxu1 %v14777_v29  ;;  %8010 = vmatmul.mubr.f32.vlgmr.msra.gmra.mrb[28].mxu0 %v12999_v43 }
 0x49e   :  { %9368 = vmatpush3.bf16.msra.mxu0 %v14778_v48  ;;  %8044 = vmatprep.mubr.f32.mxu0 %v5585_v59  ;;  %v4848_v29 = vsub.f32 %v14807_v51, %v14808_v56 }
 0x49f   :  { %4461 = vmatmul.mubr.f32.vlgmr.msra.gmra.mrb[54].mxu1 %v14779_v14  ;;  %9370 = vmatprep.subr.bf16.mxu0 %v14783_v55 }
 0x4a0   :  { %4466 = vmatprep.mubr.f32.mxu1 %v14780_v9  ;;  %9048 = vmatpush3.bf16.msra.mxu1 %v14781_v10  ;;  %v4716_v10 = vand.u32 4294901760, %v4715_v63  ;;  %v4849_v25 = vand.u32 4294901760, %v4848_v29  ;;  %v14824_v29 = vld [vmem:[#allocation26_spill] sm:$0xff] }
 0x4a1   :  { %9050 = vmatprep.subr.bf16.mxu1 %v14782_v53 }
 0x4a2   :  { %9372 = vmatpush3.bf16.msra.mxu0 %v14783_v55 }
 0x4a3   :  { %4468 = vmatmul.mubr.f32.gmra.mrb[56].mxu1 %v14784_v6  ;;  %9374 = vmatprep.subr.bf16.mxu0 %v14787_v18 }
 0x4a4   :  { %9052 = vmatpush3.bf16.msra.mxu1 %v14785_v5  ;;  %4570 = vmatprep.mubr.f32.mxu1 %v14748_v21  ;;  %v14792_v21 = vld [vmem:[#allocation117_spill] sm:$0xff] }
 0x4a5   :  { %9054 = vmatprep.subr.bf16.mxu1 %v14786_v46  ;;  %v14811_v46 = vld [vmem:[#allocation110_spill] sm:$0xff] }
 0x4a6   :  { %9376 = vmatpush3.bf16.msra.mxu0 %v14787_v18 }
 0x4a7   :  { %9378 = vmatprep.subr.bf16.mxu0 %v14790_v62 }
 0x4a8   :  { %9056 = vmatpush3.bf16.msra.mxu1 %v14788_v28  ;;  %v14812_v28 = vand.u32 4294901760, %v14811_v46 }
 0x4a9   :  { %9058 = vmatprep.subr.bf16.mxu1 %v14789_v38 }
 0x4aa   :  { %9380 = vmatpush3.bf16.msra.mxu0 %v14790_v62  ;;  %v4736_v38 = vsub.f32 %v14811_v46, %v14812_v28 }
 0x4ab   :  { %9382 = vmatprep.subr.bf16.mxu0 %v14792_v21 }
 0x4ac   :  { %9060 = vmatpush3.bf16.msra.mxu1 %v14725_v15  ;;  %v4834_v15 = vsub.f32 %v14797_v1, %v14798_v40  ;;  %v14817_v40 = vld [vmem:[#allocation127_spill] sm:$0xff] }
 0x4ad   :  { %9062 = vmatprep.subr.bf16.mxu1 %v14791_v20 }
 0x4ae   :  { %9384 = vmatpush3.bf16.msra.mxu0 %v14792_v21  ;;  %v4835_v27 = vand.u32 4294901760, %v4834_v15  ;;  %v14818_v15 = vand.u32 4294901760, %v12666_v23 }
 0x4af   :  { %9386 = vmatprep.subr.bf16.mxu0 %v14799_v32 }
 0x4b0   :  { %9064 = vmatpush3.bf16.msra.mxu1 %v14793_v17  ;;  %v9109_v20 = vpack.c.bf16 %v4835_v27, %v4828_v42  ;;  %v4723_v17 = vand.u32 4294901760, %v4722_v44  ;;  %v9397_v61 = vpack.c.bf16 %v14819_v0, %v14818_v15  ;;  %v4737_v42 = vand.u32 4294901760, %v4736_v38  ;;  %v14820_v27 = vld [vmem:[#allocation20_spill] sm:$0xff]  ;;  %v14834_v15 = vld [vmem:[#allocation61_spill] sm:$0xff] }
 0x4b1   :  { %9066 = vmatprep.subr.bf16.mxu1 %v14794_v4  ;;  %v14813_v4 = vld [vmem:[#allocation18_spill] sm:$0xff]  ;;  %v14821_v31 = vand.u32 4294901760, %v14820_v27  ;;  %v14828_v38 = vand.u32 4294901760, %v12696_v52  ;;  %v14832_v52 = vld [vmem:[#allocation57_spill] sm:$0xff]  ;;  %v14835_v0 = vand.u32 4294901760, %v14834_v15 }
 0x4b2   :  { %9388 = vmatpush3.bf16.msra.mxu0 %v14799_v32  ;;  %v14814_v57 = vand.u32 4294901760, %v14813_v4  ;;  %v9111_v23 = vpack.c.bf16 %v4723_v17, %v4716_v10  ;;  %v14829_v10 = vand.u32 4294901760, %v12701_v3 }
 0x4b3   :  { %9390 = vmatprep.subr.bf16.mxu0 %v14804_v36  ;;  %v4743_v44 = vsub.f32 %v14820_v27, %v14821_v31  ;;  %v14840_v31 = vld [vmem:[#allocation130_spill] sm:$0xff] }
 0x4b4   :  { %9068 = vmatpush3.bf16.msra.mxu1 %v14729_v35  ;;  %v4841_v35 = vsub.f32 %v14805_v34, %v14806_v60  ;;  %v4855_v26 = vsub.f32 %v14813_v4, %v14814_v57  ;;  %v14822_v34 = vld [vmem:[#allocation111_spill] sm:$0xff]  ;;  %v14830_v4 = vand.u32 4294901760, %v12732_v8  ;;  %v14831_v57 = vand.u32 4294901760, %v12737_v12  ;;  %v14836_v12 = vld [vmem:[#allocation40_spill] sm:$0xff] }
 0x4b5   :  { %9070 = vmatprep.subr.bf16.mxu1 %v14730_v47  ;;  %v14809_v47 = vld [vmem:[#allocation53_spill] sm:$0xff]  ;;  %v14823_v60 = vand.u32 4294901760, %v14822_v34 }
 0x4b6   :  { %v14810_v53 = vand.u32 4294901760, %v14809_v47  ;;  %9392 = vmatpush3.bf16.msra.mxu0 %v14804_v36  ;;  %v4842_v63 = vand.u32 4294901760, %v4841_v35  ;;  %v4856_v11 = vand.u32 4294901760, %v4855_v26  ;;  %v5595_v35 = vand.u32 4294901760, %v12999_v43 }
 0x4b7   :  { %9394 = vmatprep.subr.bf16.mxu0 %v14817_v40  ;;  %v4750_v51 = vsub.f32 %v14822_v34, %v14823_v60  ;;  %v9405_v26 = vpack.c.bf16 %v14831_v57, %v14830_v4  ;;  %v14841_v34 = vld [vmem:[#allocation44_spill] sm:$0xff]  ;;  %v14850_v4 = vand.u32 4294901760, %v12763_v39  ;;  %v14856_v39 = vand.u32 4294901760, %v12793_v16 }
 0x4b8   :  { %9072 = vmatpush3.bf16.msra.mxu1 %v14731_v2  ;;  %v4729_v5 = vsub.f32 %v14809_v47, %v14810_v53  ;;  %v14815_v2 = vld [vmem:[#allocation97_spill] sm:$0xff]  ;;  %v14825_v47 = vand.u32 4294901760, %v14824_v29  ;;  %v14842_v60 = vand.u32 4294901760, %v14841_v34 }
 0x4b9   :  { %9074 = vmatprep.subr.bf16.mxu1 %v14732_v22  ;;  %v14816_v30 = vand.u32 4294901760, %v14815_v2 }
 0x4ba   :  { %v4730_v22 = vand.u32 4294901760, %v4729_v5  ;;  %9396 = vmatpush3.bf16.msra.mxu0 %v14817_v40  ;;  %v4869_v53 = vsub.f32 %v14824_v29, %v14825_v47  ;;  %v14826_v5 = vld [vmem:[#allocation28_spill] sm:$0xff] }
 0x4bb   :  { %v4862_v1 = vsub.f32 %v14815_v2, %v14816_v30  ;;  %9398 = vmatprep.subr.bf16.mxu0 %v9397_v61  ;;  %v14827_v46 = vand.u32 4294901760, %v14826_v5  ;;  %v4744_v2 = vand.u32 4294901760, %v4743_v44  ;;  %v4751_v30 = vand.u32 4294901760, %v4750_v51  ;;  %v14845_v47 = vld [vmem:[#allocation48_spill] sm:$0xff] }
 0x4bc   :  { %9076 = vmatpush3.bf16.msra.mxu1 %v14735_v7  ;;  %v9113_v7 = vpack.c.bf16 %v4849_v25, %v4842_v63  ;;  %v9115_v17 = vpack.c.bf16 %v4737_v42, %v4730_v22  ;;  %v4764_v63 = vsub.f32 %v14834_v15, %v14835_v0  ;;  %v4870_v8 = vand.u32 4294901760, %v4869_v53  ;;  %v14838_v42 = vld [vmem:[#allocation41_spill] sm:$0xff]  ;;  %v14853_v15 = vld [vmem:[#allocation108_spill] sm:$0xff] }
 0x4bd   :  { %9110 = vmatprep.subr.bf16.mxu1 %v9109_v20  ;;  %v4863_v56 = vand.u32 4294901760, %v4862_v1  ;;  %v4876_v28 = vsub.f32 %v14826_v5, %v14827_v46  ;;  %v9401_v20 = vpack.c.bf16 %v14829_v10, %v14828_v38  ;;  %8045 = vmatmul.mubr.f32.vlgmr.msra.gmra.mrb[28].mxu0 %v5595_v35  ;;  %v14833_v1 = vand.u32 4294901760, %v14832_v52  ;;  %v14847_v5 = vld [vmem:[#allocation63_spill] sm:$0xff] }
 0x4be   :  { %9400 = vmatpush3.bf16.msra.mxu0 %v9397_v61  ;;  %8079 = vmatprep.mubr.f32.mxu0 %v12839_v45  ;;  %v14837_v25 = vand.u32 4294901760, %v14836_v12  ;;  %v14839_v61 = vand.u32 4294901760, %v14838_v42  ;;  %v9119_v44 = vpack.c.bf16 %v4751_v30, %v4744_v2  ;;  %v4771_v51 = vsub.f32 %v14841_v34, %v14842_v60 }
 0x4bf   :  { %4572 = vmatmul.mubr.f32.vlgmr.msra.gmra.mrb[58].mxu1 %v14779_v14  ;;  %v9117_v14 = vpack.c.bf16 %v4863_v56, %v4856_v11  ;;  %v4757_v3 = vsub.f32 %v14832_v52, %v14833_v1  ;;  %9402 = vmatprep.subr.bf16.mxu0 %v9401_v20  ;;  %v4765_v29 = vand.u32 4294901760, %v4764_v63  ;;  %v14846_v53 = vand.u32 4294901760, %v14845_v47  ;;  %v14851_v52 = vld [vmem:[#allocation99_spill] sm:$0xff] }
 0x4c0   :  { %4577 = vmatprep.mubr.f32.mxu1 %v14780_v9  ;;  %9112 = vmatpush3.bf16.msra.mxu1 %v9111_v23  ;;  %v4877_v9 = vand.u32 4294901760, %v4876_v28  ;;  %v4883_v22 = vsub.f32 %v14836_v12, %v14837_v25  ;;  %v4890_v27 = vsub.f32 %v14838_v42, %v14839_v61  ;;  %v14843_v23 = vld [vmem:[#allocation45_spill] sm:$0xff]  ;;  %v14848_v46 = vand.u32 4294901760, %v14847_v5 }
 0x4c1   :  { %9114 = vmatprep.subr.bf16.mxu1 %v9113_v7  ;;  %v14844_v11 = vand.u32 4294901760, %v14843_v23  ;;  %v4758_v7 = vand.u32 4294901760, %v4757_v3  ;;  %v14849_v10 = vand.u32 4294901760, %v12754_v54  ;;  %v4772_v2 = vand.u32 4294901760, %v4771_v51 }
 0x4c2   :  { %9404 = vmatpush3.bf16.msra.mxu0 %v9401_v20  ;;  %v4904_v28 = vsub.f32 %v14847_v5, %v14848_v46  ;;  %v9121_v38 = vpack.c.bf16 %v4877_v9, %v4870_v8  ;;  %v4891_v20 = vand.u32 4294901760, %v4890_v27  ;;  %v14852_v1 = vand.u32 4294901760, %v14851_v52  ;;  %v14859_v27 = vld [vmem:[#allocation71_spill] sm:$0xff] }
 0x4c3   :  { %4579 = vmatmul.mubr.f32.gmra.mrb[60].mxu1 %v14784_v6  ;;  %v4778_v56 = vsub.f32 %v14843_v23, %v14844_v11  ;;  %v4897_v6 = vsub.f32 %v14845_v47, %v14846_v53  ;;  %9406 = vmatprep.subr.bf16.mxu0 %v9405_v26  ;;  %v9409_v57 = vpack.c.bf16 %v14850_v4, %v14849_v10  ;;  %v14854_v0 = vand.u32 4294901760, %v14853_v15  ;;  %v14865_v47 = vld [vmem:[#allocation84_spill] sm:$0xff]  ;;  %v14867_v46 = vld [vmem:[#allocation95_spill] sm:$0xff] }
 0x4c4   :  { %4936 = vmatprep.mubr.f32.mxu1 %v14840_v31  ;;  %9116 = vmatpush3.bf16.msra.mxu1 %v9115_v17  ;;  %v4884_v17 = vand.u32 4294901760, %v4883_v22  ;;  %v4785_v3 = vsub.f32 %v14851_v52, %v14852_v1  ;;  %v14855_v54 = vand.u32 4294901760, %v12787_v49  ;;  %v4905_v12 = vand.u32 4294901760, %v4904_v28  ;;  %v14857_v22 = vld [vmem:[#allocation100_spill] sm:$0xff]  ;;  %v14873_v1 = vld [vmem:[#allocation19_spill] sm:$0xff] }
 0x4c5   :  { %9118 = vmatprep.subr.bf16.mxu1 %v9117_v14  ;;  %v4779_v30 = vand.u32 4294901760, %v4778_v56  ;;  %v4792_v63 = vsub.f32 %v14853_v15, %v14854_v0  ;;  %v9123_v14 = vpack.c.bf16 %v4765_v29, %v4758_v7  ;;  %v4898_v9 = vand.u32 4294901760, %v4897_v6  ;;  %v14863_v56 = vld [vmem:[#allocation82_spill] sm:$0xff] }
 0x4c6   :  { %9408 = vmatpush3.bf16.msra.mxu0 %v9405_v26  ;;  %v9413_v8 = vpack.c.bf16 %v14856_v39, %v14855_v54  ;;  %v9125_v25 = vpack.c.bf16 %v4891_v20, %v4884_v17  ;;  %v14858_v42 = vand.u32 4294901760, %v14857_v22  ;;  %v14860_v34 = vand.u32 4294901760, %v14859_v27 }
 0x4c7   :  { %9410 = vmatprep.subr.bf16.mxu0 %v9409_v57  ;;  %v9127_v26 = vpack.c.bf16 %v4779_v30, %v4772_v2  ;;  %v14861_v60 = vand.u32 4294901760, %v12816_v58  ;;  %v14862_v49 = vand.u32 4294901760, %v12821_v33  ;;  %v4786_v51 = vand.u32 4294901760, %v4785_v3  ;;  %v14871_v2 = vld [vmem:[#allocation115_spill] sm:$0xff] }
 0x4c8   :  { %9120 = vmatpush3.bf16.msra.mxu1 %v9119_v44  ;;  %v4911_v61 = vsub.f32 %v14857_v22, %v14858_v42  ;;  %v4918_v44 = vsub.f32 %v14859_v27, %v14860_v34  ;;  %v4793_v23 = vand.u32 4294901760, %v4792_v63  ;;  %v9129_v11 = vpack.c.bf16 %v4905_v12, %v4898_v9  ;;  %v14880_v34 = vld [vmem:[#allocation132_spill] sm:$0xff] }
 0x4c9   :  { %9122 = vmatprep.subr.bf16.mxu1 %v9121_v38  ;;  %v9417_v16 = vpack.c.bf16 %v14862_v49, %v14861_v60  ;;  %v14864_v7 = vand.u32 4294901760, %v14863_v56  ;;  %v14866_v53 = vand.u32 4294901760, %v14865_v47  ;;  %v14868_v33 = vand.u32 4294901760, %v14867_v46  ;;  %v14869_v38 = vld [vmem:[#allocation54_spill] sm:$0xff] }
 0x4ca   :  { %9412 = vmatpush3.bf16.msra.mxu0 %v9409_v57  ;;  %v4912_v5 = vand.u32 4294901760, %v4911_v61  ;;  %v4919_v58 = vand.u32 4294901760, %v4918_v44  ;;  %v14870_v10 = vand.u32 4294901760, %v14869_v38  ;;  %v9131_v57 = vpack.c.bf16 %v4793_v23, %v4786_v51  ;;  %v14881_v44 = vld [vmem:[#allocation139_spill] sm:$0xff]  ;;  %v14885_v60 = vld [vmem:[#allocation114_spill] sm:$0xff]  ;;  %v14888_v51 = vld [vmem:[#allocation121_spill] sm:$0xff] }
 0x4cb   :  { %v4799_v29 = vsub.f32 %v14863_v56, %v14864_v7  ;;  %v4806_v6 = vsub.f32 %v14865_v47, %v14866_v53  ;;  %9414 = vmatprep.subr.bf16.mxu0 %v9413_v8  ;;  %v4925_v28 = vsub.f32 %v14867_v46, %v14868_v33  ;;  %v14872_v30 = vand.u32 4294901760, %v14871_v2  ;;  %v14886_v49 = vld [vmem:[#allocation134_spill] sm:$0xff]  ;;  %v14892_v56 = vld [vmem:[#allocation39_spill] sm:$0xff] }
 0x4cc   :  { %9124 = vmatpush3.bf16.msra.mxu1 %v9123_v14  ;;  %v4932_v4 = vsub.f32 %v14869_v38, %v14870_v10  ;;  %v14874_v3 = vand.u32 4294901760, %v14873_v1  ;;  %v9133_v0 = vpack.c.bf16 %v4919_v58, %v4912_v5  ;;  %v14875_v63 = vand.u32 4294901760, %v12844_v37  ;;  %v14889_v23 = vld [vmem:[#allocation106_spill] sm:$0xff]  ;;  %v14894_v5 = vld [vmem:[#allocation49_spill] sm:$0xff]  ;;  %v14896_v10 = vld [vmem:[#allocation67_spill] sm:$0xff] }
 0x4cd   :  { %9126 = vmatprep.subr.bf16.mxu1 %v9125_v25  ;;  %v4800_v17 = vand.u32 4294901760, %v4799_v29  ;;  %v4807_v20 = vand.u32 4294901760, %v4806_v6  ;;  %v4813_v52 = vsub.f32 %v14871_v2, %v14872_v30  ;;  %v14876_v14 = vand.u32 4294901760, %v12849_v13  ;;  %v14879_v13 = vld [vmem:[#allocation69_spill] sm:$0xff]  ;;  %v14893_v47 = vld [vmem:[#allocation86_spill] sm:$0xff]  ;;  %v14898_v30 = vld [vmem:[#allocation96_spill] sm:$0xff] }
 0x4ce   :  { %9416 = vmatpush3.bf16.msra.mxu0 %v9413_v8  ;;  %v4820_v15 = vsub.f32 %v14873_v1, %v14874_v3  ;;  %v4926_v39 = vand.u32 4294901760, %v4925_v28  ;;  %v4933_v8 = vand.u32 4294901760, %v4932_v4  ;;  %v14877_v42 = vand.u32 4294901760, %v12868_v19  ;;  %v14882_v19 = vld [vmem:[#allocation74_spill] sm:$0xff]  ;;  %v14895_v28 = vld [vmem:[#allocation56_spill] sm:$0xff] }
 0x4cf   :  { %9418 = vmatprep.subr.bf16.mxu0 %v9417_v16  ;;  %v9421_v54 = vpack.c.bf16 %v14876_v14, %v14875_v63  ;;  %v9135_v9 = vpack.c.bf16 %v4807_v20, %v4800_v17  ;;  %v4814_v12 = vand.u32 4294901760, %v4813_v52  ;;  %v14878_v61 = vand.u32 4294901760, %v12873_v41  ;;  %v14883_v41 = vld [vmem:[#allocation80_spill] sm:$0xff]  ;;  %v14897_v2 = vld [vmem:[#allocation78_spill] sm:$0xff]  ;;  %v14899_v52 = vld [vmem:[#allocation109_spill] sm:$0xff] }
 0x4d0   :  { %9128 = vmatpush3.bf16.msra.mxu1 %v9127_v26  ;;  %v4821_v25 = vand.u32 4294901760, %v4820_v15  ;;  %v9137_v22 = vpack.c.bf16 %v4933_v8, %v4926_v39  ;;  %v14884_v26 = vld [vmem:[#allocation141_spill] sm:$0xff]  ;;  %v14900_v1 = vld [vmem:[#allocation136_spill] sm:$0xff]  ;;  %v14904_v63 = vld [vmem:[#allocation142_spill] sm:$0xff] }
 0x4d1   :  { %9130 = vmatprep.subr.bf16.mxu1 %v9129_v11  ;;  %v9425_v27 = vpack.c.bf16 %v14878_v61, %v14877_v42  ;;  %v14891_v11 = vld [vmem:[#allocation37_spill] sm:$0xff]  ;;  %v14901_v3 = vand.u32 4294901760, %v14900_v1  ;;  %v14902_v15 = vld [vmem:[#allocation140_spill] sm:$0xff]  ;;  %v14905_v14 = vand.u32 4294901760, %v14904_v63 }
 0x4d2   :  { %9420 = vmatpush3.bf16.msra.mxu0 %v9417_v16  ;;  %v9139_v37 = vpack.c.bf16 %v4821_v25, %v4814_v12  ;;  %v14887_v16 = vand.u32 4294901760, %v14886_v49 }
 0x4d3   :  { %9422 = vmatprep.subr.bf16.mxu0 %v9421_v54 }
 0x4d4   :  { %9132 = vmatpush3.bf16.msra.mxu1 %v9131_v57 }
 0x4d5   :  { %9134 = vmatprep.subr.bf16.mxu1 %v9133_v0  ;;  %v14903_v0 = vand.u32 4294901760, %v14902_v15 }
 0x4d6   :  { %9424 = vmatpush3.bf16.msra.mxu0 %v9421_v54  ;;  %v14906_v54 = vld [vmem:[#allocation102_spill] sm:$0xff] }
 0x4d7   :  { %9426 = vmatprep.subr.bf16.mxu0 %v9425_v27  ;;  %v3664_v39 = vsub.s32 6, %v14906_v54 }
 0x4d8   :  { %9136 = vmatpush3.bf16.msra.mxu1 %v9135_v9 }
 0x4d9   :  { %9138 = vmatprep.subr.bf16.mxu1 %v9137_v22 }
 0x4da   :  { %9428 = vmatpush3.bf16.msra.mxu0 %v9425_v27 }
 0x4db   :  { %9430 = vmatprep.subr.bf16.mxu0 %v14778_v48 }
 0x4dc   :  { %9140 = vmatpush3.bf16.msra.mxu1 %v9139_v37 }
 0x4dd   :  { %9174 = vmatprep.subr.bf16.mxu1 %v14879_v13  ;;  %8080 = vmatmul.mubr.f32.vlgmr.msra.gmra.mrb[28].mxu0 %v12911_v24 }
 0x4de   :  { %9432 = vmatpush3.bf16.msra.mxu0 %v14778_v48  ;;  %8114 = vmatprep.mubr.f32.mxu0 %v12839_v45  ;;  %v14890_v45 = vld [vmem:[#allocation24_spill] sm:$0xff] }
 0x4df   :  { %4938 = vmatmul.mubr.f32.vlgmr.msra.gmra.mrb[62].mxu1 %v14880_v34  ;;  %9434 = vmatprep.subr.bf16.mxu0 %v14783_v55 }
 0x4e0   :  { %4943 = vmatprep.mubr.f32.mxu1 %v14881_v44  ;;  %9176 = vmatpush3.bf16.msra.mxu1 %v14882_v19 }
 0x4e1   :  { %9178 = vmatprep.subr.bf16.mxu1 %v14883_v41 }
 0x4e2   :  { %9436 = vmatpush3.bf16.msra.mxu0 %v14783_v55 }
 0x4e3   :  { %4945 = vmatmul.mubr.f32.gmra.mrb[64].mxu1 %v14884_v26  ;;  %9438 = vmatprep.subr.bf16.mxu0 %v14787_v18 }
 0x4e4   :  { %9180 = vmatpush3.bf16.msra.mxu1 %v14885_v60  ;;  %5196 = vmatprep.mubr.f32.mxu1 %v14887_v16 }
 0x4e5   :  { %9182 = vmatprep.subr.bf16.mxu1 %v14888_v51 }
 0x4e6   :  { %9440 = vmatpush3.bf16.msra.mxu0 %v14787_v18 }
 0x4e7   :  { %9442 = vmatprep.subr.bf16.mxu0 %v14790_v62 }
 0x4e8   :  { %9184 = vmatpush3.bf16.msra.mxu1 %v14889_v23 }
 0x4e9   :  { %9186 = vmatprep.subr.bf16.mxu1 %v14890_v45 }
 0x4ea   :  { %9444 = vmatpush3.bf16.msra.mxu0 %v14790_v62 }
 0x4eb   :  { %9446 = vmatprep.subr.bf16.mxu0 %v14792_v21 }
 0x4ec   :  { %9188 = vmatpush3.bf16.msra.mxu1 %v14891_v11 }
 0x4ed   :  { %9190 = vmatprep.subr.bf16.mxu1 %v14892_v56 }
 0x4ee   :  { %v6955_v7 = vpop.f32.mrb[38].mxu1  ;;  %v7183_v29 = vpop.f32.mrb[16].mxu0  ;;  %9448 = vmatpush3.bf16.msra.mxu0 %v14792_v21 }
 0x4ef   :  { %v6956_v53 = vpop.f32.mrb[39].mxu1  ;;  %v7184_v6 = vpop.f32.mrb[17].mxu0  ;;  %9450 = vmatprep.subr.bf16.mxu0 %v14799_v32 }
 0x4f0   :  { %9192 = vmatpush3.bf16.msra.mxu1 %v14893_v47  ;;  %v6957_v58 = vadd.f32 %v6956_v53, %v6955_v7  ;;  %v13204_v46 = vadd.f32 %v7184_v6, %v7183_v29 }
 0x4f1   :  { %9194 = vmatprep.subr.bf16.mxu1 %v14894_v5 }
 0x4f2   :  { %v6958_v33 = vpop.f32.mrb[40].mxu1  ;;  %9452 = vmatpush3.bf16.msra.mxu0 %v14799_v32 }
 0x4f3   :  { %v6959_v38 = vpop.f32.mrb[41].mxu1  ;;  %9454 = vmatprep.subr.bf16.mxu0 %v14804_v36 }
 0x4f4   :  { %9196 = vmatpush3.bf16.msra.mxu1 %v14895_v28  ;;  %v6960_v4 = vadd.f32 %v6959_v38, %v6958_v33 }
 0x4f5   :  { %9198 = vmatprep.subr.bf16.mxu1 %v14896_v10  ;;  %v7186_v57 = vpop.f32.mrb[18].mxu0 }
 0x4f6   :  { %v7187_v17 = vpop.f32.mrb[19].mxu0  ;;  %9456 = vmatpush3.bf16.msra.mxu0 %v14804_v36 }
 0x4f7   :  { %v13211_v20 = vadd.f32 %v7187_v17, %v7186_v57  ;;  %9458 = vmatprep.subr.bf16.mxu0 %v14817_v40 }
 0x4f8   :  { %9200 = vmatpush3.bf16.msra.mxu1 %v14897_v2 }
 0x4f9   :  { %9202 = vmatprep.subr.bf16.mxu1 %v14898_v30 }
 0x4fa   :  { %9460 = vmatpush3.bf16.msra.mxu0 %v14817_v40 }
 0x4fc   :  { %9204 = vmatpush3.bf16.msra.mxu1 %v14899_v52 }
 0x4fd   :  { %9238 = vmatprep.subr.bf16.mxu1 %v14879_v13  ;;  %8115 = vmatmul.mubr.f32.vlgmr.msra.gmra.mrb[28].mxu0 %v12911_v24  ;;  %v13235_v24 = vld [vmem:[#allocation10] sm:$0xff] }
 0x4fe   :  { %v3665_v8 = vrot.slane %v13235_v24, %v3664_v39 }
 0x4ff   :  { %5200 = vmatmul.mubr.f32.vlgmr.msra.gmra.mrb[66].mxu1 %v14901_v3 }
 0x500   :  { %5207 = vmatprep.mubr.f32.mxu1 %v14903_v0  ;;  %9240 = vmatpush3.bf16.msra.mxu1 %v14882_v19  ;;  %v3775_v22 = vadd.f32 %v6957_v58, %v3665_v8 }
 0x501   :  { %9242 = vmatprep.subr.bf16.mxu1 %v14883_v41 }
 0x503   :  { %5211 = vmatmul.mubr.f32.gmra.mrb[68].mxu1 %v14905_v14 }
 0x504   :  { %5488 = vmatprep.mubr.f32.mxu1 %v14840_v31  ;;  %9244 = vmatpush3.bf16.msra.mxu1 %v14885_v60  ;;  %v3790_v60 = vadd.f32 %v6960_v4, %v3665_v8 }
 0x505   :  { %9246 = vmatprep.subr.bf16.mxu1 %v14888_v51 }
 0x508   :  { %9248 = vmatpush3.bf16.msra.mxu1 %v14889_v23  ;;  %v5586_v23 = vsub.f32 %v12926_v50, %v5585_v59 }
 0x509   :  { %9250 = vmatprep.subr.bf16.mxu1 %v14890_v45 }
 0x50a   :  { %v5587_v45 = vand.u32 4294901760, %v5586_v23 }
 0x50c   :  { %9252 = vmatpush3.bf16.msra.mxu1 %v14891_v11 }
 0x50d   :  { %9254 = vmatprep.subr.bf16.mxu1 %v14892_v56 }
 0x50e   :  { %v6993_v9 = vpop.f32.mrb[42].mxu1  ;;  %v7259_v31 = vpop.f32.mrb[20].mxu0 }
 0x50f   :  { %v6994_v12 = vpop.f32.mrb[43].mxu1  ;;  %v7260_v25 = vpop.f32.mrb[21].mxu0 }
 0x510   :  { %9256 = vmatpush3.bf16.msra.mxu1 %v14893_v47  ;;  %v6995_v42 = vadd.f32 %v6994_v12, %v6993_v9  ;;  %v13241_v61 = vadd.f32 %v7260_v25, %v7259_v31 }
 0x511   :  { %9258 = vmatprep.subr.bf16.mxu1 %v14894_v5 }
 0x512   :  { %v4022_v27 = vadd.f32 %v6995_v42, %v3775_v22  ;;  %v6996_v37 = vpop.f32.mrb[44].mxu1  ;;  %v7262_v13 = vpop.f32.mrb[22].mxu0 }
 0x513   :  { %v6997_v19 = vpop.f32.mrb[45].mxu1  ;;  %v7263_v41 = vpop.f32.mrb[23].mxu0 }
 0x514   :  { %9260 = vmatpush3.bf16.msra.mxu1 %v14895_v28  ;;  %v6998_v49 = vadd.f32 %v6997_v19, %v6996_v37  ;;  %v13245_v16 = vadd.f32 %v7263_v41, %v7262_v13 }
 0x515   :  { %9262 = vmatprep.subr.bf16.mxu1 %v14896_v10 }
 0x516   :  { %v4029_v51 = vadd.f32 %v6998_v49, %v3790_v60 }
 0x518   :  { %9264 = vmatpush3.bf16.msra.mxu1 %v14897_v2 }
 0x519   :  { %9266 = vmatprep.subr.bf16.mxu1 %v14898_v30 }
 0x51c   :  { %9268 = vmatpush3.bf16.msra.mxu1 %v14899_v52 }
 0x51d   :  { %9270 = vmatprep.subr.bf16.mxu1 %v14778_v48 }
 0x51f   :  { %5490 = vmatmul.mubr.f32.vlgmr.msra.gmra.mrb[70].mxu1 %v14880_v34 }
 0x520   :  { %5495 = vmatprep.mubr.f32.mxu1 %v14881_v44  ;;  %9272 = vmatpush3.bf16.msra.mxu1 %v14778_v48 }
 0x521   :  { %9274 = vmatprep.subr.bf16.mxu1 %v14783_v55 }
 0x523   :  { %5497 = vmatmul.mubr.f32.gmra.mrb[72].mxu1 %v14884_v26 }
 0x524   :  { %9276 = vmatpush3.bf16.msra.mxu1 %v14783_v55  ;;  %7939 = vmatprep.mubr.f32.mxu1 %v5587_v45 }
 0x525   :  { %9278 = vmatprep.subr.bf16.mxu1 %v14787_v18 }
 0x528   :  { %9280 = vmatpush3.bf16.msra.mxu1 %v14787_v18 }
 0x529   :  { %9282 = vmatprep.subr.bf16.mxu1 %v14790_v62 }
 0x52c   :  { %9284 = vmatpush3.bf16.msra.mxu1 %v14790_v62 }
 0x52d   :  { %9286 = vmatprep.subr.bf16.mxu1 %v14792_v21 }
 0x52f   :  { %v7335_v48 = vpop.f32.mrb[24].mxu0 }
 0x530   :  { %9288 = vmatpush3.bf16.msra.mxu1 %v14792_v21  ;;  %v7336_v44 = vpop.f32.mrb[25].mxu0  ;;  %v5596_v21 = vsub.f32 %v12999_v43, %v5595_v35 }
 0x531   :  { %v13267_v26 = vadd.f32 %v7336_v44, %v7335_v48  ;;  %9290 = vmatprep.subr.bf16.mxu1 %v14799_v32 }
 0x532   :  { %v7031_v50 = vpop.f32.mrb[46].mxu1  ;;  %v5597_v53 = vand.u32 4294901760, %v5596_v21 }
 0x533   :  { %v7032_v59 = vpop.f32.mrb[47].mxu1 }
 0x534   :  { %v7033_v34 = vadd.f32 %v7032_v59, %v7031_v50  ;;  %v7338_v18 = vpop.f32.mrb[26].mxu0  ;;  %9292 = vmatpush3.bf16.msra.mxu1 %v14799_v32 }
 0x535   :  { %v7339_v7 = vpop.f32.mrb[27].mxu0  ;;  %9294 = vmatprep.subr.bf16.mxu1 %v14804_v36 }
 0x536   :  { %v4167_v55 = vadd.f32 %v7033_v34, %v4022_v27  ;;  %v7034_v11 = vpop.f32.mrb[48].mxu1  ;;  %v7340_v29 = vadd.f32 %v7339_v7, %v7338_v18 }
 0x537   :  { %v7035_v56 = vpop.f32.mrb[49].mxu1 }
 0x538   :  { %v7036_v62 = vadd.f32 %v7035_v56, %v7034_v11  ;;  %9296 = vmatpush3.bf16.msra.mxu1 %v14804_v36 }
 0x539   :  { %9298 = vmatprep.subr.bf16.mxu1 %v14817_v40 }
 0x53a   :  { %v4176_v47 = vadd.f32 %v7036_v62, %v4029_v51 }
 0x53c   :  { %9300 = vmatpush3.bf16.msra.mxu1 %v14817_v40 }
 0x53f   :  { %7940 = vmatmul.mubr.f32.vlgmr.msra.gmra.mrb[74].mxu1 %v5597_v53 }
 0x552   :  { %v7069_v6 = vpop.f32.mrb[50].mxu1 }
 0x553   :  { %v7070_v32 = vpop.f32.mrb[51].mxu1 }
 0x554   :  { %v7071_v5 = vadd.f32 %v7070_v32, %v7069_v6 }
 0x556   :  { %v4284_v58 = vadd.f32 %v7071_v5, %v4167_v55  ;;  %v7072_v33 = vpop.f32.mrb[52].mxu1 }
 0x557   :  { %v7073_v28 = vpop.f32.mrb[53].mxu1 }
 0x558   :  { %v7074_v38 = vadd.f32 %v7073_v28, %v7072_v33 }
 0x55a   :  { %v4295_v10 = vadd.f32 %v7074_v38, %v4176_v47 }
 0x572   :  { %v7107_v4 = vpop.f32.mrb[54].mxu1 }
 0x573   :  { %v7108_v36 = vpop.f32.mrb[55].mxu1 }
 0x574   :  { %v7109_v57 = vadd.f32 %v7108_v36, %v7107_v4 }
 0x576   :  { %v4463_v17 = vadd.f32 %v7109_v57, %v4284_v58  ;;  %v7110_v2 = vpop.f32.mrb[56].mxu1 }
 0x577   :  { %v7111_v43 = vpop.f32.mrb[57].mxu1 }
 0x578   :  { %v7112_v35 = vadd.f32 %v7111_v43, %v7110_v2 }
 0x57a   :  { %v4470_v30 = vadd.f32 %v7112_v35, %v4295_v10 }
 0x592   :  { %v7145_v52 = vpop.f32.mrb[58].mxu1 }
 0x593   :  { %v7146_v40 = vpop.f32.mrb[59].mxu1 }
 0x594   :  { %v7147_v1 = vadd.f32 %v7146_v40, %v7145_v52 }
 0x596   :  { %v4574_v3 = vadd.f32 %v7147_v1, %v4463_v17  ;;  %v7148_v15 = vpop.f32.mrb[60].mxu1 }
 0x597   :  { %v7149_v0 = vpop.f32.mrb[61].mxu1 }
 0x598   :  { %v7150_v63 = vadd.f32 %v7149_v0, %v7148_v15  ;;  %v4693_v14 = vadd.f32 %v13204_v46, %v4574_v3  ;;  %v6216_v0 = vsub.s32 7, %v14906_v54 }
 0x59a   :  { %v4581_v39 = vadd.f32 %v7150_v63, %v4470_v30 }
 0x59c   :  { %v4708_v8 = vadd.f32 %v13211_v20, %v4581_v39 }
 0x5b2   :  { %v7221_v9 = vpop.f32.mrb[62].mxu1 }
 0x5b3   :  { %v7222_v31 = vpop.f32.mrb[63].mxu1 }
 0x5b4   :  { %v7223_v12 = vadd.f32 %v7222_v31, %v7221_v9  ;;  %v90_v9 = vld [vmem:[#allocation10 + $0x8] sm:$0xff] }
 0x5b6   :  { %v4940_v25 = vadd.f32 %v7223_v12, %v4693_v14  ;;  %v7224_v22 = vpop.f32.mrb[64].mxu1 }
 0x5b7   :  { %v7225_v42 = vpop.f32.mrb[65].mxu1 }
 0x5b8   :  { %v7226_v27 = vadd.f32 %v7225_v42, %v7224_v22  ;;  %v5085_v37 = vadd.f32 %v13241_v61, %v4940_v25  ;;  %v14907_v42 = vsub.s32 0, %v14906_v54 }
 0x5ba   :  { %v4947_v13 = vadd.f32 %v7226_v27, %v4708_v8 }
 0x5bc   :  { %v5094_v19 = vadd.f32 %v13245_v16, %v4947_v13 }
 0x5d0   :  { %v8116_v60 = vpop.f32.mrb[28].mxu0 }
 0x5d1   :  { %v6176_v46 = vpop.f32.mrb[29].mxu0 }
 0x5d2   :  { %v7297_v41 = vpop.f32.mrb[66].mxu1 }
 0x5d3   :  { %v7298_v49 = vpop.f32.mrb[67].mxu1 }
 0x5d4   :  { %v7299_v51 = vadd.f32 %v7298_v49, %v7297_v41  ;;  %v14910_v49 = vld [vmem:[#allocation104_spill] sm:$0xff] }
 0x5d6   :  { %v5202_v23 = vadd.f32 %v7299_v51, %v5085_v37  ;;  %v7300_v45 = vpop.f32.mrb[68].mxu1  ;;  %v14911_v51 = vmax.f32 %v14910_v49, 0.0 }
 0x5d7   :  { %v7301_v20 = vpop.f32.mrb[69].mxu1 }
 0x5d8   :  { %v7302_v50 = vadd.f32 %v7301_v20, %v7300_v45  ;;  %v5381_v48 = vadd.f32 %v13267_v26, %v5202_v23 }
 0x5da   :  { %v5213_v59 = vadd.f32 %v7302_v50, %v5094_v19  ;;  %v14908_v19 = vld [vmem:[#allocation103_spill] sm:$0xff] }
 0x5db   :  { %v14909_v41 = vmax.f32 %v14908_v19, 0.0 }
 0x5dc   :  { %v5388_v34 = vadd.f32 %v7340_v29, %v5213_v59 }
 0x5f2   :  { %v7373_v44 = vpop.f32.mrb[70].mxu1 }
 0x5f3   :  { %v7374_v55 = vpop.f32.mrb[71].mxu1 }
 0x5f4   :  { %v7375_v11 = vadd.f32 %v7374_v55, %v7373_v44 }
 0x5f6   :  { %v7376_v61 = vpop.f32.mrb[72].mxu1  ;;  %v5492_v18 = vadd.f32 %v7375_v11, %v5381_v48 }
 0x5f7   :  { %v7377_v56 = vpop.f32.mrb[73].mxu1 }
 0x5f8   :  { %v7378_v16 = vadd.f32 %v7377_v56, %v7376_v61 }
 0x5fa   :  { %v5499_v62 = vadd.f32 %v7378_v16, %v5388_v34 }
 0x612   :  { %v7941_v7 = vpop.f32.mrb[74].mxu1 }
 0x613   :  { %v5600_v47 = vadd.f32 %v7941_v7, %v5499_v62  ;;  %v5589_v21 = vpop.f32.mrb[75].mxu1 }
 0x614   :  { %v5590_v53 = vadd.f32 %v5589_v21, %v5492_v18 }
 0x615   :  { %v9468_v6 = vadd.f32 %v8116_v60, %v5600_v47 }
 0x616   :  { %v9470_v32 = vadd.f32 %v6176_v46, %v5590_v53 }
 0x617   :  { %v6194_v5 = vmul.f32 %v9468_v6, %v9468_v6 }
 0x618   :  { %v6186_v58 = vadd.f32 %v9470_v32, %v9468_v6  ;;  %v6193_v33 = vmul.f32 %v9470_v32, %v9470_v32 }
 0x61a   :  { %v6187_v26 = vrot.slane %v6186_v58, 4  ;;  %v6195_v28 = vadd.f32 %v6194_v5, %v6193_v33 }
 0x61c   :  { %v6188_v29 = vadd.f32 %v6187_v26, %v6186_v58  ;;  %v6196_v38 = vrot.slane %v6195_v28, 4 }
 0x61e   :  { %v6189_v10 = vrot.slane %v6188_v29, 2  ;;  %v6197_v4 = vadd.f32 %v6196_v38, %v6195_v28 }
 0x620   :  { %v6190_v36 = vadd.f32 %v6189_v10, %v6188_v29  ;;  %v6198_v57 = vrot.slane %v6197_v4, 2 }
 0x622   :  { %v6191_v17 = vrot.slane %v6190_v36, 1  ;;  %v6199_v2 = vadd.f32 %v6198_v57, %v6197_v4 }
 0x624   :  { %v6192_v43 = vadd.f32 %v6191_v17, %v6190_v36  ;;  %v6200_v35 = vrot.slane %v6199_v2, 1 }
 0x626   :  { %v6201_v30 = vadd.f32 %v6200_v35, %v6199_v2  ;;  %v6202_v52 = vmul.f32 0.0625, %v6192_v43 }
 0x628   :  { %v6203_v40 = vmul.f32 0.0625, %v6201_v30  ;;  %v6204_v1 = vmul.f32 %v6202_v52, %v6202_v52 }
 0x62a   :  { %v6205_v3 = vsub.f32 %v6203_v40, %v6204_v1 }
 0x62c   :  { %v6206_v15 = vadd.f32 1e-05, %v6205_v3 }
 0x62e   :  { %9509 = vrsqrt.f32 %v6206_v15 }
 0x638   :  { %v9510_v63 = vpop.eup %9509 }
 0x639   :  { %v6208_v14 = vmul.f32 %v13235_v24, %v9510_v63 }
 0x63b   :  { %v6209_v39 = vmul.f32 %v6208_v14, %v6202_v52  ;;  %v6217_v8 = vrot.slane %v6208_v14, %v6216_v0 }
 0x63d   :  { %v6211_v31 = vrot.slane %v6209_v39, 7  ;;  %v6218_v12 = vmul.f32 %v9470_v32, %v6217_v8  ;;  %v6219_v25 = vmul.f32 %v9468_v6, %v6217_v8 }
 0x63f   :  { %v6213_v22 = vsub.f32 %v90_v9, %v6211_v31 }
 0x641   :  { %v6223_v27 = vrot.slane %v6213_v22, %v14907_v42 }
 0x643   :  { %v6224_v37 = vadd.f32 %v6223_v27, %v6218_v12  ;;  %v6225_v13 = vadd.f32 %v6223_v27, %v6219_v25 }
 0x645   :  { %v6226_v60 = vadd.f32 %v6224_v37, %v14909_v41  ;;  %v6227_v24 = vadd.f32 %v6225_v13, %v14911_v51 }
 0x647   :  { %v6228_v46 = vmax.f32 %v6226_v60, 0.0  ;;  %v6229_v23 = vmax.f32 %v6227_v24, 0.0 }
 0x649   :  { %6230 = vst [vmem:[#allocation11] sm:$0xff] %v6228_v46  ;;  %6231 = vst [vmem:[#allocation11 + $0x8] sm:$0xff] %v6229_v23 }
 0x64a   :  { %9635 = shalt.err (!%p9632_p2)
}
 0x64b   :  { %s9636_s7 = scalar_lea.hbm %s13311_s5, 256 }
 0x64c   :  { %p9637_p3 = scmp.ne.s32.totalorder %s13311_s5, %s9636_s7  ;;  %p9640_p4 = scmp.lt.u32.totalorder %s9636_s7, %s13311_s5 }
 0x64e   :  { %p9642_p5 = pnand %p9640_p4, %p9637_p3 }
 0x650   :  { %9645 = shalt.err (!%p9642_p5)
}
 0x651   :  { %6243 = dma.vmem_to_hbm [thread:$0]  %s6238_s28, 256, %s13311_s5, [#allocation4], %s9656_s30, %s9656_s30, %s9657_s6  }
 0x652   :  { %9652 = dma.done.wait [#allocation4], 256  }
 0x653   :  { %9653 = vsyncadd [#allocation4], 4294967040 }
 0x654   :  { %6247 = vsyncpa [#allocation3], 1 }
 0x655   :  { %6248 = vsyncpa [#allocation6], 1 }
 0x656   :  { %6249 = vsyncpa [#allocation9], 1 }
 0x657   :  { %6250 = vsyncpa [#allocation4], 1 }

</bundles_post_ra>
